<compile_context>
chip_gen: v6e
topology: v6e:2x2x1
jax: 0.10.0
libtpu: 0.0.40
codegen_flags: <defaults>
</compile_context>

<pallas_src>
import math

import jax
import jax.numpy as jnp
from jax import lax
from jax.experimental import pallas as pl
from jax.experimental.pallas import tpu as pltpu

d_q = d_k = d_v = 64
d_model = 512
n_heads = 8


# ------------------- shared-activation fused projection -------------------- #
def _make_shared_proj_kernel(splits):
    offs, off = [], 0
    for sz in splits:
        offs.append((off, sz))
        off += sz
    offs = tuple(offs)

    def kernel(x_ref, w_ref, b_ref, *out_refs):
        acc = jnp.dot(x_ref[...], w_ref[...],
                      preferred_element_type=jnp.float32) + b_ref[...]
        for (o, sz), o_ref in zip(offs, out_refs):
            o_ref[...] = acc[:, o:o + sz].astype(o_ref.dtype)

    return kernel


def pallas_shared_proj(x, w_cat, b_cat, splits, *, out_dtype=jnp.bfloat16,
                       tm_max=512):
    """x: (M, K) bf16 read ONCE; w_cat: (K, sum(splits)) bf16; b_cat: f32."""
    M, K = x.shape
    N = w_cat.shape[1]
    tm = M if M <= tm_max else tm_max
    out_shape = tuple(jax.ShapeDtypeStruct((M, sz), out_dtype) for sz in splits)
    out_specs = tuple(pl.BlockSpec((tm, sz), lambda i: (i, 0)) for sz in splits)
    return pl.pallas_call(
        _make_shared_proj_kernel(tuple(splits)),
        out_shape=out_shape,
        grid=(pl.cdiv(M, tm),),
        in_specs=[pl.BlockSpec((tm, K), lambda i: (i, 0)),
                  pl.BlockSpec((K, N), lambda i: (0, 0)),
                  pl.BlockSpec((1, N), lambda i: (0, 0))],
        out_specs=out_specs,
        compiler_params=pltpu.CompilerParams(dimension_semantics=("parallel",)),
    )(x, w_cat, b_cat.reshape(1, N))


# ---------------- multi-activation fused projections (one call) ------------- #
def _make_multi_proj_kernel(n):
    def kernel(*refs):
        x_refs = refs[:n]
        w_refs = refs[n:2 * n]
        b_refs = refs[2 * n:3 * n]
        o_refs = refs[3 * n:4 * n]
        for x_ref, w_ref, b_ref, o_ref in zip(x_refs, w_refs, b_refs, o_refs):
            acc = jnp.dot(x_ref[...], w_ref[...],
                          preferred_element_type=jnp.float32)
            o_ref[...] = (acc + b_ref[...]).astype(o_ref.dtype)

    return kernel


def pallas_multi_proj(xs, ws, bs, *, out_dtype=jnp.bfloat16, tm_max=512):
    """xs: tuple of (M, K) bf16 (same M); ws: (K, Ni) bf16; bs: (Ni,) f32."""
    n = len(xs)
    M, K = xs[0].shape
    tm = M if M <= tm_max else tm_max
    in_specs = ([pl.BlockSpec((tm, K), lambda i: (i, 0))] * n
                + [pl.BlockSpec((K, w.shape[1]), lambda i: (0, 0)) for w in ws]
                + [pl.BlockSpec((1, w.shape[1]), lambda i: (0, 0)) for w in ws])
    out_specs = tuple(pl.BlockSpec((tm, w.shape[1]), lambda i: (i, 0)) for w in ws)
    out_shape = tuple(jax.ShapeDtypeStruct((M, w.shape[1]), out_dtype) for w in ws)
    args = list(xs) + list(ws) + [b.reshape(1, -1) for b in bs]
    return pl.pallas_call(
        _make_multi_proj_kernel(n),
        out_shape=out_shape,
        grid=(pl.cdiv(M, tm),),
        in_specs=in_specs,
        out_specs=out_specs,
        compiler_params=pltpu.CompilerParams(dimension_semantics=("parallel",)),
    )(*args)


# -------------- attention + output-projection fused kernel ------------------ #
def _make_attn_fc_kernel(with_attn):
    def kernel(q_ref, k_ref, v_ref, wo_ref, bo_ref, out_ref, *rest):
        if with_attn:
            attn_ref, ctx_sc = rest
        else:
            (ctx_sc,) = rest
        q = q_ref[0]   # (tq, H*D) bf16, already carries 1/sqrt(d_k)
        k = k_ref[0]   # (Sk, H*D) bf16
        v = v_ref[0]   # (Sk, H*D) bf16
        for h in range(n_heads):                    # static unroll over heads
            qh = q[:, h * d_q:(h + 1) * d_q]        # (tq, D)
            kh = k[:, h * d_k:(h + 1) * d_k]        # (Sk, D)
            vh = v[:, h * d_v:(h + 1) * d_v]        # (Sk, D)
            # NT matmul: contract last dims of both operands (no K transpose)
            s = lax.dot_general(qh, kh, (((1,), (1,)), ((), ())),
                                preferred_element_type=jnp.float32)  # (tq, Sk)
            s = s - jnp.max(s, axis=-1, keepdims=True)
            e = jnp.exp(s)
            inv = 1.0 / jnp.sum(e, axis=-1, keepdims=True)  # exact: rows sum to 1
            p = e * inv
            if with_attn:
                attn_ref[0, h] = p
            # per-head write into the f32 VMEM scratch (no 8-way concat / spills)
            ctx_sc[:, h * d_v:(h + 1) * d_v] = jnp.dot(
                p.astype(v.dtype), vh, preferred_element_type=jnp.float32)
        # fused output projection: ctx never leaves VMEM
        ctx = ctx_sc[...].astype(wo_ref.dtype)               # (tq, H*D) bf16
        out = jnp.dot(ctx, wo_ref[...],
                      preferred_element_type=jnp.float32) + bo_ref[...]
        out_ref[0] = out.astype(out_ref.dtype)

    return kernel


def pallas_attention_output(Q, K, V, wo, bo, *, return_attn=True, tq_max=256):
    """Q: (B, Sq, H*D) bf16 pre-scaled; K, V: (B, Sk, H*D) bf16;
    wo: (H*D, d_model) bf16; bo: (d_model,) f32.
    Returns (output (B,Sq,d_model) f32, attn (B,H,Sq,Sk) f32 or None)."""
    B, Sq, HD = Q.shape
    Sk = K.shape[1]
    tq = Sq if Sq <= tq_max else tq_max

    in_specs = [
        pl.BlockSpec((1, tq, HD), lambda b, qi: (b, qi, 0)),
        pl.BlockSpec((1, Sk, HD), lambda b, qi: (b, 0, 0)),
        pl.BlockSpec((1, Sk, HD), lambda b, qi: (b, 0, 0)),
        pl.BlockSpec((HD, d_model), lambda b, qi: (0, 0)),     # resident W_o
        pl.BlockSpec((1, d_model), lambda b, qi: (0, 0)),
    ]
    out_shape = [jax.ShapeDtypeStruct((B, Sq, d_model), jnp.float32)]
    out_specs = [pl.BlockSpec((1, tq, d_model), lambda b, qi: (b, qi, 0))]
    if return_attn:
        out_shape.append(jax.ShapeDtypeStruct((B, n_heads, Sq, Sk), jnp.float32))
        out_specs.append(
            pl.BlockSpec((1, n_heads, tq, Sk), lambda b, qi: (b, 0, qi, 0)))

    outs = pl.pallas_call(
        _make_attn_fc_kernel(return_attn),
        out_shape=tuple(out_shape),
        grid=(B, pl.cdiv(Sq, tq)),
        in_specs=in_specs,
        out_specs=tuple(out_specs),
        scratch_shapes=[pltpu.VMEM((tq, HD), jnp.float32)],
        compiler_params=pltpu.CompilerParams(
            dimension_semantics=("parallel", "parallel"),
            vmem_limit_bytes=48 * 1024 * 1024),
    )(Q, K, V, wo, bo.reshape(1, d_model))

    if return_attn:
        return outs[0], outs[1]
    return outs[0], None


# ------------------------- module forward (wrapper) ------------------------ #
def init_params(key):
    """Deterministic parameter init; weights stored as (in, out) = torch W^T."""
    ks = jax.random.split(key, 8)

    def lin(kw, kb, fan_in, fan_out):
        bound = 1.0 / math.sqrt(fan_in)
        w = jax.random.uniform(kw, (fan_in, fan_out), jnp.float32, -bound, bound)
        b = jax.random.uniform(kb, (fan_out,), jnp.float32, -bound, bound)
        return w, b

    wq, bq = lin(ks[0], ks[1], d_model, d_q * n_heads)
    wk, bk = lin(ks[2], ks[3], d_model, d_k * n_heads)
    wv, bv = lin(ks[4], ks[5], d_model, d_v * n_heads)
    wo, bo = lin(ks[6], ks[7], d_v * n_heads, d_model)
    return dict(wq=wq, bq=bq, wk=wk, bk=bk, wv=wv, bv=bv, wo=wo, bo=bo)


def multi_head_attention(params, input_q, input_k, input_v, *, return_attn=True):
    B, Sq, _ = input_q.shape
    Sk = input_k.shape[1]
    HDq, HDk, HDv = n_heads * d_q, n_heads * d_k, n_heads * d_v

    # Fold 1/sqrt(d_k) into the Q projection (1/8 is exact) and cast
    # weights/activations to bf16 for the MXU; biases stay f32.
    scale = 1.0 / math.sqrt(d_k)
    wq = (params["wq"] * scale).astype(jnp.bfloat16)
    bq = params["bq"] * scale
    wk = params["wk"].astype(jnp.bfloat16)
    wv = params["wv"].astype(jnp.bfloat16)
    wo = params["wo"].astype(jnp.bfloat16)
    bk, bv, bo = params["bk"], params["bv"], params["bo"]

    xq = input_q.reshape(B * Sq, d_model).astype(jnp.bfloat16)
    xk = input_k.reshape(B * Sk, d_model).astype(jnp.bfloat16)
    xv = input_v.reshape(B * Sk, d_model).astype(jnp.bfloat16)

    if (input_q is input_k) and (input_k is input_v):
        # true self-attention: one activation read, one (512,1536) matmul/tile
        Q, K, V = pallas_shared_proj(
            xq, jnp.concatenate([wq, wk, wv], axis=1),
            jnp.concatenate([bq, bk, bv]), (HDq, HDk, HDv))
    elif Sq == Sk:
        # distinct activations, same length: one fused launch, three projections
        Q, K, V = pallas_multi_proj((xq, xk, xv), (wq, wk, wv), (bq, bk, bv))
    else:
        # cross-attention: Q alone; K/V fused (shared x if identical)
        (Q,) = pallas_shared_proj(xq, wq, bq, (HDq,))
        if input_k is input_v:
            K, V = pallas_shared_proj(
                xk, jnp.concatenate([wk, wv], axis=1),
                jnp.concatenate([bk, bv]), (HDk, HDv))
        else:
            K, V = pallas_multi_proj((xk, xv), (wk, wv), (bk, bv))

    # keep (B, S, H*D) layout; heads are sliced on the lane axis inside the
    # attention kernel (no HBM-level head transposes).
    Q = Q.reshape(B, Sq, HDq)
    K = K.reshape(B, Sk, HDk)
    V = V.reshape(B, Sk, HDv)

    output, attn = pallas_attention_output(Q, K, V, wo, bo,
                                           return_attn=return_attn)
    return output, attn


# ------------------------------- reference --------------------------------- #
def reference_mha(params, input_q, input_k, input_v):
    B, Sq, _ = input_q.shape
    Sk = input_k.shape[1]
    Q = (input_q @ params["wq"] + params["bq"]).reshape(B, Sq, n_heads, d_q).transpose(0, 2, 1, 3)
    K = (input_k @ params["wk"] + params["bk"]).reshape(B, Sk, n_heads, d_k).transpose(0, 2, 1, 3)
    V = (input_v @ params["wv"] + params["bv"]).reshape(B, Sk, n_heads, d_v).transpose(0, 2, 1, 3)
    scores = jnp.einsum("bhqd,bhkd->bhqk", Q, K) / math.sqrt(d_k)
    attn = jax.nn.softmax(scores, axis=-1)
    ctx = jnp.einsum("bhqk,bhkd->bhqd", attn, V)
    ctx = ctx.transpose(0, 2, 1, 3).reshape(B, Sq, n_heads * d_v)
    out = ctx @ params["wo"] + params["bo"]
    return out, attn


# ---------------------------------- main ------------------------------------ #
if __name__ == "__main__":
    key = jax.random.PRNGKey(0)
    k_param, k_q, k_k, k_v = jax.random.split(key, 4)

    B, S = 2, 8  # small shapes; d_model fixed at 512 by the module
    params = init_params(k_param)
    input_q = jax.random.normal(k_q, (B, S, d_model), jnp.float32)
    input_k = jax.random.normal(k_k, (B, S, d_model), jnp.float32)
    input_v = jax.random.normal(k_v, (B, S, d_model), jnp.float32)

    mha = jax.jit(multi_head_attention)
    out, attn = mha(params, input_q, input_k, input_v)
    out = jax.block_until_ready(out)
    attn = jax.block_until_ready(attn)

    ref_out, ref_attn = reference_mha(params, input_q, input_k, input_v)
    assert out.shape == (B, S, d_model)
    assert attn.shape == (B, n_heads, S, S)
    # bf16 MXU inputs (f32 accumulation) -> looser tolerances than pure f32
    assert jnp.allclose(out, ref_out, atol=3e-2, rtol=3e-2), \
        float(jnp.max(jnp.abs(out - ref_out)))
    assert jnp.allclose(attn, ref_attn, atol=2e-2, rtol=2e-2), \
        float(jnp.max(jnp.abs(attn - ref_attn)))
    # returned attention weights are exactly normalized
    assert jnp.allclose(jnp.sum(attn, axis=-1), 1.0, atol=1e-5)

    print("KERNEL_OK")
</pallas_src>

<mosaic_0001>
module attributes {stable_mosaic.version = 11 : i64} {
  func.func @kernel(%arg0: i32, %arg1: memref<16x512xbf16, #tpu.memory_space<vmem>>, %arg2: memref<16x512xbf16, #tpu.memory_space<vmem>>, %arg3: memref<16x512xbf16, #tpu.memory_space<vmem>>, %arg4: memref<512x512xbf16, #tpu.memory_space<vmem>>, %arg5: memref<512x512xbf16, #tpu.memory_space<vmem>>, %arg6: memref<512x512xbf16, #tpu.memory_space<vmem>>, %arg7: memref<1x512xf32, #tpu.memory_space<vmem>>, %arg8: memref<1x512xf32, #tpu.memory_space<vmem>>, %arg9: memref<1x512xf32, #tpu.memory_space<vmem>>, %arg10: memref<16x512xbf16, #tpu.memory_space<vmem>>, %arg11: memref<16x512xbf16, #tpu.memory_space<vmem>>, %arg12: memref<16x512xbf16, #tpu.memory_space<vmem>>) attributes {dimension_semantics = [#tpu.dimension_semantics<parallel>], iteration_bounds = array<i64: 1>, scalar_prefetch = 0 : i64, scratch_operands = 0 : i64, tpu.core_type = #tpu.core_type<tc>, window_params = [{transform_indices = @transform_0, window_bounds = array<i64: 16, 512>}, {transform_indices = @transform_1, window_bounds = array<i64: 16, 512>}, {transform_indices = @transform_2, window_bounds = array<i64: 16, 512>}, {pipeline_mode = #tpu.pipeline_mode<synchronous>, transform_indices = @transform_3, window_bounds = array<i64: 512, 512>}, {pipeline_mode = #tpu.pipeline_mode<synchronous>, transform_indices = @transform_4, window_bounds = array<i64: 512, 512>}, {pipeline_mode = #tpu.pipeline_mode<synchronous>, transform_indices = @transform_5, window_bounds = array<i64: 512, 512>}, {pipeline_mode = #tpu.pipeline_mode<synchronous>, transform_indices = @transform_6, window_bounds = array<i64: 1, 512>}, {pipeline_mode = #tpu.pipeline_mode<synchronous>, transform_indices = @transform_7, window_bounds = array<i64: 1, 512>}, {pipeline_mode = #tpu.pipeline_mode<synchronous>, transform_indices = @transform_8, window_bounds = array<i64: 1, 512>}, {transform_indices = @transform_9, window_bounds = array<i64: 16, 512>}, {transform_indices = @transform_10, window_bounds = array<i64: 16, 512>}, {transform_indices = @transform_11, window_bounds = array<i64: 16, 512>}]} {
    %c0 = arith.constant 0 : index
    %c0_0 = arith.constant 0 : index
    %0 = vector.load %arg1[%c0, %c0_0] : memref<16x512xbf16, #tpu.memory_space<vmem>>, vector<16x512xbf16>
    %c0_1 = arith.constant 0 : index
    %c0_2 = arith.constant 0 : index
    %1 = vector.load %arg4[%c0_1, %c0_2] : memref<512x512xbf16, #tpu.memory_space<vmem>>, vector<512x512xbf16>
    %cst = arith.constant dense<0.000000e+00> : vector<16x512xf32>
    %2 = tpu.matmul %0, %1, %cst {dimension_numbers = #tpu.dot_dimension_numbers<[1], [0], [0], [1], [0, 0, 1, 1], [], []>} : vector<16x512xbf16>, vector<512x512xbf16>, vector<16x512xf32> -> vector<16x512xf32>
    %c0_3 = arith.constant 0 : index
    %c0_4 = arith.constant 0 : index
    %3 = vector.load %arg7[%c0_3, %c0_4] : memref<1x512xf32, #tpu.memory_space<vmem>>, vector<1x512xf32>
    %4 = vector.broadcast %3 : vector<1x512xf32> to vector<16x512xf32>
    %5 = arith.addf %2, %4 : vector<16x512xf32>
    %6 = arith.truncf %5 : vector<16x512xf32> to vector<16x512xbf16>
    %c0_5 = arith.constant 0 : index
    %c0_6 = arith.constant 0 : index
    %7 = vector.load %arg10[%c0_5, %c0_6] : memref<16x512xbf16, #tpu.memory_space<vmem>>, vector<16x512xbf16>
    tpu.vector_store %arg10[%c0_5, %c0_6], %6 {strides = array<i32>} : memref<16x512xbf16, #tpu.memory_space<vmem>>, vector<16x512xbf16>,
    %c0_7 = arith.constant 0 : index
    %c0_8 = arith.constant 0 : index
    %8 = vector.load %arg2[%c0_7, %c0_8] : memref<16x512xbf16, #tpu.memory_space<vmem>>, vector<16x512xbf16>
    %c0_9 = arith.constant 0 : index
    %c0_10 = arith.constant 0 : index
    %9 = vector.load %arg5[%c0_9, %c0_10] : memref<512x512xbf16, #tpu.memory_space<vmem>>, vector<512x512xbf16>
    %cst_11 = arith.constant dense<0.000000e+00> : vector<16x512xf32>
    %10 = tpu.matmul %8, %9, %cst_11 {dimension_numbers = #tpu.dot_dimension_numbers<[1], [0], [0], [1], [0, 0, 1, 1], [], []>} : vector<16x512xbf16>, vector<512x512xbf16>, vector<16x512xf32> -> vector<16x512xf32>
    %c0_12 = arith.constant 0 : index
    %c0_13 = arith.constant 0 : index
    %11 = vector.load %arg8[%c0_12, %c0_13] : memref<1x512xf32, #tpu.memory_space<vmem>>, vector<1x512xf32>
    %12 = vector.broadcast %11 : vector<1x512xf32> to vector<16x512xf32>
    %13 = arith.addf %10, %12 : vector<16x512xf32>
    %14 = arith.truncf %13 : vector<16x512xf32> to vector<16x512xbf16>
    %c0_14 = arith.constant 0 : index
    %c0_15 = arith.constant 0 : index
    %15 = vector.load %arg11[%c0_14, %c0_15] : memref<16x512xbf16, #tpu.memory_space<vmem>>, vector<16x512xbf16>
    tpu.vector_store %arg11[%c0_14, %c0_15], %14 {strides = array<i32>} : memref<16x512xbf16, #tpu.memory_space<vmem>>, vector<16x512xbf16>,
    %c0_16 = arith.constant 0 : index
    %c0_17 = arith.constant 0 : index
    %16 = vector.load %arg3[%c0_16, %c0_17] : memref<16x512xbf16, #tpu.memory_space<vmem>>, vector<16x512xbf16>
    %c0_18 = arith.constant 0 : index
    %c0_19 = arith.constant 0 : index
    %17 = vector.load %arg6[%c0_18, %c0_19] : memref<512x512xbf16, #tpu.memory_space<vmem>>, vector<512x512xbf16>
    %cst_20 = arith.constant dense<0.000000e+00> : vector<16x512xf32>
    %18 = tpu.matmul %16, %17, %cst_20 {dimension_numbers = #tpu.dot_dimension_numbers<[1], [0], [0], [1], [0, 0, 1, 1], [], []>} : vector<16x512xbf16>, vector<512x512xbf16>, vector<16x512xf32> -> vector<16x512xf32>
    %c0_21 = arith.constant 0 : index
    %c0_22 = arith.constant 0 : index
    %19 = vector.load %arg9[%c0_21, %c0_22] : memref<1x512xf32, #tpu.memory_space<vmem>>, vector<1x512xf32>
    %20 = vector.broadcast %19 : vector<1x512xf32> to vector<16x512xf32>
    %21 = arith.addf %18, %20 : vector<16x512xf32>
    %22 = arith.truncf %21 : vector<16x512xf32> to vector<16x512xbf16>
    %c0_23 = arith.constant 0 : index
    %c0_24 = arith.constant 0 : index
    %23 = vector.load %arg12[%c0_23, %c0_24] : memref<16x512xbf16, #tpu.memory_space<vmem>>, vector<16x512xbf16>
    tpu.vector_store %arg12[%c0_23, %c0_24], %22 {strides = array<i32>} : memref<16x512xbf16, #tpu.memory_space<vmem>>, vector<16x512xbf16>,
    return
  }
  func.func @transform_0(%arg0: i32) -> (i32, i32) {
    %c0_i32 = arith.constant 0 : i32
    %c0_i32_0 = arith.constant 0 : i32
    return %arg0, %c0_i32 : i32, i32
  }
  func.func @transform_1(%arg0: i32) -> (i32, i32) {
    %c0_i32 = arith.constant 0 : i32
    %c0_i32_0 = arith.constant 0 : i32
    return %arg0, %c0_i32 : i32, i32
  }
  func.func @transform_2(%arg0: i32) -> (i32, i32) {
    %c0_i32 = arith.constant 0 : i32
    %c0_i32_0 = arith.constant 0 : i32
    return %arg0, %c0_i32 : i32, i32
  }
  func.func @transform_3(%arg0: i32) -> (i32, i32) {
    %c0_i32 = arith.constant 0 : i32
    %c0_i32_0 = arith.constant 0 : i32
    %c0_i32_1 = arith.constant 0 : i32
    return %c0_i32, %c0_i32_0 : i32, i32
  }
  func.func @transform_4(%arg0: i32) -> (i32, i32) {
    %c0_i32 = arith.constant 0 : i32
    %c0_i32_0 = arith.constant 0 : i32
    %c0_i32_1 = arith.constant 0 : i32
    return %c0_i32, %c0_i32_0 : i32, i32
  }
  func.func @transform_5(%arg0: i32) -> (i32, i32) {
    %c0_i32 = arith.constant 0 : i32
    %c0_i32_0 = arith.constant 0 : i32
    %c0_i32_1 = arith.constant 0 : i32
    return %c0_i32, %c0_i32_0 : i32, i32
  }
  func.func @transform_6(%arg0: i32) -> (i32, i32) {
    %c0_i32 = arith.constant 0 : i32
    %c0_i32_0 = arith.constant 0 : i32
    %c0_i32_1 = arith.constant 0 : i32
    return %c0_i32, %c0_i32_0 : i32, i32
  }
  func.func @transform_7(%arg0: i32) -> (i32, i32) {
    %c0_i32 = arith.constant 0 : i32
    %c0_i32_0 = arith.constant 0 : i32
    %c0_i32_1 = arith.constant 0 : i32
    return %c0_i32, %c0_i32_0 : i32, i32
  }
  func.func @transform_8(%arg0: i32) -> (i32, i32) {
    %c0_i32 = arith.constant 0 : i32
    %c0_i32_0 = arith.constant 0 : i32
    %c0_i32_1 = arith.constant 0 : i32
    return %c0_i32, %c0_i32_0 : i32, i32
  }
  func.func @transform_9(%arg0: i32) -> (i32, i32) {
    %c0_i32 = arith.constant 0 : i32
    %c0_i32_0 = arith.constant 0 : i32
    return %arg0, %c0_i32 : i32, i32
  }
  func.func @transform_10(%arg0: i32) -> (i32, i32) {
    %c0_i32 = arith.constant 0 : i32
    %c0_i32_0 = arith.constant 0 : i32
    return %arg0, %c0_i32 : i32, i32
  }
  func.func @transform_11(%arg0: i32) -> (i32, i32) {
    %c0_i32 = arith.constant 0 : i32
    %c0_i32_0 = arith.constant 0 : i32
    return %arg0, %c0_i32 : i32, i32
  }
}

module attributes {stable_mosaic.version = 11 : i64} {
  func.func @kernel(%arg0: i32, %arg1: i32, %arg2: memref<1x8x512xbf16, #tpu.memory_space<vmem>>, %arg3: memref<1x8x512xbf16, #tpu.memory_space<vmem>>, %arg4: memref<1x8x512xbf16, #tpu.memory_space<vmem>>, %arg5: memref<512x512xbf16, #tpu.memory_space<vmem>>, %arg6: memref<1x512xf32, #tpu.memory_space<vmem>>, %arg7: memref<1x8x512xf32, #tpu.memory_space<vmem>>, %arg8: memref<1x8x8x8xf32, #tpu.memory_space<vmem>>, %arg9: memref<8x512xf32, #tpu.memory_space<vmem>>) attributes {dimension_semantics = [#tpu.dimension_semantics<parallel>, #tpu.dimension_semantics<parallel>], iteration_bounds = array<i64: 2, 1>, scalar_prefetch = 0 : i64, scratch_operands = 1 : i64, tpu.core_type = #tpu.core_type<tc>, window_params = [{transform_indices = @transform_0, window_bounds = array<i64: 1, 8, 512>}, {transform_indices = @transform_1, window_bounds = array<i64: 1, 8, 512>}, {transform_indices = @transform_2, window_bounds = array<i64: 1, 8, 512>}, {pipeline_mode = #tpu.pipeline_mode<synchronous>, transform_indices = @transform_3, window_bounds = array<i64: 512, 512>}, {pipeline_mode = #tpu.pipeline_mode<synchronous>, transform_indices = @transform_4, window_bounds = array<i64: 1, 512>}, {transform_indices = @transform_5, window_bounds = array<i64: 1, 8, 512>}, {transform_indices = @transform_6, window_bounds = array<i64: 1, 8, 8, 8>}]} {
    %c0 = arith.constant 0 : index
    %c0_0 = arith.constant 0 : index
    %c0_1 = arith.constant 0 : index
    %0 = vector.load %arg2[%c0, %c0_0, %c0_1] : memref<1x8x512xbf16, #tpu.memory_space<vmem>>, vector<1x8x512xbf16>
    %1 = vector.shape_cast %0 : vector<1x8x512xbf16> to vector<8x512xbf16>
    %c0_2 = arith.constant 0 : index
    %c0_3 = arith.constant 0 : index
    %c0_4 = arith.constant 0 : index
    %2 = vector.load %arg3[%c0_2, %c0_3, %c0_4] : memref<1x8x512xbf16, #tpu.memory_space<vmem>>, vector<1x8x512xbf16>
    %3 = vector.shape_cast %2 : vector<1x8x512xbf16> to vector<8x512xbf16>
    %c0_5 = arith.constant 0 : index
    %c0_6 = arith.constant 0 : index
    %c0_7 = arith.constant 0 : index
    %4 = vector.load %arg4[%c0_5, %c0_6, %c0_7] : memref<1x8x512xbf16, #tpu.memory_space<vmem>>, vector<1x8x512xbf16>
    %5 = vector.shape_cast %4 : vector<1x8x512xbf16> to vector<8x512xbf16>
    %6 = vector.extract_strided_slice %1 {offsets = [0, 0], sizes = [8, 64], strides = [1, 1]} : vector<8x512xbf16> to vector<8x64xbf16>
    %7 = vector.extract_strided_slice %3 {offsets = [0, 0], sizes = [8, 64], strides = [1, 1]} : vector<8x512xbf16> to vector<8x64xbf16>
    %8 = vector.extract_strided_slice %5 {offsets = [0, 0], sizes = [8, 64], strides = [1, 1]} : vector<8x512xbf16> to vector<8x64xbf16>
    %cst = arith.constant dense<0.000000e+00> : vector<8x8xf32>
    %9 = tpu.matmul %6, %7, %cst {dimension_numbers = #tpu.dot_dimension_numbers<[1], [1], [0], [0], [0, 0, 1, 0], [], []>} : vector<8x64xbf16>, vector<8x64xbf16>, vector<8x8xf32> -> vector<8x8xf32>
    %cst_8 = arith.constant dense<0xFF800000> : vector<8xf32>
    %10 = vector.multi_reduction <maximumf>, %9, %cst_8 [1] : vector<8x8xf32> to vector<8xf32>
    %11 = vector.shape_cast %10 : vector<8xf32> to vector<8x1xf32>
    %12 = vector.broadcast %11 : vector<8x1xf32> to vector<8x8xf32>
    %13 = arith.subf %9, %12 : vector<8x8xf32>
    %14 = math.exp %13 : vector<8x8xf32>
    %cst_9 = arith.constant dense<0.000000e+00> : vector<8xf32>
    %15 = vector.multi_reduction <add>, %14, %cst_9 [1] : vector<8x8xf32> to vector<8xf32>
    %16 = vector.shape_cast %15 : vector<8xf32> to vector<8x1xf32>
    %cst_10 = arith.constant 1.000000e+00 : f32
    %17 = vector.broadcast %cst_10 : f32 to vector<8x1xf32>
    %18 = arith.divf %17, %16 : vector<8x1xf32>
    %19 = vector.broadcast %18 : vector<8x1xf32> to vector<8x8xf32>
    %20 = arith.mulf %14, %19 : vector<8x8xf32>
    %c0_11 = arith.constant 0 : index
    %c0_12 = arith.constant 0 : index
    %c0_13 = arith.constant 0 : index
    %c0_14 = arith.constant 0 : index
    %21 = vector.load %arg8[%c0_11, %c0_12, %c0_13, %c0_14] : memref<1x8x8x8xf32, #tpu.memory_space<vmem>>, vector<1x1x8x8xf32>
    %22 = vector.shape_cast %21 : vector<1x1x8x8xf32> to vector<8x8xf32>
    %23 = vector.shape_cast %20 : vector<8x8xf32> to vector<1x1x8x8xf32>
    tpu.vector_store %arg8[%c0_11, %c0_12, %c0_13, %c0_14], %23 {strides = array<i32>} : memref<1x8x8x8xf32, #tpu.memory_space<vmem>>, vector<1x1x8x8xf32>,
    %24 = arith.truncf %20 : vector<8x8xf32> to vector<8x8xbf16>
    %cst_15 = arith.constant dense<0.000000e+00> : vector<8x64xf32>
    %25 = tpu.matmul %24, %8, %cst_15 {dimension_numbers = #tpu.dot_dimension_numbers<[1], [0], [0], [1], [0, 0, 1, 1], [], []>} : vector<8x8xbf16>, vector<8x64xbf16>, vector<8x64xf32> -> vector<8x64xf32>
    %c0_16 = arith.constant 0 : index
    %c0_17 = arith.constant 0 : index
    %26 = vector.load %arg9[%c0_16, %c0_17] : memref<8x512xf32, #tpu.memory_space<vmem>>, vector<8x64xf32>
    tpu.vector_store %arg9[%c0_16, %c0_17], %25 {strides = array<i32>} : memref<8x512xf32, #tpu.memory_space<vmem>>, vector<8x64xf32>,
    %27 = vector.extract_strided_slice %1 {offsets = [0, 64], sizes = [8, 64], strides = [1, 1]} : vector<8x512xbf16> to vector<8x64xbf16>
    %28 = vector.extract_strided_slice %3 {offsets = [0, 64], sizes = [8, 64], strides = [1, 1]} : vector<8x512xbf16> to vector<8x64xbf16>
    %29 = vector.extract_strided_slice %5 {offsets = [0, 64], sizes = [8, 64], strides = [1, 1]} : vector<8x512xbf16> to vector<8x64xbf16>
    %cst_18 = arith.constant dense<0.000000e+00> : vector<8x8xf32>
    %30 = tpu.matmul %27, %28, %cst_18 {dimension_numbers = #tpu.dot_dimension_numbers<[1], [1], [0], [0], [0, 0, 1, 0], [], []>} : vector<8x64xbf16>, vector<8x64xbf16>, vector<8x8xf32> -> vector<8x8xf32>
    %cst_19 = arith.constant dense<0xFF800000> : vector<8xf32>
    %31 = vector.multi_reduction <maximumf>, %30, %cst_19 [1] : vector<8x8xf32> to vector<8xf32>
    %32 = vector.shape_cast %31 : vector<8xf32> to vector<8x1xf32>
    %33 = vector.broadcast %32 : vector<8x1xf32> to vector<8x8xf32>
    %34 = arith.subf %30, %33 : vector<8x8xf32>
    %35 = math.exp %34 : vector<8x8xf32>
    %cst_20 = arith.constant dense<0.000000e+00> : vector<8xf32>
    %36 = vector.multi_reduction <add>, %35, %cst_20 [1] : vector<8x8xf32> to vector<8xf32>
    %37 = vector.shape_cast %36 : vector<8xf32> to vector<8x1xf32>
    %cst_21 = arith.constant 1.000000e+00 : f32
    %38 = vector.broadcast %cst_21 : f32 to vector<8x1xf32>
    %39 = arith.divf %38, %37 : vector<8x1xf32>
    %40 = vector.broadcast %39 : vector<8x1xf32> to vector<8x8xf32>
    %41 = arith.mulf %35, %40 : vector<8x8xf32>
    %c0_22 = arith.constant 0 : index
    %c1 = arith.constant 1 : index
    %c0_23 = arith.constant 0 : index
    %c0_24 = arith.constant 0 : index
    %42 = vector.load %arg8[%c0_22, %c1, %c0_23, %c0_24] : memref<1x8x8x8xf32, #tpu.memory_space<vmem>>, vector<1x1x8x8xf32>
    %43 = vector.shape_cast %42 : vector<1x1x8x8xf32> to vector<8x8xf32>
    %44 = vector.shape_cast %41 : vector<8x8xf32> to vector<1x1x8x8xf32>
    tpu.vector_store %arg8[%c0_22, %c1, %c0_23, %c0_24], %44 {strides = array<i32>} : memref<1x8x8x8xf32, #tpu.memory_space<vmem>>, vector<1x1x8x8xf32>,
    %45 = arith.truncf %41 : vector<8x8xf32> to vector<8x8xbf16>
    %cst_25 = arith.constant dense<0.000000e+00> : vector<8x64xf32>
    %46 = tpu.matmul %45, %29, %cst_25 {dimension_numbers = #tpu.dot_dimension_numbers<[1], [0], [0], [1], [0, 0, 1, 1], [], []>} : vector<8x8xbf16>, vector<8x64xbf16>, vector<8x64xf32> -> vector<8x64xf32>
    %c0_26 = arith.constant 0 : index
    %c64 = arith.constant 64 : index
    %47 = vector.load %arg9[%c0_26, %c64] : memref<8x512xf32, #tpu.memory_space<vmem>>, vector<8x64xf32>
    tpu.vector_store %arg9[%c0_26, %c64], %46 {strides = array<i32>} : memref<8x512xf32, #tpu.memory_space<vmem>>, vector<8x64xf32>,
    %48 = vector.extract_strided_slice %1 {offsets = [0, 128], sizes = [8, 64], strides = [1, 1]} : vector<8x512xbf16> to vector<8x64xbf16>
    %49 = vector.extract_strided_slice %3 {offsets = [0, 128], sizes = [8, 64], strides = [1, 1]} : vector<8x512xbf16> to vector<8x64xbf16>
    %50 = vector.extract_strided_slice %5 {offsets = [0, 128], sizes = [8, 64], strides = [1, 1]} : vector<8x512xbf16> to vector<8x64xbf16>
    %cst_27 = arith.constant dense<0.000000e+00> : vector<8x8xf32>
    %51 = tpu.matmul %48, %49, %cst_27 {dimension_numbers = #tpu.dot_dimension_numbers<[1], [1], [0], [0], [0, 0, 1, 0], [], []>} : vector<8x64xbf16>, vector<8x64xbf16>, vector<8x8xf32> -> vector<8x8xf32>
    %cst_28 = arith.constant dense<0xFF800000> : vector<8xf32>
    %52 = vector.multi_reduction <maximumf>, %51, %cst_28 [1] : vector<8x8xf32> to vector<8xf32>
    %53 = vector.shape_cast %52 : vector<8xf32> to vector<8x1xf32>
    %54 = vector.broadcast %53 : vector<8x1xf32> to vector<8x8xf32>
    %55 = arith.subf %51, %54 : vector<8x8xf32>
    %56 = math.exp %55 : vector<8x8xf32>
    %cst_29 = arith.constant dense<0.000000e+00> : vector<8xf32>
    %57 = vector.multi_reduction <add>, %56, %cst_29 [1] : vector<8x8xf32> to vector<8xf32>
    %58 = vector.shape_cast %57 : vector<8xf32> to vector<8x1xf32>
    %cst_30 = arith.constant 1.000000e+00 : f32
    %59 = vector.broadcast %cst_30 : f32 to vector<8x1xf32>
    %60 = arith.divf %59, %58 : vector<8x1xf32>
    %61 = vector.broadcast %60 : vector<8x1xf32> to vector<8x8xf32>
    %62 = arith.mulf %56, %61 : vector<8x8xf32>
    %c0_31 = arith.constant 0 : index
    %c2 = arith.constant 2 : index
    %c0_32 = arith.constant 0 : index
    %c0_33 = arith.constant 0 : index
    %63 = vector.load %arg8[%c0_31, %c2, %c0_32, %c0_33] : memref<1x8x8x8xf32, #tpu.memory_space<vmem>>, vector<1x1x8x8xf32>
    %64 = vector.shape_cast %63 : vector<1x1x8x8xf32> to vector<8x8xf32>
    %65 = vector.shape_cast %62 : vector<8x8xf32> to vector<1x1x8x8xf32>
    tpu.vector_store %arg8[%c0_31, %c2, %c0_32, %c0_33], %65 {strides = array<i32>} : memref<1x8x8x8xf32, #tpu.memory_space<vmem>>, vector<1x1x8x8xf32>,
    %66 = arith.truncf %62 : vector<8x8xf32> to vector<8x8xbf16>
    %cst_34 = arith.constant dense<0.000000e+00> : vector<8x64xf32>
    %67 = tpu.matmul %66, %50, %cst_34 {dimension_numbers = #tpu.dot_dimension_numbers<[1], [0], [0], [1], [0, 0, 1, 1], [], []>} : vector<8x8xbf16>, vector<8x64xbf16>, vector<8x64xf32> -> vector<8x64xf32>
    %c0_35 = arith.constant 0 : index
    %c128 = arith.constant 128 : index
    %68 = vector.load %arg9[%c0_35, %c128] : memref<8x512xf32, #tpu.memory_space<vmem>>, vector<8x64xf32>
    tpu.vector_store %arg9[%c0_35, %c128], %67 {strides = array<i32>} : memref<8x512xf32, #tpu.memory_space<vmem>>, vector<8x64xf32>,
    %69 = vector.extract_strided_slice %1 {offsets = [0, 192], sizes = [8, 64], strides = [1, 1]} : vector<8x512xbf16> to vector<8x64xbf16>
    %70 = vector.extract_strided_slice %3 {offsets = [0, 192], sizes = [8, 64], strides = [1, 1]} : vector<8x512xbf16> to vector<8x64xbf16>
    %71 = vector.extract_strided_slice %5 {offsets = [0, 192], sizes = [8, 64], strides = [1, 1]} : vector<8x512xbf16> to vector<8x64xbf16>
    %cst_36 = arith.constant dense<0.000000e+00> : vector<8x8xf32>
    %72 = tpu.matmul %69, %70, %cst_36 {dimension_numbers = #tpu.dot_dimension_numbers<[1], [1], [0], [0], [0, 0, 1, 0], [], []>} : vector<8x64xbf16>, vector<8x64xbf16>, vector<8x8xf32> -> vector<8x8xf32>
    %cst_37 = arith.constant dense<0xFF800000> : vector<8xf32>
    %73 = vector.multi_reduction <maximumf>, %72, %cst_37 [1] : vector<8x8xf32> to vector<8xf32>
    %74 = vector.shape_cast %73 : vector<8xf32> to vector<8x1xf32>
    %75 = vector.broadcast %74 : vector<8x1xf32> to vector<8x8xf32>
    %76 = arith.subf %72, %75 : vector<8x8xf32>
    %77 = math.exp %76 : vector<8x8xf32>
    %cst_38 = arith.constant dense<0.000000e+00> : vector<8xf32>
    %78 = vector.multi_reduction <add>, %77, %cst_38 [1] : vector<8x8xf32> to vector<8xf32>
    %79 = vector.shape_cast %78 : vector<8xf32> to vector<8x1xf32>
    %cst_39 = arith.constant 1.000000e+00 : f32
    %80 = vector.broadcast %cst_39 : f32 to vector<8x1xf32>
    %81 = arith.divf %80, %79 : vector<8x1xf32>
    %82 = vector.broadcast %81 : vector<8x1xf32> to vector<8x8xf32>
    %83 = arith.mulf %77, %82 : vector<8x8xf32>
    %c0_40 = arith.constant 0 : index
    %c3 = arith.constant 3 : index
    %c0_41 = arith.constant 0 : index
    %c0_42 = arith.constant 0 : index
    %84 = vector.load %arg8[%c0_40, %c3, %c0_41, %c0_42] : memref<1x8x8x8xf32, #tpu.memory_space<vmem>>, vector<1x1x8x8xf32>
    %85 = vector.shape_cast %84 : vector<1x1x8x8xf32> to vector<8x8xf32>
    %86 = vector.shape_cast %83 : vector<8x8xf32> to vector<1x1x8x8xf32>
    tpu.vector_store %arg8[%c0_40, %c3, %c0_41, %c0_42], %86 {strides = array<i32>} : memref<1x8x8x8xf32, #tpu.memory_space<vmem>>, vector<1x1x8x8xf32>,
    %87 = arith.truncf %83 : vector<8x8xf32> to vector<8x8xbf16>
    %cst_43 = arith.constant dense<0.000000e+00> : vector<8x64xf32>
    %88 = tpu.matmul %87, %71, %cst_43 {dimension_numbers = #tpu.dot_dimension_numbers<[1], [0], [0], [1], [0, 0, 1, 1], [], []>} : vector<8x8xbf16>, vector<8x64xbf16>, vector<8x64xf32> -> vector<8x64xf32>
    %c0_44 = arith.constant 0 : index
    %c192 = arith.constant 192 : index
    %89 = vector.load %arg9[%c0_44, %c192] : memref<8x512xf32, #tpu.memory_space<vmem>>, vector<8x64xf32>
    tpu.vector_store %arg9[%c0_44, %c192], %88 {strides = array<i32>} : memref<8x512xf32, #tpu.memory_space<vmem>>, vector<8x64xf32>,
    %90 = vector.extract_strided_slice %1 {offsets = [0, 256], sizes = [8, 64], strides = [1, 1]} : vector<8x512xbf16> to vector<8x64xbf16>
    %91 = vector.extract_strided_slice %3 {offsets = [0, 256], sizes = [8, 64], strides = [1, 1]} : vector<8x512xbf16> to vector<8x64xbf16>
    %92 = vector.extract_strided_slice %5 {offsets = [0, 256], sizes = [8, 64], strides = [1, 1]} : vector<8x512xbf16> to vector<8x64xbf16>
    %cst_45 = arith.constant dense<0.000000e+00> : vector<8x8xf32>
    %93 = tpu.matmul %90, %91, %cst_45 {dimension_numbers = #tpu.dot_dimension_numbers<[1], [1], [0], [0], [0, 0, 1, 0], [], []>} : vector<8x64xbf16>, vector<8x64xbf16>, vector<8x8xf32> -> vector<8x8xf32>
    %cst_46 = arith.constant dense<0xFF800000> : vector<8xf32>
    %94 = vector.multi_reduction <maximumf>, %93, %cst_46 [1] : vector<8x8xf32> to vector<8xf32>
    %95 = vector.shape_cast %94 : vector<8xf32> to vector<8x1xf32>
    %96 = vector.broadcast %95 : vector<8x1xf32> to vector<8x8xf32>
    %97 = arith.subf %93, %96 : vector<8x8xf32>
    %98 = math.exp %97 : vector<8x8xf32>
    %cst_47 = arith.constant dense<0.000000e+00> : vector<8xf32>
    %99 = vector.multi_reduction <add>, %98, %cst_47 [1] : vector<8x8xf32> to vector<8xf32>
    %100 = vector.shape_cast %99 : vector<8xf32> to vector<8x1xf32>
    %cst_48 = arith.constant 1.000000e+00 : f32
    %101 = vector.broadcast %cst_48 : f32 to vector<8x1xf32>
    %102 = arith.divf %101, %100 : vector<8x1xf32>
    %103 = vector.broadcast %102 : vector<8x1xf32> to vector<8x8xf32>
    %104 = arith.mulf %98, %103 : vector<8x8xf32>
    %c0_49 = arith.constant 0 : index
    %c4 = arith.constant 4 : index
    %c0_50 = arith.constant 0 : index
    %c0_51 = arith.constant 0 : index
    %105 = vector.load %arg8[%c0_49, %c4, %c0_50, %c0_51] : memref<1x8x8x8xf32, #tpu.memory_space<vmem>>, vector<1x1x8x8xf32>
    %106 = vector.shape_cast %105 : vector<1x1x8x8xf32> to vector<8x8xf32>
    %107 = vector.shape_cast %104 : vector<8x8xf32> to vector<1x1x8x8xf32>
    tpu.vector_store %arg8[%c0_49, %c4, %c0_50, %c0_51], %107 {strides = array<i32>} : memref<1x8x8x8xf32, #tpu.memory_space<vmem>>, vector<1x1x8x8xf32>,
    %108 = arith.truncf %104 : vector<8x8xf32> to vector<8x8xbf16>
    %cst_52 = arith.constant dense<0.000000e+00> : vector<8x64xf32>
    %109 = tpu.matmul %108, %92, %cst_52 {dimension_numbers = #tpu.dot_dimension_numbers<[1], [0], [0], [1], [0, 0, 1, 1], [], []>} : vector<8x8xbf16>, vector<8x64xbf16>, vector<8x64xf32> -> vector<8x64xf32>
    %c0_53 = arith.constant 0 : index
    %c256 = arith.constant 256 : index
    %110 = vector.load %arg9[%c0_53, %c256] : memref<8x512xf32, #tpu.memory_space<vmem>>, vector<8x64xf32>
    tpu.vector_store %arg9[%c0_53, %c256], %109 {strides = array<i32>} : memref<8x512xf32, #tpu.memory_space<vmem>>, vector<8x64xf32>,
    %111 = vector.extract_strided_slice %1 {offsets = [0, 320], sizes = [8, 64], strides = [1, 1]} : vector<8x512xbf16> to vector<8x64xbf16>
    %112 = vector.extract_strided_slice %3 {offsets = [0, 320], sizes = [8, 64], strides = [1, 1]} : vector<8x512xbf16> to vector<8x64xbf16>
    %113 = vector.extract_strided_slice %5 {offsets = [0, 320], sizes = [8, 64], strides = [1, 1]} : vector<8x512xbf16> to vector<8x64xbf16>
    %cst_54 = arith.constant dense<0.000000e+00> : vector<8x8xf32>
    %114 = tpu.matmul %111, %112, %cst_54 {dimension_numbers = #tpu.dot_dimension_numbers<[1], [1], [0], [0], [0, 0, 1, 0], [], []>} : vector<8x64xbf16>, vector<8x64xbf16>, vector<8x8xf32> -> vector<8x8xf32>
    %cst_55 = arith.constant dense<0xFF800000> : vector<8xf32>
    %115 = vector.multi_reduction <maximumf>, %114, %cst_55 [1] : vector<8x8xf32> to vector<8xf32>
    %116 = vector.shape_cast %115 : vector<8xf32> to vector<8x1xf32>
    %117 = vector.broadcast %116 : vector<8x1xf32> to vector<8x8xf32>
    %118 = arith.subf %114, %117 : vector<8x8xf32>
    %119 = math.exp %118 : vector<8x8xf32>
    %cst_56 = arith.constant dense<0.000000e+00> : vector<8xf32>
    %120 = vector.multi_reduction <add>, %119, %cst_56 [1] : vector<8x8xf32> to vector<8xf32>
    %121 = vector.shape_cast %120 : vector<8xf32> to vector<8x1xf32>
    %cst_57 = arith.constant 1.000000e+00 : f32
    %122 = vector.broadcast %cst_57 : f32 to vector<8x1xf32>
    %123 = arith.divf %122, %121 : vector<8x1xf32>
    %124 = vector.broadcast %123 : vector<8x1xf32> to vector<8x8xf32>
    %125 = arith.mulf %119, %124 : vector<8x8xf32>
    %c0_58 = arith.constant 0 : index
    %c5 = arith.constant 5 : index
    %c0_59 = arith.constant 0 : index
    %c0_60 = arith.constant 0 : index
    %126 = vector.load %arg8[%c0_58, %c5, %c0_59, %c0_60] : memref<1x8x8x8xf32, #tpu.memory_space<vmem>>, vector<1x1x8x8xf32>
    %127 = vector.shape_cast %126 : vector<1x1x8x8xf32> to vector<8x8xf32>
    %128 = vector.shape_cast %125 : vector<8x8xf32> to vector<1x1x8x8xf32>
    tpu.vector_store %arg8[%c0_58, %c5, %c0_59, %c0_60], %128 {strides = array<i32>} : memref<1x8x8x8xf32, #tpu.memory_space<vmem>>, vector<1x1x8x8xf32>,
    %129 = arith.truncf %125 : vector<8x8xf32> to vector<8x8xbf16>
    %cst_61 = arith.constant dense<0.000000e+00> : vector<8x64xf32>
    %130 = tpu.matmul %129, %113, %cst_61 {dimension_numbers = #tpu.dot_dimension_numbers<[1], [0], [0], [1], [0, 0, 1, 1], [], []>} : vector<8x8xbf16>, vector<8x64xbf16>, vector<8x64xf32> -> vector<8x64xf32>
    %c0_62 = arith.constant 0 : index
    %c320 = arith.constant 320 : index
    %131 = vector.load %arg9[%c0_62, %c320] : memref<8x512xf32, #tpu.memory_space<vmem>>, vector<8x64xf32>
    tpu.vector_store %arg9[%c0_62, %c320], %130 {strides = array<i32>} : memref<8x512xf32, #tpu.memory_space<vmem>>, vector<8x64xf32>,
    %132 = vector.extract_strided_slice %1 {offsets = [0, 384], sizes = [8, 64], strides = [1, 1]} : vector<8x512xbf16> to vector<8x64xbf16>
    %133 = vector.extract_strided_slice %3 {offsets = [0, 384], sizes = [8, 64], strides = [1, 1]} : vector<8x512xbf16> to vector<8x64xbf16>
    %134 = vector.extract_strided_slice %5 {offsets = [0, 384], sizes = [8, 64], strides = [1, 1]} : vector<8x512xbf16> to vector<8x64xbf16>
    %cst_63 = arith.constant dense<0.000000e+00> : vector<8x8xf32>
    %135 = tpu.matmul %132, %133, %cst_63 {dimension_numbers = #tpu.dot_dimension_numbers<[1], [1], [0], [0], [0, 0, 1, 0], [], []>} : vector<8x64xbf16>, vector<8x64xbf16>, vector<8x8xf32> -> vector<8x8xf32>
    %cst_64 = arith.constant dense<0xFF800000> : vector<8xf32>
    %136 = vector.multi_reduction <maximumf>, %135, %cst_64 [1] : vector<8x8xf32> to vector<8xf32>
    %137 = vector.shape_cast %136 : vector<8xf32> to vector<8x1xf32>
    %138 = vector.broadcast %137 : vector<8x1xf32> to vector<8x8xf32>
    %139 = arith.subf %135, %138 : vector<8x8xf32>
    %140 = math.exp %139 : vector<8x8xf32>
    %cst_65 = arith.constant dense<0.000000e+00> : vector<8xf32>
    %141 = vector.multi_reduction <add>, %140, %cst_65 [1] : vector<8x8xf32> to vector<8xf32>
    %142 = vector.shape_cast %141 : vector<8xf32> to vector<8x1xf32>
    %cst_66 = arith.constant 1.000000e+00 : f32
    %143 = vector.broadcast %cst_66 : f32 to vector<8x1xf32>
    %144 = arith.divf %143, %142 : vector<8x1xf32>
    %145 = vector.broadcast %144 : vector<8x1xf32> to vector<8x8xf32>
    %146 = arith.mulf %140, %145 : vector<8x8xf32>
    %c0_67 = arith.constant 0 : index
    %c6 = arith.constant 6 : index
    %c0_68 = arith.constant 0 : index
    %c0_69 = arith.constant 0 : index
    %147 = vector.load %arg8[%c0_67, %c6, %c0_68, %c0_69] : memref<1x8x8x8xf32, #tpu.memory_space<vmem>>, vector<1x1x8x8xf32>
    %148 = vector.shape_cast %147 : vector<1x1x8x8xf32> to vector<8x8xf32>
    %149 = vector.shape_cast %146 : vector<8x8xf32> to vector<1x1x8x8xf32>
    tpu.vector_store %arg8[%c0_67, %c6, %c0_68, %c0_69], %149 {strides = array<i32>} : memref<1x8x8x8xf32, #tpu.memory_space<vmem>>, vector<1x1x8x8xf32>,
    %150 = arith.truncf %146 : vector<8x8xf32> to vector<8x8xbf16>
    %cst_70 = arith.constant dense<0.000000e+00> : vector<8x64xf32>
    %151 = tpu.matmul %150, %134, %cst_70 {dimension_numbers = #tpu.dot_dimension_numbers<[1], [0], [0], [1], [0, 0, 1, 1], [], []>} : vector<8x8xbf16>, vector<8x64xbf16>, vector<8x64xf32> -> vector<8x64xf32>
    %c0_71 = arith.constant 0 : index
    %c384 = arith.constant 384 : index
    %152 = vector.load %arg9[%c0_71, %c384] : memref<8x512xf32, #tpu.memory_space<vmem>>, vector<8x64xf32>
    tpu.vector_store %arg9[%c0_71, %c384], %151 {strides = array<i32>} : memref<8x512xf32, #tpu.memory_space<vmem>>, vector<8x64xf32>,
    %153 = vector.extract_strided_slice %1 {offsets = [0, 448], sizes = [8, 64], strides = [1, 1]} : vector<8x512xbf16> to vector<8x64xbf16>
    %154 = vector.extract_strided_slice %3 {offsets = [0, 448], sizes = [8, 64], strides = [1, 1]} : vector<8x512xbf16> to vector<8x64xbf16>
    %155 = vector.extract_strided_slice %5 {offsets = [0, 448], sizes = [8, 64], strides = [1, 1]} : vector<8x512xbf16> to vector<8x64xbf16>
    %cst_72 = arith.constant dense<0.000000e+00> : vector<8x8xf32>
    %156 = tpu.matmul %153, %154, %cst_72 {dimension_numbers = #tpu.dot_dimension_numbers<[1], [1], [0], [0], [0, 0, 1, 0], [], []>} : vector<8x64xbf16>, vector<8x64xbf16>, vector<8x8xf32> -> vector<8x8xf32>
    %cst_73 = arith.constant dense<0xFF800000> : vector<8xf32>
    %157 = vector.multi_reduction <maximumf>, %156, %cst_73 [1] : vector<8x8xf32> to vector<8xf32>
    %158 = vector.shape_cast %157 : vector<8xf32> to vector<8x1xf32>
    %159 = vector.broadcast %158 : vector<8x1xf32> to vector<8x8xf32>
    %160 = arith.subf %156, %159 : vector<8x8xf32>
    %161 = math.exp %160 : vector<8x8xf32>
    %cst_74 = arith.constant dense<0.000000e+00> : vector<8xf32>
    %162 = vector.multi_reduction <add>, %161, %cst_74 [1] : vector<8x8xf32> to vector<8xf32>
    %163 = vector.shape_cast %162 : vector<8xf32> to vector<8x1xf32>
    %cst_75 = arith.constant 1.000000e+00 : f32
    %164 = vector.broadcast %cst_75 : f32 to vector<8x1xf32>
    %165 = arith.divf %164, %163 : vector<8x1xf32>
    %166 = vector.broadcast %165 : vector<8x1xf32> to vector<8x8xf32>
    %167 = arith.mulf %161, %166 : vector<8x8xf32>
    %c0_76 = arith.constant 0 : index
    %c7 = arith.constant 7 : index
    %c0_77 = arith.constant 0 : index
    %c0_78 = arith.constant 0 : index
    %168 = vector.load %arg8[%c0_76, %c7, %c0_77, %c0_78] : memref<1x8x8x8xf32, #tpu.memory_space<vmem>>, vector<1x1x8x8xf32>
    %169 = vector.shape_cast %168 : vector<1x1x8x8xf32> to vector<8x8xf32>
    %170 = vector.shape_cast %167 : vector<8x8xf32> to vector<1x1x8x8xf32>
    tpu.vector_store %arg8[%c0_76, %c7, %c0_77, %c0_78], %170 {strides = array<i32>} : memref<1x8x8x8xf32, #tpu.memory_space<vmem>>, vector<1x1x8x8xf32>,
    %171 = arith.truncf %167 : vector<8x8xf32> to vector<8x8xbf16>
    %cst_79 = arith.constant dense<0.000000e+00> : vector<8x64xf32>
    %172 = tpu.matmul %171, %155, %cst_79 {dimension_numbers = #tpu.dot_dimension_numbers<[1], [0], [0], [1], [0, 0, 1, 1], [], []>} : vector<8x8xbf16>, vector<8x64xbf16>, vector<8x64xf32> -> vector<8x64xf32>
    %c0_80 = arith.constant 0 : index
    %c448 = arith.constant 448 : index
    %173 = vector.load %arg9[%c0_80, %c448] : memref<8x512xf32, #tpu.memory_space<vmem>>, vector<8x64xf32>
    tpu.vector_store %arg9[%c0_80, %c448], %172 {strides = array<i32>} : memref<8x512xf32, #tpu.memory_space<vmem>>, vector<8x64xf32>,
    %c0_81 = arith.constant 0 : index
    %c0_82 = arith.constant 0 : index
    %174 = vector.load %arg9[%c0_81, %c0_82] : memref<8x512xf32, #tpu.memory_space<vmem>>, vector<8x512xf32>
    %175 = arith.truncf %174 : vector<8x512xf32> to vector<8x512xbf16>
    %c0_83 = arith.constant 0 : index
    %c0_84 = arith.constant 0 : index
    %176 = vector.load %arg5[%c0_83, %c0_84] : memref<512x512xbf16, #tpu.memory_space<vmem>>, vector<512x512xbf16>
    %cst_85 = arith.constant dense<0.000000e+00> : vector<8x512xf32>
    %177 = tpu.matmul %175, %176, %cst_85 {dimension_numbers = #tpu.dot_dimension_numbers<[1], [0], [0], [1], [0, 0, 1, 1], [], []>} : vector<8x512xbf16>, vector<512x512xbf16>, vector<8x512xf32> -> vector<8x512xf32>
    %c0_86 = arith.constant 0 : index
    %c0_87 = arith.constant 0 : index
    %178 = vector.load %arg6[%c0_86, %c0_87] : memref<1x512xf32, #tpu.memory_space<vmem>>, vector<1x512xf32>
    %179 = vector.broadcast %178 : vector<1x512xf32> to vector<8x512xf32>
    %180 = arith.addf %177, %179 : vector<8x512xf32>
    %c0_88 = arith.constant 0 : index
    %c0_89 = arith.constant 0 : index
    %c0_90 = arith.constant 0 : index
    %181 = vector.load %arg7[%c0_88, %c0_89, %c0_90] : memref<1x8x512xf32, #tpu.memory_space<vmem>>, vector<1x8x512xf32>
    %182 = vector.shape_cast %181 : vector<1x8x512xf32> to vector<8x512xf32>
    %183 = vector.shape_cast %180 : vector<8x512xf32> to vector<1x8x512xf32>
    tpu.vector_store %arg7[%c0_88, %c0_89, %c0_90], %183 {strides = array<i32>} : memref<1x8x512xf32, #tpu.memory_space<vmem>>, vector<1x8x512xf32>,
    return
  }
  func.func @transform_0(%arg0: i32, %arg1: i32) -> (i32, i32, i32) {
    %c0_i32 = arith.constant 0 : i32
    %c0_i32_0 = arith.constant 0 : i32
    return %arg0, %arg1, %c0_i32 : i32, i32, i32
  }
  func.func @transform_1(%arg0: i32, %arg1: i32) -> (i32, i32, i32) {
    %c0_i32 = arith.constant 0 : i32
    %c0_i32_0 = arith.constant 0 : i32
    %c0_i32_1 = arith.constant 0 : i32
    return %arg0, %c0_i32, %c0_i32_0 : i32, i32, i32
  }
  func.func @transform_2(%arg0: i32, %arg1: i32) -> (i32, i32, i32) {
    %c0_i32 = arith.constant 0 : i32
    %c0_i32_0 = arith.constant 0 : i32
    %c0_i32_1 = arith.constant 0 : i32
    return %arg0, %c0_i32, %c0_i32_0 : i32, i32, i32
  }
  func.func @transform_3(%arg0: i32, %arg1: i32) -> (i32, i32) {
    %c0_i32 = arith.constant 0 : i32
    %c0_i32_0 = arith.constant 0 : i32
    %c0_i32_1 = arith.constant 0 : i32
    return %c0_i32, %c0_i32_0 : i32, i32
  }
  func.func @transform_4(%arg0: i32, %arg1: i32) -> (i32, i32) {
    %c0_i32 = arith.constant 0 : i32
    %c0_i32_0 = arith.constant 0 : i32
    %c0_i32_1 = arith.constant 0 : i32
    return %c0_i32, %c0_i32_0 : i32, i32
  }
  func.func @transform_5(%arg0: i32, %arg1: i32) -> (i32, i32, i32) {
    %c0_i32 = arith.constant 0 : i32
    %c0_i32_0 = arith.constant 0 : i32
    return %arg0, %arg1, %c0_i32 : i32, i32, i32
  }
  func.func @transform_6(%arg0: i32, %arg1: i32) -> (i32, i32, i32, i32) {
    %c0_i32 = arith.constant 0 : i32
    %c0_i32_0 = arith.constant 0 : i32
    %c0_i32_1 = arith.constant 0 : i32
    return %arg0, %c0_i32, %arg1, %c0_i32_0 : i32, i32, i32, i32
  }
}

</mosaic_0001>

<bundles_post_ra>
// kernel: multi_head_attention.3
= control target key start
LH: loop header
LB: loop body
LE: loop exit
PB: predicated region body
PF: predicated region fallthrough
CT: control target
= control target key end

     0   :  { %12 = vsyncpa [#allocation4], 0  ;;  %s3912_s0 = inlined_call_operand.vmem [shape: bf16[2,8,512], index: 0, kind: input, shape index: {}]   ;;  %s3913_s1 = inlined_call_operand.vmem [shape: bf16[2,8,512], index: 1, kind: input, shape index: {}]   ;;  %s3914_s2 = inlined_call_operand.vmem [shape: bf16[2,8,512], index: 2, kind: input, shape index: {}]   ;;  %s3915_s3 = inlined_call_operand.vmem [shape: bf16[512,512], index: 3, kind: input, shape index: {}]   ;;  %s3916_s4 = inlined_call_operand.vmem [shape: f32[1,512], index: 4, kind: input, shape index: {}]   ;;  %s3917_s5 = inlined_call_operand.hbm [shape: f32[2,8,512], index: 5, kind: output, shape index: {0}]   ;;  %s3918_s6 = inlined_call_operand.hbm [shape: f32[2,8,8,8], index: 6, kind: output, shape index: {1}]  }
   0x1   :  { %14 = vsyncpa [#allocation4 + $0x1], 0 }
   0x2   :  { %15 = vsyncpa [#allocation6], 0 }
   0x3   :  { %17 = vsyncpa [#allocation6 + $0x1], 0  ;;  %s3181_s21 = smov 0   ;;  %s3183_s22 = smov 0  }
   0x4   :  { %s3185_s23 = smov 0   ;;  %s3187_s24 = smov 0  }
   0x5   :  { %s3189_s25 = smov 0   ;;  %s3191_s26 = smov 0  }
   0x6 LB: > { %s2417_s27 = sadd.s32 4294967295, %s3137_s26   ;;  %s2418_s28 = sadd.s32 4294967294, %s3137_s26   ;;  %s3137_s26 = sphi %s3191_s26, %s23_s26   ;;  %s3133_s25 = sphi %s3189_s25, %s3925_s25   ;;  %s3129_s24 = sphi %s3187_s24, %s3924_s24   ;;  %s3125_s23 = sphi %s3185_s23, %s3923_s23   ;;  %s3121_s22 = sphi %s3183_s22, %s3922_s22   ;;  %s3117_s21 = sphi %s3181_s21, %s3921_s21  }
   0x7   : > { %s35_s29 = sadd.s32 1, %s3133_s25  ;;  %s166_s30 = sadd.s32 1, %s3125_s23 }
   0x8   : > { %p37_p0 = scmp.ge.s32.totalorder %s35_s29, 2  ;;  %p176_p1 = scmp.ne.s32.totalorder %s3125_s23, %s3121_s22 }
   0x9   : > { %p177_p2 = scmp.eq.s32.totalorder %s2417_s27, 1  ;;  %p182_p3 = scmp.ne.s32.totalorder %s3121_s22, %s3117_s21 }
   0xa   : > { %s3927_s29 = smov (%p37_p0, %s35_s29), 0  ;;  %p183_p5 = scmp.eq.s32.totalorder %s2418_s28, 1 }
   0xb   : > { %p3221_p4 = por %p177_p2, %p176_p1  ;;  %s161_s8 = ssub.s32 %s3133_s25, %s3927_s29 }
   0xc   : > { %p2421_p6 = scmp.ge.s32.totalorder %s3137_s26, 1  ;;  %p164_p7 = scmp.eq.s32.totalorder %s161_s8, 0 }
   0xd   : > { %p3228_p8 = por %p183_p5, %p182_p3  ;;  %p263_p9 = scmp.lt.s32.totalorder %s3137_s26, 3 }
   0xe   : > { %s3234_s10 = scalar_select %p164_p7, %s3125_s23, %s166_s30  }
   0xf   : > { %p264_p10 = pnand %p2421_p6, %p263_p9 }
  0x10   : > { %p312_p11 = scmp.lt.s32.totalorder (!%p264_p10), %s3129_s24, 1  ;;  %s3141_s19 = smov (!%p264_p10), 64  }
  0x11   : > { %267 = sbr.rel (%p264_p10) target bundleno = 1739 (0x6cb), region = 40  ;;  %s3285_s30 = sand.u32 (!%p264_p10), 1, %s3121_s22  }
  0x12   : > { %s2423_s8 = sshll.u32 (!%p264_p10), %s3285_s30, 6  ;;  %s2605_s16 = sshll.u32 (!%p264_p10), %s3129_s24, 10 }
  0x13   : > { %s3832_s20 = scalar_lea.hbm (!%p264_p10), %s3918_s6, %s2605_s16  ;;  %s2247_s27 = scalar_lea.sflag (!%p264_p10), [#allocation6], %s3285_s30 }
  0x16   : > { %v3139_v0 = vmov 0.0   ;;  %vm3140_vm0 = vmmov 0   ;;  %s313_s11 = scalar_select %p312_p11, %s3129_s24, 1  ;;  %vm338_vm1 = vcmask 523264   ;;  %vm385_vm2 = vcmask 64512  }
  0x17   : > { %2638 = vmatprep.subr.bf16.mxu0 %v3139_v0  ;;  %2640 = vmatprep.mubr.msk.bf16.mxu0 %vm3140_vm0, %v3139_v0  ;;  %vm403_vm3 = vcmask 1043456   ;;  %vm574_vm4 = vcmask 1048064  }
  0x18   : > { %2644 = vmatprep.subr.bf16.mxu1 %v3139_v0  ;;  %2646 = vmatprep.mubr.msk.bf16.mxu1 %vm3140_vm0, %v3139_v0  ;;  %s3244_s12 = sshll.u32 %s313_s11, 4  ;;  %s3289_s11 = scalar_lea.vmem [#allocation5], %s2423_s8 }
  0x19   : > { %s325_s15 = scalar_lea.vmem %s3913_s1, %s3244_s12  ;;  %s320_s18 = scalar_lea.vmem %s3912_s0, %s3244_s12 }
  0x1a   : > { %v334_v1 = vld [vmem:[%s325_s15] sm:$0xff]  ;;  %v335_v11 = vld [vmem:[%s325_s15 + $0x8] sm:$0xff]  ;;  %s3275_s28 = scalar_lea.vmem %s3914_s2, %s3244_s12  ;;  %s3142_s8 = smov [#allocation5]  }
  0x1b   : > { %v343_v2 = vsel %vm338_vm1, %v334_v1, 0  ;;  %v332_v3 = vld [vmem:[%s320_s18] sm:$0xff]  ;;  %v2433_v9 = vcombine.low %v334_v1, %v334_v1  ;;  %v2451_v13 = vcombine.low %v335_v11, %v335_v11  ;;  %v333_v14 = vld [vmem:[%s320_s18 + $0x8] sm:$0xff]  ;;  %v2457_v16 = vcombine.high %v335_v11, %v335_v11 }
  0x1c   : > { %2639 = vmatpush3.bf16.xpose.msra.mxu0 %v343_v2  ;;  %v2432_v10 = vcombine.low %v332_v3, %v332_v3  ;;  %v2438_v12 = vcombine.high %v332_v3, %v332_v3  ;;  %v2450_v15 = vcombine.low %v333_v14, %v333_v14  ;;  %v3266_v17 = vcombine.high %v333_v14, %v333_v14  ;;  %v3278_v23 = vld [vmem:[%s3275_s28] sm:$0xff] }
  0x1d   : > { %2656 = vmatprep.subr.bf16.mxu0 %v3139_v0  ;;  %456 = vrot.lane.b32.xlu1 %v2433_v9, %s3141_s19  ;;  %v405_v24 = vsel %vm403_vm3, %v3278_v23, 0  ;;  %v2439_v25 = vcombine.high %v334_v1, %v334_v1  ;;  %v812_v37 = vsel %vm338_vm1, %v335_v11, 0  ;;  %v1051_v41 = vsel %vm338_vm1, %v2457_v16, 0 }
  0x1e   : > { %2645 = vmatpush3.bf16.msra.mxu1 %v405_v24 }
  0x1f   : > { %2650 = vmatprep.subr.bf16.mxu1 %v3139_v0  ;;  %v584_v33 = vsel %vm338_vm1, %v2439_v25, 0 }
  0x21   : > { %451 = vrot.lane.b32.xlu1 %v2432_v10, %s3141_s19 }
  0x23   : > { %2641 = vmatmul.mubr.msk.bf16.vlgmr.msra.gmra.mxu0 %vm338_vm1, %v332_v3 }
  0x24   : > { %2658 = vmatprep.mubr.msk.bf16.mxu0 %vm3140_vm0, %v3139_v0 }
  0x25   : > { %690 = vrot.lane.b32.xlu1 %v2438_v12, %s3141_s19 }
  0x29   : > { %924 = vrot.lane.b32.xlu1 %v2451_v13, %s3141_s19 }
  0x2d   : > { %919 = vrot.lane.b32.xlu1 %v2450_v15, %s3141_s19 }
  0x31   : > { %1159 = vrot.lane.b32.xlu1 %v2457_v16, %s3141_s19 }
  0x35   : > { %1157 = vrot.lane.b32.xlu1 %v3266_v17, %s3141_s19 }
  0x8f   : > { %v457_v28 = vpop.permute.xlu1 %456 }
  0x90   : > { %v462_v30 = vsel %vm338_vm1, %v457_v28, 0 }
  0x93   : > { %v452_v32 = vpop.permute.xlu1 %451 }
  0x97   : > { %v691_v36 = vpop.permute.xlu1 %690 }
  0x9b   : > { %v925_v38 = vpop.permute.xlu1 %924 }
  0x9c   : > { %v930_v39 = vsel %vm338_vm1, %v925_v38, 0  ;;  %v2436_v38 = vcombine.low %v3278_v23, %v3278_v23 }
  0x9f   : > { %v920_v40 = vpop.permute.xlu1 %919 }
  0xa3   : > { %v1160_v42 = vpop.permute.xlu1 %1159 }
  0xa4   : > { %v1165_v43 = vsel %vm338_vm1, %v1160_v42, 0 }
  0xa7   : > { %v1158_v44 = vpop.permute.xlu1 %1157 }
  0xe3   : > { %v379_v4 = vpop.f32.mrf.mxu0 }
  0xe4   : > { %v386_v5 = vsel %vm385_vm2, %v379_v4, -inf }
  0xe5   : > { %387 = vmax.xlane.f32.xlu0 %v386_v5  ;;  %v2642_v6 = vpop.f32.mrf.mxu0 }
  0xe7   : > { %v382_v7 = vpop.f32.mrf.mxu0 }
  0xe9   : > { %v2643_v8 = vpop.f32.mrf.mxu0 }
 0x16e   : > { %v388_v18 = vpop.xlane.xlu0 %387 }
 0x16f   : > { %v389_v19 = vsub.f32 %v379_v4, %v388_v18 }
 0x171   : > { %v390_v20 = vmul.f32 1.442695, %v389_v19 }
 0x173   : > { %2999 = vpow2.f32 %v390_v20 }
 0x180   : > { %v3000_v21 = vpop.eup %2999 }
 0x181   : > { %v392_v22 = vsel %vm385_vm2, %v3000_v21, 0.0 }
 0x182   : > { %393 = vadd.xlane.f32.xlu0 %v392_v22 }
 0x198   : > { %692 = vrot.lane.b32.xlu0 %v2439_v25, %s3141_s19 }
 0x20b   : > { %v394_v26 = vpop.xlane.xlu0 %393 }
 0x20c   : > { %3001 = vrcp.f32 %v394_v26 }
 0x20f   : > { %v693_v34 = vpop.permute.xlu0 %692 }
 0x210   : > { %v698_v35 = vsel %vm338_vm1, %v693_v34, 0 }
 0x219   : > { %v3002_v27 = vpop.eup %3001 }
 0x21a   : > { %v397_v29 = vmul.f32 %v3002_v27, %v3000_v21 }
 0x21c   : > { %v399_v31 = vpack.c.bf16 %v397_v29, %v397_v29  ;;  %398 = vst.msk [vmem:[%s3289_s11] sm:$0xff] %vm385_vm2, %v397_v29 }
 0x21e   : > { %2647 = vmatmul.mubr.msk.bf16.vlgmr.msra.gmra.mxu1 %vm385_vm2, %v399_v31 }
 0x21f   : > { %2651 = vmatpush3.bf16.xpose.msra.mxu1 %v462_v30  ;;  %2652 = vmatprep.mubr.msk.bf16.mxu1 %vm3140_vm0, %v3139_v0 }
 0x220   : > { %2662 = vmatprep.subr.bf16.mxu1 %v3139_v0 }
 0x226   : > { %2653 = vmatmul.mubr.msk.bf16.vlgmr.msra.gmra.mxu1 %vm338_vm1, %v452_v32 }
 0x227   : > { %2663 = vmatpush3.bf16.xpose.msra.mxu1 %v584_v33  ;;  %2664 = vmatprep.mubr.msk.bf16.mxu1 %vm3140_vm0, %v3139_v0 }
 0x228   : > { %2674 = vmatprep.subr.bf16.mxu1 %v3139_v0 }
 0x22e   : > { %2665 = vmatmul.mubr.msk.bf16.vlgmr.msra.gmra.mxu1 %vm338_vm1, %v2438_v12 }
 0x22f   : > { %2675 = vmatpush3.bf16.xpose.msra.mxu1 %v698_v35  ;;  %2676 = vmatprep.mubr.msk.bf16.mxu1 %vm3140_vm0, %v3139_v0 }
 0x230   : > { %2686 = vmatprep.subr.bf16.mxu1 %v3139_v0 }
 0x236   : > { %2677 = vmatmul.mubr.msk.bf16.vlgmr.msra.gmra.mxu1 %vm338_vm1, %v691_v36 }
 0x237   : > { %2687 = vmatpush3.bf16.xpose.msra.mxu1 %v812_v37  ;;  %2688 = vmatprep.mubr.msk.bf16.mxu1 %vm3140_vm0, %v3139_v0  ;;  %v2442_v37 = vcombine.high %v3278_v23, %v3278_v23 }
 0x238   : > { %2698 = vmatprep.subr.bf16.mxu1 %v3139_v0 }
 0x23e   : > { %2689 = vmatmul.mubr.msk.bf16.vlgmr.msra.gmra.mxu1 %vm338_vm1, %v333_v14 }
 0x23f   : > { %2699 = vmatpush3.bf16.xpose.msra.mxu1 %v930_v39  ;;  %2700 = vmatprep.mubr.msk.bf16.mxu1 %vm3140_vm0, %v3139_v0 }
 0x240   : > { %2710 = vmatprep.subr.bf16.mxu1 %v3139_v0 }
 0x246   : > { %2701 = vmatmul.mubr.msk.bf16.vlgmr.msra.gmra.mxu1 %vm338_vm1, %v920_v40 }
 0x247   : > { %2711 = vmatpush3.bf16.xpose.msra.mxu1 %v1051_v41  ;;  %2712 = vmatprep.mubr.msk.bf16.mxu1 %vm3140_vm0, %v3139_v0 }
 0x248   : > { %2722 = vmatprep.subr.bf16.mxu1 %v3139_v0 }
 0x24e   : > { %2713 = vmatmul.mubr.msk.bf16.vlgmr.msra.gmra.mxu1 %vm338_vm1, %v3266_v17 }
 0x24f   : > { %2723 = vmatpush3.bf16.xpose.msra.mxu1 %v1165_v43  ;;  %2724 = vmatprep.mubr.msk.bf16.mxu1 %vm3140_vm0, %v3139_v0 }
 0x256   : > { %2725 = vmatmul.mubr.msk.bf16.vlgmr.msra.gmra.mxu1 %vm338_vm1, %v1158_v44 }
 0x2de   : > { %v441_v45 = vpop.f32.mrf.mxu1 }
 0x2df   : > { %447 = vst.msk [vmem:[#allocation2] sm:$0xff] %vm338_vm1, %v441_v45 }
 0x2e0   : > { %v2648_v46 = vpop.f32.mrf.mxu1 }
 0x2e2   : > { %v444_v47 = vpop.f32.mrf.mxu1 }
 0x2e4   : > { %v2649_v48 = vpop.f32.mrf.mxu1 }
 0x2e6   : > { %v498_v49 = vpop.f32.mrf.mxu1 }
 0x2e7   : > { %v504_v50 = vsel %vm385_vm2, %v498_v49, -inf }
 0x2e8   : > { %505 = vmax.xlane.f32.xlu1 %v504_v50  ;;  %v2654_v51 = vpop.f32.mrf.mxu1 }
 0x2ea   : > { %v501_v52 = vpop.f32.mrf.mxu1 }
 0x2ec   : > { %v2655_v53 = vpop.f32.mrf.mxu1 }
 0x2ee   : > { %v620_v54 = vpop.f32.mrf.mxu1 }
 0x2ef   : > { %v626_v55 = vsel %vm385_vm2, %v620_v54, -inf }
 0x2f0   : > { %627 = vmax.xlane.f32.xlu0 %v626_v55  ;;  %v2666_v56 = vpop.f32.mrf.mxu1 }
 0x2f2   : > { %v623_v57 = vpop.f32.mrf.mxu1 }
 0x2f4   : > { %v2667_v58 = vpop.f32.mrf.mxu1 }
 0x2f5   : > { %v337_v58 = vld [vmem:[%s3275_s28 + $0x8] sm:$0xff] }
 0x2f6   : > { %v734_v59 = vpop.f32.mrf.mxu1 }
 0x2f7   : > { %v740_v60 = vsel %vm385_vm2, %v734_v59, -inf }
 0x2f8   : > { %741 = vmax.xlane.f32.xlu0 %v740_v60  ;;  %v2678_v61 = vpop.f32.mrf.mxu1  ;;  %v3366_v60 = vcombine.high %v337_v58, %v337_v58 }
 0x2fa   : > { %v737_v62 = vpop.f32.mrf.mxu1 }
 0x2fc   : > { %v2679_v63 = vpop.f32.mrf.mxu1 }
 0x2fe   : > { %v848_v1 = vpop.f32.mrf.mxu1 }
 0x2ff   : > { %v854_v2 = vsel %vm385_vm2, %v848_v1, -inf }
 0x300   : > { %855 = vmax.xlane.f32.xlu1 %v854_v2  ;;  %v2690_v3 = vpop.f32.mrf.mxu1 }
 0x302   : > { %v851_v4 = vpop.f32.mrf.mxu1 }
 0x304   : > { %v2691_v5 = vpop.f32.mrf.mxu1 }
 0x306   : > { %v966_v6 = vpop.f32.mrf.mxu1 }
 0x307   : > { %v972_v7 = vsel %vm385_vm2, %v966_v6, -inf }
 0x308   : > { %973 = vmax.xlane.f32.xlu0 %v972_v7  ;;  %v2702_v8 = vpop.f32.mrf.mxu1  ;;  %v647_v7 = vsel %vm403_vm3, %v2442_v37, 0 }
 0x30a   : > { %v969_v9 = vpop.f32.mrf.mxu1 }
 0x30c   : > { %v2703_v10 = vpop.f32.mrf.mxu1 }
 0x30e   : > { %v1087_v11 = vpop.f32.mrf.mxu1 }
 0x30f   : > { %v1093_v12 = vsel %vm385_vm2, %v1087_v11, -inf }
 0x310   : > { %1094 = vmax.xlane.f32.xlu1 %v1093_v12  ;;  %v2714_v13 = vpop.f32.mrf.mxu1 }
 0x312   : > { %v1090_v14 = vpop.f32.mrf.mxu1 }
 0x314   : > { %v2715_v15 = vpop.f32.mrf.mxu1 }
 0x315   : > { %v873_v15 = vsel %vm403_vm3, %v337_v58, 0 }
 0x316   : > { %v1201_v16 = vpop.f32.mrf.mxu1 }
 0x317   : > { %v1207_v17 = vsel %vm385_vm2, %v1201_v16, -inf }
 0x318   : > { %1208 = vmax.xlane.f32.xlu0 %v1207_v17  ;;  %v2726_v18 = vpop.f32.mrf.mxu1 }
 0x31a   : > { %v1204_v19 = vpop.f32.mrf.mxu1 }
 0x31c   : > { %v2727_v20 = vpop.f32.mrf.mxu1 }
 0x371   : > { %v506_v21 = vpop.xlane.xlu1 %505 }
 0x372   : > { %v507_v22 = vsub.f32 %v498_v49, %v506_v21 }
 0x374   : > { %v508_v24 = vmul.f32 1.442695, %v507_v22 }
 0x376   : > { %3003 = vpow2.f32 %v508_v24 }
 0x379   : > { %v628_v25 = vpop.xlane.xlu0 %627 }
 0x37a   : > { %v629_v26 = vsub.f32 %v620_v54, %v628_v25 }
 0x37c   : > { %v630_v27 = vmul.f32 1.442695, %v629_v26 }
 0x37e   : > { %3005 = vpow2.f32 %v630_v27 }
 0x381   : > { %v742_v28 = vpop.xlane.xlu0 %741 }
 0x382   : > { %v743_v29 = vsub.f32 %v734_v59, %v742_v28  ;;  %v2454_v59 = vcombine.low %v337_v58, %v337_v58  ;;  %v2842_v58 = vld [vmem:[%s3915_s3 + $0x184] ss:$16 sps:$4 sm:$0xff]  }
 0x383   : > { %v3004_v30 = vpop.eup %3003 }
 0x384   : > { %v744_v31 = vmul.f32 1.442695, %v743_v29  ;;  %v510_v32 = vsel %vm385_vm2, %v3004_v30, 0.0 }
 0x385   : > { %511 = vadd.xlane.f32.xlu1 %v510_v32 }
 0x386   : > { %3007 = vpow2.f32 %v744_v31 }
 0x389   : > { %v856_v39 = vpop.xlane.xlu1 %855 }
 0x38a   : > { %v857_v40 = vsub.f32 %v848_v1, %v856_v39  ;;  %v2809_v39 = vld [vmem:[%s3915_s3 + $0xe4] ss:$16 sps:$4 sm:$0xff]  }
 0x38b   : > { %v3006_v33 = vpop.eup %3005  ;;  %2073 = vmatprep.subr.bf16.mxu1 %v2809_v39 }
 0x38c   : > { %v632_v34 = vsel %vm385_vm2, %v3006_v33, 0.0  ;;  %v858_v42 = vmul.f32 1.442695, %v857_v40  ;;  %v2810_v40 = vld [vmem:[%s3915_s3 + $0xc0] ss:$16 sps:$4 sm:$0xff]  }
 0x38d   : > { %633 = vadd.xlane.f32.xlu0 %v632_v34 }
 0x38e   : > { %3009 = vpow2.f32 %v858_v42  ;;  %v2815_v42 = vld [vmem:[%s3915_s3 + $0xa4] ss:$16 sps:$4 sm:$0xff]  }
 0x391   : > { %v974_v41 = vpop.xlane.xlu0 %973 }
 0x392   : > { %v975_v43 = vsub.f32 %v966_v6, %v974_v41  ;;  %v2813_v41 = vld [vmem:[%s3915_s3 + $0xa0] ss:$16 sps:$4 sm:$0xff]  }
 0x393   : > { %v3338_v35 = vpop.eup %3007 }
 0x394   : > { %v746_v36 = vsel %vm385_vm2, %v3338_v35, 0.0  ;;  %v976_v47 = vmul.f32 1.442695, %v975_v43  ;;  %v2818_v43 = vld [vmem:[%s3915_s3 + $0x84] ss:$16 sps:$4 sm:$0xff]  }
 0x395   : > { %747 = vadd.xlane.f32.xlu1 %v746_v36 }
 0x396   : > { %3011 = vpow2.f32 %v976_v47  ;;  %v2824_v47 = vld [vmem:[%s3915_s3 + $0x44] ss:$16 sps:$4 sm:$0xff]  }
 0x399   : > { %v1095_v44 = vpop.xlane.xlu1 %1094 }
 0x39a   : > { %v1096_v46 = vsub.f32 %v1087_v11, %v1095_v44  ;;  %v2816_v44 = vld [vmem:[%s3915_s3 + $0x80] ss:$16 sps:$4 sm:$0xff]  }
 0x39b   : > { %v3348_v23 = vpop.eup %3009 }
 0x39c   : > { %v1097_v49 = vmul.f32 1.442695, %v1096_v46  ;;  %v860_v51 = vsel %vm385_vm2, %v3348_v23, 0.0  ;;  %v2819_v46 = vld [vmem:[%s3915_s3 + $0x60] ss:$16 sps:$4 sm:$0xff]  }
 0x39e   : > { %3013 = vpow2.f32 %v1097_v49  ;;  %v2827_v49 = vld [vmem:[%s3915_s3 + $0x24] ss:$16 sps:$4 sm:$0xff]  }
 0x3a1   : > { %v1209_v45 = vpop.xlane.xlu0 %1208 }
 0x3a2   : > { %v1210_v48 = vsub.f32 %v1201_v16, %v1209_v45  ;;  %v2821_v45 = vld [vmem:[%s3915_s3 + $0x64] ss:$16 sps:$4 sm:$0xff]  }
 0x3a3   : > { %755 = vrot.lane.b32.xlu0 %v2442_v37, %s3141_s19  ;;  %v3352_v52 = vpop.eup %3011 }
 0x3a4   : > { %v1211_v50 = vmul.f32 1.442695, %v1210_v48  ;;  %v978_v54 = vsel %vm385_vm2, %v3352_v52, 0.0  ;;  %v2822_v48 = vld [vmem:[%s3915_s3 + $0x40] ss:$16 sps:$4 sm:$0xff]  }
 0x3a6   : > { %522 = vrot.lane.b32.xlu1 %v2436_v38, %s3141_s19  ;;  %3015 = vpow2.f32 %v1211_v50  ;;  %v2807_v38 = vld [vmem:[%s3915_s3 + $0xe0] ss:$16 sps:$4 sm:$0xff]  }
 0x3a7   : > { %2074 = vmatpush1.bf16.msra.mxu1 %v2807_v38  ;;  %v2825_v50 = vld [vmem:[%s3915_s3 + $0x20] ss:$16 sps:$4 sm:$0xff]  }
 0x3a8   : > { %v2912_v38 = vld [vmem:[%s3915_s3 + $0x3c0] ss:$16 sps:$4 sm:$0xff]  }
 0x3ab   : > { %v3354_v53 = vpop.eup %3013 }
 0x3ac   : > { %v1099_v56 = vsel %vm385_vm2, %v3354_v53, 0.0 }
 0x3b3   : > { %v3358_v55 = vpop.eup %3015 }
 0x3b4   : > { %v1213_v57 = vsel %vm385_vm2, %v3358_v55, 0.0 }
 0x3c2   : > { %861 = vadd.xlane.f32.xlu0 %v860_v51  ;;  %v2828_v51 = vld [vmem:[%s3915_s3] ss:$16 sps:$4 sm:$0xff]  }
 0x3c6   : > { %979 = vadd.xlane.f32.xlu0 %v978_v54  ;;  %v2836_v54 = vld [vmem:[%s3915_s3 + $0x1c4] ss:$16 sps:$4 sm:$0xff]  }
 0x3ca   : > { %1100 = vadd.xlane.f32.xlu0 %v1099_v56  ;;  %1214 = vadd.xlane.f32.xlu1 %v1213_v57  ;;  %v2837_v56 = vld [vmem:[%s3915_s3 + $0x1a0] ss:$16 sps:$4 sm:$0xff]   ;;  %v2839_v57 = vld [vmem:[%s3915_s3 + $0x1a4] ss:$16 sps:$4 sm:$0xff]  }
 0x3e0   : > { %990 = vrot.lane.b32.xlu0 %v2454_v59, %s3141_s19  ;;  %v2840_v59 = vld [vmem:[%s3915_s3 + $0x180] ss:$16 sps:$4 sm:$0xff]  }
 0x3e4   : > { %1222 = vrot.lane.b32.xlu0 %v3366_v60, %s3141_s19 }
 0x40e   : > { %v512_v61 = vpop.xlane.xlu1 %511 }
 0x40f   : > { %3017 = vrcp.f32 %v512_v61  ;;  %v2843_v61 = vld [vmem:[%s3915_s3 + $0x160] ss:$16 sps:$4 sm:$0xff]  }
 0x416   : > { %v634_v62 = vpop.xlane.xlu0 %633 }
 0x417   : > { %3019 = vrcp.f32 %v634_v62  ;;  %v2848_v62 = vld [vmem:[%s3915_s3 + $0x144] ss:$16 sps:$4 sm:$0xff]  }
 0x41a   : > { %v756_v10 = vpop.permute.xlu0 %755 }
 0x41b   : > { %v761_v13 = vsel %vm403_vm3, %v756_v10, 0 }
 0x41c   : > { %v3018_v63 = vpop.eup %3017 }
 0x41d   : > { %v515_v1 = vmul.f32 %v3018_v63, %v3004_v30 }
 0x41e   : > { %v748_v2 = vpop.xlane.xlu1 %747 }
 0x41f   : > { %3021 = vrcp.f32 %v748_v2  ;;  %2435 = vst.msk [vmem:[%s3289_s11 + $0x8] sm:$0xff] %vm385_vm2, %v515_v1  ;;  %v518_v6 = vpack.c.bf16 %v515_v1, %v515_v1  ;;  %v2846_v1 = vld [vmem:[%s3915_s3 + $0x140] ss:$16 sps:$4 sm:$0xff]  }
 0x422   : > { %v523_v3 = vpop.permute.xlu1 %522 }
 0x423   : > { %v528_v4 = vsel %vm403_vm3, %v523_v3, 0 }
 0x424   : > { %v3020_v5 = vpop.eup %3019  ;;  %2657 = vmatpush3.bf16.msra.mxu0 %v528_v4  ;;  %v2849_v4 = vld [vmem:[%s3915_s3 + $0x120] ss:$16 sps:$4 sm:$0xff]  }
 0x425   : > { %2668 = vmatprep.subr.bf16.mxu0 %v3139_v0  ;;  %v637_v8 = vmul.f32 %v3020_v5, %v3006_v33  ;;  %v1114_v33 = vsel %vm403_vm3, %v3366_v60, 0  ;;  %v2845_v60 = vld [vmem:[%s3915_s3 + $0x164] ss:$16 sps:$4 sm:$0xff]  }
 0x426   : > { %v2851_v5 = vld [vmem:[%s3915_s3 + $0x124] ss:$16 sps:$4 sm:$0xff]  }
 0x427   : > { %2659 = vmatmul.mubr.msk.bf16.vlgmr.msra.gmra.mxu0 %vm385_vm2, %v518_v6  ;;  %2441 = vst.msk [vmem:[%s3289_s11 + $0x10] sm:$0xff] %vm385_vm2, %v637_v8  ;;  %v640_v11 = vpack.c.bf16 %v637_v8, %v637_v8  ;;  %v2854_v6 = vld [vmem:[%s3915_s3 + $0x104] ss:$16 sps:$4 sm:$0xff]  }
 0x428   : > { %2669 = vmatpush3.bf16.msra.mxu0 %v647_v7  ;;  %2670 = vmatprep.mubr.msk.bf16.mxu0 %vm3140_vm0, %v3139_v0 }
 0x429   : > { %2680 = vmatprep.subr.bf16.mxu0 %v3139_v0 }
 0x42c   : > { %v3022_v9 = vpop.eup %3021 }
 0x42d   : > { %v751_v12 = vmul.f32 %v3022_v9, %v3338_v35  ;;  %v2852_v9 = vld [vmem:[%s3915_s3 + $0x100] ss:$16 sps:$4 sm:$0xff]  }
 0x42f   : > { %2671 = vmatmul.mubr.msk.bf16.vlgmr.msra.gmra.mxu0 %vm385_vm2, %v640_v11  ;;  %2445 = vst.msk [vmem:[%s3289_s11 + $0x18] sm:$0xff] %vm385_vm2, %v751_v12  ;;  %v754_v14 = vpack.c.bf16 %v751_v12, %v751_v12  ;;  %v2857_v12 = vld [vmem:[%s3915_s3 + $0xec] ss:$16 sps:$4 sm:$0xff]  }
 0x430   : > { %2681 = vmatpush3.bf16.msra.mxu0 %v761_v13  ;;  %2682 = vmatprep.mubr.msk.bf16.mxu0 %vm3140_vm0, %v3139_v0 }
 0x431   : > { %2692 = vmatprep.subr.bf16.mxu0 %v3139_v0 }
 0x437   : > { %2683 = vmatmul.mubr.msk.bf16.vlgmr.msra.gmra.mxu0 %vm385_vm2, %v754_v14  ;;  %v2860_v14 = vld [vmem:[%s3915_s3 + $0x2e4] ss:$16 sps:$4 sm:$0xff]  }
 0x438   : > { %2693 = vmatpush3.bf16.msra.mxu0 %v873_v15  ;;  %2694 = vmatprep.mubr.msk.bf16.mxu0 %vm3140_vm0, %v3139_v0 }
 0x439   : > { %2704 = vmatprep.subr.bf16.mxu0 %v3139_v0 }
 0x44b   : > { %v862_v16 = vpop.xlane.xlu0 %861 }
 0x44c   : > { %3023 = vrcp.f32 %v862_v16  ;;  %v2858_v16 = vld [vmem:[%s3915_s3 + $0x2e0] ss:$16 sps:$4 sm:$0xff]  }
 0x44f   : > { %v980_v17 = vpop.xlane.xlu0 %979 }
 0x450   : > { %3025 = vrcp.f32 %v980_v17 }
 0x453   : > { %v1215_v18 = vpop.xlane.xlu1 %1214  ;;  %v1101_v19 = vpop.xlane.xlu0 %1100 }
 0x454   : > { %3027 = vrcp.f32 %v1215_v18  ;;  %v2866_v18 = vld [vmem:[%s3915_s3 + $0x2c4] ss:$16 sps:$4 sm:$0xff]  }
 0x455   : > { %3029 = vrcp.f32 %v1101_v19 }
 0x457   : > { %v991_v21 = vpop.permute.xlu0 %990 }
 0x458   : > { %v996_v24 = vsel %vm403_vm3, %v991_v21, 0 }
 0x459   : > { %v3024_v20 = vpop.eup %3023 }
 0x45a   : > { %v865_v22 = vmul.f32 %v3024_v20, %v3348_v23  ;;  %v2830_v23 = vld [vmem:[%s3915_s3 + $0x4] ss:$16 sps:$4 sm:$0xff]   ;;  %v2864_v20 = vld [vmem:[%s3915_s3 + $0x2c0] ss:$16 sps:$4 sm:$0xff]  }
 0x45b   : > { %v1223_v34 = vpop.permute.xlu0 %1222 }
 0x45c   : > { %v868_v25 = vpack.c.bf16 %v865_v22, %v865_v22  ;;  %2448 = vst.msk [vmem:[%s3289_s11 + $0x20] sm:$0xff] %vm385_vm2, %v865_v22  ;;  %v1228_v35 = vsel %vm403_vm3, %v1223_v34, 0  ;;  %v2872_v22 = vld [vmem:[%s3915_s3 + $0x2a4] ss:$16 sps:$4 sm:$0xff]   ;;  %v2900_v34 = vld [vmem:[%s3915_s3 + $0x200] ss:$16 sps:$4 sm:$0xff]  }
 0x45d   : > { %v3026_v26 = vpop.eup %3025 }
 0x45e   : > { %2695 = vmatmul.mubr.msk.bf16.vlgmr.msra.gmra.mxu0 %vm385_vm2, %v868_v25  ;;  %v983_v27 = vmul.f32 %v3026_v26, %v3352_v52  ;;  %v2833_v52 = vld [vmem:[%s3915_s3 + $0x1e4] ss:$16 sps:$4 sm:$0xff]   ;;  %v2876_v26 = vld [vmem:[%s3915_s3 + $0x280] ss:$16 sps:$4 sm:$0xff]  }
 0x45f   : > { %2705 = vmatpush3.bf16.msra.mxu0 %v996_v24  ;;  %2706 = vmatprep.mubr.msk.bf16.mxu0 %vm3140_vm0, %v3139_v0  ;;  %v2870_v24 = vld [vmem:[%s3915_s3 + $0x2a0] ss:$16 sps:$4 sm:$0xff]   ;;  %v2878_v25 = vld [vmem:[%s3915_s3 + $0x284] ss:$16 sps:$4 sm:$0xff]  }
 0x460   : > { %2716 = vmatprep.subr.bf16.mxu0 %v3139_v0  ;;  %2453 = vst.msk [vmem:[%s3289_s11 + $0x28] sm:$0xff] %vm385_vm2, %v983_v27  ;;  %v986_v32 = vpack.c.bf16 %v983_v27, %v983_v27  ;;  %v2884_v27 = vld [vmem:[%s3915_s3 + $0x264] ss:$16 sps:$4 sm:$0xff]  }
 0x461   : > { %v3028_v28 = vpop.eup %3027 }
 0x462   : > { %v3030_v29 = vpop.eup %3029  ;;  %v1218_v30 = vmul.f32 %v3028_v28, %v3358_v55  ;;  %v2834_v55 = vld [vmem:[%s3915_s3 + $0x1c0] ss:$16 sps:$4 sm:$0xff]  }
 0x463   : > { %v1104_v31 = vmul.f32 %v3030_v29, %v3354_v53  ;;  %v2831_v53 = vld [vmem:[%s3915_s3 + $0x1e0] ss:$16 sps:$4 sm:$0xff]   ;;  %v2890_v29 = vld [vmem:[%s3915_s3 + $0x244] ss:$16 sps:$4 sm:$0xff]  }
 0x464   : > { %2463 = vst.msk [vmem:[%s3289_s11 + $0x38] sm:$0xff] %vm385_vm2, %v1218_v30  ;;  %v1221_v37 = vpack.c.bf16 %v1218_v30, %v1218_v30  ;;  %v2882_v28 = vld [vmem:[%s3915_s3 + $0x260] ss:$16 sps:$4 sm:$0xff]  }
 0x465   : > { %2459 = vst.msk [vmem:[%s3289_s11 + $0x30] sm:$0xff] %vm385_vm2, %v1104_v31  ;;  %v1107_v36 = vpack.c.bf16 %v1104_v31, %v1104_v31  ;;  %v2888_v30 = vld [vmem:[%s3915_s3 + $0x240] ss:$16 sps:$4 sm:$0xff]   ;;  %v2896_v31 = vld [vmem:[%s3915_s3 + $0x224] ss:$16 sps:$4 sm:$0xff]  }
 0x466   : > { %2707 = vmatmul.mubr.msk.bf16.vlgmr.msra.gmra.mxu0 %vm385_vm2, %v986_v32  ;;  %v2894_v32 = vld [vmem:[%s3915_s3 + $0x220] ss:$16 sps:$4 sm:$0xff]  }
 0x467   : > { %2717 = vmatpush3.bf16.msra.mxu0 %v1114_v33  ;;  %2718 = vmatprep.mubr.msk.bf16.mxu0 %vm3140_vm0, %v3139_v0  ;;  %v2902_v33 = vld [vmem:[%s3915_s3 + $0x204] ss:$16 sps:$4 sm:$0xff]  }
 0x468   : > { %2728 = vmatprep.subr.bf16.mxu0 %v3139_v0 }
 0x46e   : > { %2719 = vmatmul.mubr.msk.bf16.vlgmr.msra.gmra.mxu0 %vm385_vm2, %v1107_v36  ;;  %v2906_v36 = vld [vmem:[%s3915_s3 + $0x3e0] ss:$16 sps:$4 sm:$0xff]  }
 0x46f   : > { %2729 = vmatpush3.bf16.msra.mxu0 %v1228_v35  ;;  %2730 = vmatprep.mubr.msk.bf16.mxu0 %vm3140_vm0, %v3139_v0  ;;  %v2812_v0 = vld [vmem:[%s3915_s3 + $0xc4] ss:$16 sps:$4 sm:$0xff]  }
 0x470   : > { %2075 = vmatprep.subr.bf16.mxu1 %v2812_v0  ;;  %2114 = vmatprep.subr.bf16.mxu0 %v2860_v14  ;;  %v2908_v35 = vld [vmem:[%s3915_s3 + $0x3e4] ss:$16 sps:$4 sm:$0xff]   ;;  %v2918_v0 = vld [vmem:[%s3915_s3 + $0x3a0] ss:$16 sps:$4 sm:$0xff]   ;;  %v2875_v14 = vld [vmem:[%s3915_s3 + $0x8c] ss:$16 sps:$4 sm:$0xff]  }
 0x471   : > { %2076 = vmatpush1.bf16.msra.mxu1 %v2810_v40  ;;  %v2920_v40 = vld [vmem:[%s3915_s3 + $0x3a4] ss:$16 sps:$4 sm:$0xff]  }
 0x472   : > { %2077 = vmatprep.subr.bf16.mxu1 %v2815_v42 }
 0x475   : > { %2078 = vmatpush1.bf16.msra.mxu1 %v2813_v41 }
 0x476   : > { %2731 = vmatmul.mubr.msk.bf16.vlgmr.msra.gmra.mxu0 %vm385_vm2, %v1221_v37  ;;  %2079 = vmatprep.subr.bf16.mxu1 %v2818_v43  ;;  %v2914_v37 = vld [vmem:[%s3915_s3 + $0x3c4] ss:$16 sps:$4 sm:$0xff]  }
 0x477   : > { %2115 = vmatpush1.bf16.msra.mxu0 %v2858_v16  ;;  %v2926_v43 = vld [vmem:[%s3915_s3 + $0x384] ss:$16 sps:$4 sm:$0xff]   ;;  %v2881_v16 = vld [vmem:[%s3915_s3 + $0x6c] ss:$16 sps:$4 sm:$0xff]  }
 0x478   : > { %2116 = vmatprep.subr.bf16.mxu0 %v2866_v18  ;;  %v2887_v18 = vld [vmem:[%s3915_s3 + $0x4c] ss:$16 sps:$4 sm:$0xff]  }
 0x479   : > { %2080 = vmatpush1.bf16.msra.mxu1 %v2816_v44  ;;  %v2924_v44 = vld [vmem:[%s3915_s3 + $0x380] ss:$16 sps:$4 sm:$0xff]  }
 0x47a   : > { %2081 = vmatprep.subr.bf16.mxu1 %v2821_v45 }
 0x47b   : > { %2117 = vmatpush1.bf16.msra.mxu0 %v2864_v20  ;;  %v2893_v20 = vld [vmem:[%s3915_s3 + $0x2c] ss:$16 sps:$4 sm:$0xff]  }
 0x47c   : > { %2118 = vmatprep.subr.bf16.mxu0 %v2872_v22  ;;  %v2899_v22 = vld [vmem:[%s3915_s3 + $0xc] ss:$16 sps:$4 sm:$0xff]  }
 0x47d   : > { %2082 = vmatpush1.bf16.msra.mxu1 %v2819_v46 }
 0x47e   : > { %2083 = vmatprep.subr.bf16.mxu1 %v2824_v47  ;;  %v2932_v47 = vld [vmem:[%s3915_s3 + $0x364] ss:$16 sps:$4 sm:$0xff]  }
 0x47f   : > { %2119 = vmatpush1.bf16.msra.mxu0 %v2870_v24  ;;  %v2897_v24 = vld [vmem:[%s3915_s3 + $0x8] ss:$16 sps:$4 sm:$0xff]  }
 0x480   : > { %2120 = vmatprep.subr.bf16.mxu0 %v2878_v25  ;;  %v2905_v25 = vld [vmem:[%s3915_s3 + $0x1ec] ss:$16 sps:$4 sm:$0xff]  }
 0x481   : > { %2084 = vmatpush1.bf16.msra.mxu1 %v2822_v48  ;;  %v2930_v48 = vld [vmem:[%s3915_s3 + $0x360] ss:$16 sps:$4 sm:$0xff]  }
 0x482   : > { %2085 = vmatprep.subr.bf16.mxu1 %v2827_v49 }
 0x483   : > { %2121 = vmatpush1.bf16.msra.mxu0 %v2876_v26  ;;  %v2903_v26 = vld [vmem:[%s3915_s3 + $0x1e8] ss:$16 sps:$4 sm:$0xff]  }
 0x484   : > { %2122 = vmatprep.subr.bf16.mxu0 %v2884_v27  ;;  %v2911_v27 = vld [vmem:[%s3915_s3 + $0x1cc] ss:$16 sps:$4 sm:$0xff]  }
 0x485   : > { %2086 = vmatpush1.bf16.msra.mxu1 %v2825_v50 }
 0x486   : > { %2087 = vmatprep.subr.bf16.mxu1 %v2830_v23  ;;  %v2938_v23 = vld [vmem:[%s3915_s3 + $0x344] ss:$16 sps:$4 sm:$0xff]  }
 0x487   : > { %2123 = vmatpush1.bf16.msra.mxu0 %v2882_v28  ;;  %v2909_v28 = vld [vmem:[%s3915_s3 + $0x1c8] ss:$16 sps:$4 sm:$0xff]  }
 0x488   : > { %2124 = vmatprep.subr.bf16.mxu0 %v2890_v29  ;;  %v2917_v29 = vld [vmem:[%s3915_s3 + $0x1ac] ss:$16 sps:$4 sm:$0xff]  }
 0x489   : > { %2088 = vmatpush1.bf16.msra.mxu1 %v2828_v51  ;;  %v2936_v51 = vld [vmem:[%s3915_s3 + $0x340] ss:$16 sps:$4 sm:$0xff]  }
 0x48a   : > { %2089 = vmatprep.subr.bf16.mxu1 %v2833_v52 }
 0x48b   : > { %2125 = vmatpush1.bf16.msra.mxu0 %v2888_v30  ;;  %v2915_v30 = vld [vmem:[%s3915_s3 + $0x1a8] ss:$16 sps:$4 sm:$0xff]  }
 0x48c   : > { %2126 = vmatprep.subr.bf16.mxu0 %v2896_v31  ;;  %v2923_v31 = vld [vmem:[%s3915_s3 + $0x18c] ss:$16 sps:$4 sm:$0xff]  }
 0x48d   : > { %2090 = vmatpush2.bf16.msra.mxu1 %v2831_v53 }
 0x48e   : > { %2091 = vmatprep.subr.bf16.mxu1 %v2836_v54  ;;  %v2944_v54 = vld [vmem:[%s3915_s3 + $0x324] ss:$16 sps:$4 sm:$0xff]  }
 0x48f   : > { %2127 = vmatpush1.bf16.msra.mxu0 %v2894_v32  ;;  %v2921_v32 = vld [vmem:[%s3915_s3 + $0x188] ss:$16 sps:$4 sm:$0xff]  }
 0x490   : > { %2128 = vmatprep.subr.bf16.mxu0 %v2902_v33  ;;  %v2929_v33 = vld [vmem:[%s3915_s3 + $0x16c] ss:$16 sps:$4 sm:$0xff]  }
 0x491   : > { %2092 = vmatpush2.bf16.msra.mxu1 %v2834_v55  ;;  %v2942_v55 = vld [vmem:[%s3915_s3 + $0x320] ss:$16 sps:$4 sm:$0xff]  }
 0x492   : > { %2093 = vmatprep.subr.bf16.mxu1 %v2839_v57 }
 0x493   : > { %2129 = vmatpush1.bf16.msra.mxu0 %v2900_v34  ;;  %v2927_v34 = vld [vmem:[%s3915_s3 + $0x168] ss:$16 sps:$4 sm:$0xff]  }
 0x494   : > { %2130 = vmatprep.subr.bf16.mxu0 %v2908_v35  ;;  %v2935_v35 = vld [vmem:[%s3915_s3 + $0x14c] ss:$16 sps:$4 sm:$0xff]  }
 0x495   : > { %2094 = vmatpush2.bf16.msra.mxu1 %v2837_v56 }
 0x496   : > { %2095 = vmatprep.subr.bf16.mxu1 %v2842_v58  ;;  %v2950_v58 = vld [vmem:[%s3915_s3 + $0x304] ss:$16 sps:$4 sm:$0xff]  }
 0x497   : > { %2131 = vmatpush2.bf16.msra.mxu0 %v2906_v36  ;;  %v2933_v36 = vld [vmem:[%s3915_s3 + $0x148] ss:$16 sps:$4 sm:$0xff]  }
 0x498   : > { %2132 = vmatprep.subr.bf16.mxu0 %v2914_v37  ;;  %v2941_v37 = vld [vmem:[%s3915_s3 + $0x12c] ss:$16 sps:$4 sm:$0xff]  }
 0x499   : > { %2096 = vmatpush2.bf16.msra.mxu1 %v2840_v59  ;;  %v2948_v59 = vld [vmem:[%s3915_s3 + $0x300] ss:$16 sps:$4 sm:$0xff]  }
 0x49a   : > { %2097 = vmatprep.subr.bf16.mxu1 %v2845_v60 }
 0x49b   : > { %2133 = vmatpush2.bf16.msra.mxu0 %v2912_v38 }
 0x49c   : > { %2134 = vmatprep.subr.bf16.mxu0 %v2920_v40  ;;  %v2947_v40 = vld [vmem:[%s3915_s3 + $0x10c] ss:$16 sps:$4 sm:$0xff]  }
 0x49d   : > { %2098 = vmatpush2.bf16.msra.mxu1 %v2843_v61 }
 0x49e   : > { %2099 = vmatprep.subr.bf16.mxu1 %v2848_v62  ;;  %v2953_v62 = vld [vmem:[%s3915_s3 + $0x2ec] ss:$16 sps:$4 sm:$0xff]  }
 0x49f   : > { %2135 = vmatpush2.bf16.msra.mxu0 %v2918_v0 }
 0x4a0   : > { %2136 = vmatprep.subr.bf16.mxu0 %v2926_v43 }
 0x4a1   : > { %2100 = vmatpush2.bf16.msra.mxu1 %v2846_v1 }
 0x4a2   : > { %2101 = vmatprep.subr.bf16.mxu1 %v2851_v5 }
 0x4a3   : > { %2137 = vmatpush2.bf16.msra.mxu0 %v2924_v44  ;;  %v2951_v44 = vld [vmem:[%s3915_s3 + $0x2e8] ss:$16 sps:$4 sm:$0xff]  }
 0x4a4   : > { %2138 = vmatprep.subr.bf16.mxu0 %v2932_v47  ;;  %v2956_v47 = vld [vmem:[%s3915_s3 + $0x2cc] ss:$16 sps:$4 sm:$0xff]  }
 0x4a5   : > { %2102 = vmatpush2.bf16.msra.mxu1 %v2849_v4 }
 0x4a6   : > { %2103 = vmatprep.subr.bf16.mxu1 %v2854_v6 }
 0x4a7   : > { %2139 = vmatpush2.bf16.msra.mxu0 %v2930_v48  ;;  %v2954_v48 = vld [vmem:[%s3915_s3 + $0x2c8] ss:$16 sps:$4 sm:$0xff]  }
 0x4a8   : > { %2140 = vmatprep.subr.bf16.mxu0 %v2938_v23  ;;  %v2962_v23 = vld [vmem:[%s3915_s3 + $0x28c] ss:$16 sps:$4 sm:$0xff]  }
 0x4a9   : > { %2104 = vmatpush2.bf16.msra.mxu1 %v2852_v9 }
 0x4aa   : > { %2155 = vmatprep.subr.bf16.mxu1 %v2857_v12  ;;  %v2869_v12 = vld [vmem:[%s3915_s3 + $0xac] ss:$16 sps:$4 sm:$0xff]  }
 0x4ab   : > { %2141 = vmatpush2.bf16.msra.mxu0 %v2936_v51  ;;  %v2960_v51 = vld [vmem:[%s3915_s3 + $0x288] ss:$16 sps:$4 sm:$0xff]  }
 0x4ac   : > { %2142 = vmatprep.subr.bf16.mxu0 %v2944_v54  ;;  %v2968_v54 = vld [vmem:[%s3915_s3 + $0x24c] ss:$16 sps:$4 sm:$0xff]  }
 0x4af   : > { %2143 = vmatpush2.bf16.msra.mxu0 %v2942_v55  ;;  %v2966_v55 = vld [vmem:[%s3915_s3 + $0x248] ss:$16 sps:$4 sm:$0xff]  }
 0x4b0   : > { %2144 = vmatprep.subr.bf16.mxu0 %v2950_v58  ;;  %v2974_v58 = vld [vmem:[%s3915_s3 + $0x20c] ss:$16 sps:$4 sm:$0xff]  }
 0x4b3   : > { %2145 = vmatpush2.bf16.msra.mxu0 %v2948_v59  ;;  %v2972_v59 = vld [vmem:[%s3915_s3 + $0x208] ss:$16 sps:$4 sm:$0xff]  }
 0x4b4   : > { %2196 = vmatprep.subr.bf16.mxu0 %v2953_v62  ;;  %v2980_v62 = vld [vmem:[%s3915_s3 + $0x3cc] ss:$16 sps:$4 sm:$0xff]  }
 0x4e7   : > { %v564_v63 = vpop.f32.mrf.mxu0 }
 0x4e8   : > { %571 = vrot.lane.b32.xlu0 %v564_v63, %s3141_s19 }
 0x4e9   : > { %v2660_v2 = vpop.f32.mrf.mxu0 }
 0x4eb   : > { %v567_v3 = vpop.f32.mrf.mxu0 }
 0x4ed   : > { %v2661_v7 = vpop.f32.mrf.mxu0 }
 0x4ef   : > { %v683_v8 = vpop.f32.mrf.mxu0 }
 0x4f0   : > { %689 = vst.msk [vmem:[#allocation2 + $0x8] sm:$0xff] %vm338_vm1, %v683_v8  ;;  %v2855_v8 = vld [vmem:[%s3915_s3 + $0xe8] ss:$16 sps:$4 sm:$0xff]  }
 0x4f1   : > { %v2672_v10 = vpop.f32.mrf.mxu0 }
 0x4f2   : > { %v2863_v10 = vld [vmem:[%s3915_s3 + $0xcc] ss:$16 sps:$4 sm:$0xff]  }
 0x4f3   : > { %v686_v11 = vpop.f32.mrf.mxu0 }
 0x4f4   : > { %v2861_v11 = vld [vmem:[%s3915_s3 + $0xc8] ss:$16 sps:$4 sm:$0xff]  }
 0x4f5   : > { %v2673_v13 = vpop.f32.mrf.mxu0 }
 0x4f6   : > { %v2867_v13 = vld [vmem:[%s3915_s3 + $0xa8] ss:$16 sps:$4 sm:$0xff]  }
 0x4f7   : > { %v797_v15 = vpop.f32.mrf.mxu0 }
 0x4f8   : > { %804 = vrot.lane.b32.xlu0 %v797_v15, %s3141_s19  ;;  %v2873_v15 = vld [vmem:[%s3915_s3 + $0x88] ss:$16 sps:$4 sm:$0xff]  }
 0x4f9   : > { %v2684_v17 = vpop.f32.mrf.mxu0 }
 0x4fa   : > { %v2879_v17 = vld [vmem:[%s3915_s3 + $0x68] ss:$16 sps:$4 sm:$0xff]  }
 0x4fb   : > { %v800_v19 = vpop.f32.mrf.mxu0 }
 0x4fc   : > { %v2885_v19 = vld [vmem:[%s3915_s3 + $0x48] ss:$16 sps:$4 sm:$0xff]  }
 0x4fd   : > { %v2685_v21 = vpop.f32.mrf.mxu0 }
 0x4fe   : > { %v2891_v21 = vld [vmem:[%s3915_s3 + $0x28] ss:$16 sps:$4 sm:$0xff]  }
 0x51e   : > { %v909_v39 = vpop.f32.mrf.mxu0 }
 0x51f   : > { %915 = vst.msk [vmem:[#allocation2 + $0x10] sm:$0xff] %vm338_vm1, %v909_v39  ;;  %v2939_v39 = vld [vmem:[%s3915_s3 + $0x128] ss:$16 sps:$4 sm:$0xff]  }
 0x520   : > { %v2696_v41 = vpop.f32.mrf.mxu0 }
 0x521   : > { %v2945_v41 = vld [vmem:[%s3915_s3 + $0x108] ss:$16 sps:$4 sm:$0xff]  }
 0x522   : > { %v912_v42 = vpop.f32.mrf.mxu0 }
 0x524   : > { %v2697_v45 = vpop.f32.mrf.mxu0 }
 0x526   : > { %v1032_v46 = vpop.f32.mrf.mxu0 }
 0x528   : > { %v2708_v49 = vpop.f32.mrf.mxu0 }
 0x529   : > { %v2959_v49 = vld [vmem:[%s3915_s3 + $0x2ac] ss:$16 sps:$4 sm:$0xff]  }
 0x52a   : > { %v1035_v50 = vpop.f32.mrf.mxu0 }
 0x52b   : > { %v2957_v50 = vld [vmem:[%s3915_s3 + $0x2a8] ss:$16 sps:$4 sm:$0xff]  }
 0x52c   : > { %v2709_v52 = vpop.f32.mrf.mxu0 }
 0x52d   : > { %v2965_v52 = vld [vmem:[%s3915_s3 + $0x26c] ss:$16 sps:$4 sm:$0xff]  }
 0x52e   : > { %v1150_v53 = vpop.f32.mrf.mxu0 }
 0x52f   : > { %1156 = vst.msk [vmem:[#allocation2 + $0x18] sm:$0xff] %vm338_vm1, %v1150_v53  ;;  %v2963_v53 = vld [vmem:[%s3915_s3 + $0x268] ss:$16 sps:$4 sm:$0xff]  }
 0x530   : > { %v2720_v56 = vpop.f32.mrf.mxu0 }
 0x531   : > { %v2971_v56 = vld [vmem:[%s3915_s3 + $0x22c] ss:$16 sps:$4 sm:$0xff]  }
 0x532   : > { %v1153_v57 = vpop.f32.mrf.mxu0 }
 0x533   : > { %v2969_v57 = vld [vmem:[%s3915_s3 + $0x228] ss:$16 sps:$4 sm:$0xff]  }
 0x534   : > { %v2721_v60 = vpop.f32.mrf.mxu0 }
 0x535   : > { %v2977_v60 = vld [vmem:[%s3915_s3 + $0x3ec] ss:$16 sps:$4 sm:$0xff]  }
 0x536   : > { %v1264_v61 = vpop.f32.mrf.mxu0 }
 0x537   : > { %1271 = vrot.lane.b32.xlu0 %v1264_v61, %s3141_s19  ;;  %v2975_v61 = vld [vmem:[%s3915_s3 + $0x3e8] ss:$16 sps:$4 sm:$0xff]  }
 0x538   : > { %v2732_v63 = vpop.f32.mrf.mxu0 }
 0x539   : > { %v2978_v63 = vld [vmem:[%s3915_s3 + $0x3c8] ss:$16 sps:$4 sm:$0xff]  }
 0x53a   : > { %v1267_v1 = vpop.f32.mrf.mxu0 }
 0x53b   : > { %1039 = vrot.lane.b32.xlu0 %v1032_v46, %s3141_s19  ;;  %v2983_v1 = vld [vmem:[%s3915_s3 + $0x3ac] ss:$16 sps:$4 sm:$0xff]   ;;  %s2277_s19 = sshll.u32 %s3289_s11, 4  ;;  %s3035_s11 = sshll.u32 %s3142_s8, 4  ;;  %s3826_s19 = int_to_ptr.vmem [resolvable:$true] %s2277_s19  ;;  %s3036_s11 = int_to_ptr.vmem [resolvable:$false] %s3035_s11 }
 0x53c   : > { %v2733_v2 = vpop.f32.mrf.mxu0  ;;  %s3031_s28 = scalar_lea.vmem %s3826_s19, 1024  ;;  %s3037_s12 = scalar_lea.vmem %s3036_s11, 2048 }
 0x53d   : > { %v2981_v2 = vld [vmem:[%s3915_s3 + $0x3a8] ss:$16 sps:$4 sm:$0xff]   ;;  %p3032_p12 = scmp.ne.s32.totalorder %s3826_s19, %s3031_s28  ;;  %p3038_p1 = scmp.lt.s32.totalorder %s3826_s19, %s3036_s11 }
 0x53e   : > { %p3039_p2 = scmp.lt.s32.totalorder %s3037_s12, %s3031_s28 }
 0x53f   : > { %p3033_p13 = pnand %p3032_p12, %p3221_p4 }
 0x540   : > { %p3040_p3 = por %p3039_p2, %p3038_p1 }
 0x541   : > { %p3034_p0 = pneg %p3033_p13 }
 0x543   : > { %p3041_p5 = pnand %p3040_p3, %p3034_p0 }
 0x55a   : > { %v572_v3 = vpop.permute.xlu0 %571 }
 0x55b   : > { %575 = vst.msk [vmem:[#allocation2] sm:$0xff] %vm574_vm4, %v572_v3  ;;  %v2986_v3 = vld [vmem:[%s3915_s3 + $0x38c] ss:$16 sps:$4 sm:$0xff]  }
 0x562   : > { %v1275_v5 = vld [vmem:[#allocation2] sm:$0xff] }
 0x563   : > { %v3632_v9 = vpack.c.bf16 %v1275_v5, %v1275_v5  ;;  %v2989_v5 = vld [vmem:[%s3915_s3 + $0x36c] ss:$16 sps:$4 sm:$0xff]  }
 0x56a   : > { %v805_v4 = vpop.permute.xlu0 %804 }
 0x56b   : > { %807 = vst.msk [vmem:[#allocation2 + $0x8] sm:$0xff] %vm574_vm4, %v805_v4  ;;  %v2984_v4 = vld [vmem:[%s3915_s3 + $0x388] ss:$16 sps:$4 sm:$0xff]  }
 0x572   : > { %v1276_v6 = vld [vmem:[#allocation2 + $0x8] sm:$0xff] }
 0x573   : > { %v1280_v7 = vpack.c.bf16 %v1276_v6, %v1276_v6  ;;  %v2987_v6 = vld [vmem:[%s3915_s3 + $0x368] ss:$16 sps:$4 sm:$0xff]  }
 0x575   : > { %2105 = vmatprep.mubr.bf16.mxu1 %v1280_v7 }
 0x576   : > { %2106 = vmatmul.mubr.bf16.vlgmr.msra.gmra.mxu1 %v3632_v9 }
 0x577   : > { %2156 = vmatpush1.bf16.msra.mxu1 %v2855_v8  ;;  %2187 = vmatprep.mubr.bf16.mxu1 %v1280_v7  ;;  %v2992_v7 = vld [vmem:[%s3915_s3 + $0x34c] ss:$16 sps:$4 sm:$0xff]   ;;  %v2990_v8 = vld [vmem:[%s3915_s3 + $0x348] ss:$16 sps:$4 sm:$0xff]  }
 0x578   : > { %2157 = vmatprep.subr.bf16.mxu1 %v2863_v10  ;;  %v2993_v10 = vld [vmem:[%s3915_s3 + $0x328] ss:$16 sps:$4 sm:$0xff]  }
 0x57b   : > { %2158 = vmatpush1.bf16.msra.mxu1 %v2861_v11  ;;  %v2998_v11 = vld [vmem:[%s3915_s3 + $0x30c] ss:$16 sps:$4 sm:$0xff]  }
 0x57c   : > { %2159 = vmatprep.subr.bf16.mxu1 %v2869_v12  ;;  %v2996_v12 = vld [vmem:[%s3915_s3 + $0x308] ss:$16 sps:$4 sm:$0xff]  }
 0x57f   : > { %2160 = vmatpush1.bf16.msra.mxu1 %v2867_v13 }
 0x580   : > { %2161 = vmatprep.subr.bf16.mxu1 %v2875_v14 }
 0x583   : > { %2162 = vmatpush1.bf16.msra.mxu1 %v2873_v15 }
 0x584   : > { %2163 = vmatprep.subr.bf16.mxu1 %v2881_v16 }
 0x587   : > { %2164 = vmatpush1.bf16.msra.mxu1 %v2879_v17 }
 0x588   : > { %2165 = vmatprep.subr.bf16.mxu1 %v2887_v18 }
 0x58b   : > { %2166 = vmatpush1.bf16.msra.mxu1 %v2885_v19 }
 0x58c   : > { %2167 = vmatprep.subr.bf16.mxu1 %v2893_v20 }
 0x58f   : > { %2168 = vmatpush1.bf16.msra.mxu1 %v2891_v21 }
 0x590   : > { %2169 = vmatprep.subr.bf16.mxu1 %v2899_v22 }
 0x593   : > { %2170 = vmatpush1.bf16.msra.mxu1 %v2897_v24 }
 0x594   : > { %2171 = vmatprep.subr.bf16.mxu1 %v2905_v25 }
 0x597   : > { %2172 = vmatpush2.bf16.msra.mxu1 %v2903_v26 }
 0x598   : > { %2173 = vmatprep.subr.bf16.mxu1 %v2911_v27 }
 0x59b   : > { %2174 = vmatpush2.bf16.msra.mxu1 %v2909_v28 }
 0x59c   : > { %2175 = vmatprep.subr.bf16.mxu1 %v2917_v29 }
 0x59f   : > { %2176 = vmatpush2.bf16.msra.mxu1 %v2915_v30 }
 0x5a0   : > { %2177 = vmatprep.subr.bf16.mxu1 %v2923_v31 }
 0x5a3   : > { %2178 = vmatpush2.bf16.msra.mxu1 %v2921_v32 }
 0x5a4   : > { %2179 = vmatprep.subr.bf16.mxu1 %v2929_v33 }
 0x5a7   : > { %2180 = vmatpush2.bf16.msra.mxu1 %v2927_v34 }
 0x5a8   : > { %2181 = vmatprep.subr.bf16.mxu1 %v2935_v35 }
 0x5a9   : > { %v1272_v38 = vpop.permute.xlu0 %1271 }
 0x5aa   : > { %1274 = vst.msk [vmem:[#allocation2 + $0x18] sm:$0xff] %vm574_vm4, %v1272_v38 }
 0x5ab   : > { %2182 = vmatpush2.bf16.msra.mxu1 %v2933_v36 }
 0x5ac   : > { %2183 = vmatprep.subr.bf16.mxu1 %v2941_v37 }
 0x5ad   : > { %v1040_v0 = vpop.permute.xlu0 %1039 }
 0x5ae   : > { %1042 = vst.msk [vmem:[#allocation2 + $0x10] sm:$0xff] %vm574_vm4, %v1040_v0 }
 0x5af   : > { %2184 = vmatpush2.bf16.msra.mxu1 %v2939_v39 }
 0x5b0   : > { %2185 = vmatprep.subr.bf16.mxu1 %v2947_v40 }
 0x5b1   : > { %v1278_v42 = vld [vmem:[#allocation2 + $0x18] sm:$0xff] }
 0x5b2   : > { %v1282_v43 = vpack.c.bf16 %v1278_v42, %v1278_v42 }
 0x5b3   : > { %2186 = vmatpush2.bf16.msra.mxu1 %v2945_v41 }
 0x5b4   : > { %2146 = vmatprep.mubr.bf16.mxu0 %v1282_v43 }
 0x5b5   : > { %v1277_v45 = vld [vmem:[#allocation2 + $0x10] sm:$0xff] }
 0x5b6   : > { %2188 = vmatmul.mubr.bf16.vlgmr.msra.gmra.mxu1 %v3632_v9  ;;  %v3731_v46 = vpack.c.bf16 %v1277_v45, %v1277_v45  ;;  %v2995_v9 = vld [vmem:[%s3915_s3 + $0x32c] ss:$16 sps:$4 sm:$0xff]  }
 0x5b8   : > { %2147 = vmatmul.mubr.bf16.vlgmr.msra.gmra.mxu0 %v3731_v46 }
 0x5b9   : > { %2197 = vmatpush1.bf16.msra.mxu0 %v2951_v44  ;;  %2228 = vmatprep.mubr.bf16.mxu0 %v1282_v43 }
 0x5ba   : > { %2198 = vmatprep.subr.bf16.mxu0 %v2956_v47 }
 0x5bd   : > { %2199 = vmatpush1.bf16.msra.mxu0 %v2954_v48 }
 0x5be   : > { %2200 = vmatprep.subr.bf16.mxu0 %v2959_v49 }
 0x5c1   : > { %2201 = vmatpush1.bf16.msra.mxu0 %v2957_v50 }
 0x5c2   : > { %2202 = vmatprep.subr.bf16.mxu0 %v2962_v23 }
 0x5c5   : > { %2203 = vmatpush1.bf16.msra.mxu0 %v2960_v51 }
 0x5c6   : > { %2204 = vmatprep.subr.bf16.mxu0 %v2965_v52 }
 0x5c9   : > { %2205 = vmatpush1.bf16.msra.mxu0 %v2963_v53 }
 0x5ca   : > { %2206 = vmatprep.subr.bf16.mxu0 %v2968_v54 }
 0x5cd   : > { %2207 = vmatpush1.bf16.msra.mxu0 %v2966_v55 }
 0x5ce   : > { %2208 = vmatprep.subr.bf16.mxu0 %v2971_v56 }
 0x5d1   : > { %2209 = vmatpush1.bf16.msra.mxu0 %v2969_v57 }
 0x5d2   : > { %2210 = vmatprep.subr.bf16.mxu0 %v2974_v58 }
 0x5d5   : > { %2211 = vmatpush1.bf16.msra.mxu0 %v2972_v59 }
 0x5d6   : > { %2212 = vmatprep.subr.bf16.mxu0 %v2977_v60 }
 0x5d9   : > { %2213 = vmatpush2.bf16.msra.mxu0 %v2975_v61 }
 0x5da   : > { %2214 = vmatprep.subr.bf16.mxu0 %v2980_v62 }
 0x5dd   : > { %2215 = vmatpush2.bf16.msra.mxu0 %v2978_v63 }
 0x5de   : > { %2216 = vmatprep.subr.bf16.mxu0 %v2983_v1 }
 0x5e1   : > { %2217 = vmatpush2.bf16.msra.mxu0 %v2981_v2 }
 0x5e2   : > { %2218 = vmatprep.subr.bf16.mxu0 %v2986_v3 }
 0x5e5   : > { %2219 = vmatpush2.bf16.msra.mxu0 %v2984_v4 }
 0x5e6   : > { %2220 = vmatprep.subr.bf16.mxu0 %v2989_v5 }
 0x5e9   : > { %2221 = vmatpush2.bf16.msra.mxu0 %v2987_v6 }
 0x5ea   : > { %2222 = vmatprep.subr.bf16.mxu0 %v2992_v7 }
 0x5ed   : > { %2223 = vmatpush2.bf16.msra.mxu0 %v2990_v8 }
 0x5ee   : > { %2224 = vmatprep.subr.bf16.mxu0 %v2995_v9 }
 0x5f1   : > { %2225 = vmatpush2.bf16.msra.mxu0 %v2993_v10 }
 0x5f2   : > { %2226 = vmatprep.subr.bf16.mxu0 %v2998_v11 }
 0x5f5   : > { %2227 = vmatpush2.bf16.msra.mxu0 %v2996_v12 }
 0x5f8   : > { %2229 = vmatmul.mubr.bf16.vlgmr.msra.gmra.mxu0 %v3731_v46 }
 0x636   : > { %v2107_v13 = vpop.f32.mrf.mxu1 }
 0x638   : > { %v2109_v14 = vpop.f32.mrf.mxu1 }
 0x63a   : > { %v2111_v15 = vpop.f32.mrf.mxu1 }
 0x63c   : > { %v2112_v16 = vpop.f32.mrf.mxu1 }
 0x63d   : > { %3044 = shalt.err (!%p3041_p5)
}
 0x63e   : > { %s3045_s13 = scalar_lea.hbm %s3832_s20, 1024  ;;  %s3049_s16 = scalar_lea.hbm %s3918_s6, 2048 }
 0x63f   : > { %p3046_p6 = scmp.ne.s32.totalorder %s3832_s20, %s3045_s13  ;;  %p3050_p10 = scmp.lt.s32.totalorder %s3832_s20, %s3918_s6 }
 0x640   : > { %p3051_p11 = scmp.lt.s32.totalorder %s3049_s16, %s3045_s13 }
 0x641   : > { %p3047_p7 = pnand %p3046_p6, %p3221_p4 }
 0x642   : > { %p3052_p12 = por %p3051_p11, %p3050_p10 }
 0x643   : > { %p3048_p9 = pneg %p3047_p7 }
 0x645   : > { %p3053_p13 = pnand %p3052_p12, %p3048_p9 }
 0x647   : > { %3056 = shalt.err (!%p3053_p13)
}
 0x648   : > { %s3143_s28 = smov 128   ;;  %s3144_s8 = smov 8   ;;  %v1413_v17 = vlaneseq  ;;  %v1411_v20 = vld [vmem:[%s3916_s4] sm:$0xf] }
 0x649   : > { %2735 = dma.vmem_to_hbm [thread:$0]  (%p3221_p4), %s3826_s19, 1024, %s3832_s20, %s2247_s27, %s3143_s28, %s3143_s28, %s3144_s8  }
 0x64a   : > { %v1414_v18 = vshrl.u32 %v1413_v17, 7  ;;  %s2422_s13 = sshll.u32 %s3285_s30, 5  ;;  %s2604_s20 = sshll.u32 %s3129_s24, 9 }
 0x64b   : > { %s304_s19 = scalar_lea.vmem [#allocation3], %s2422_s13  ;;  %s3865_s16 = scalar_lea.hbm %s3917_s5, %s2604_s20 }
 0x64c   : > { %v1415_v19 = vsub.s32 0, %v1414_v18  ;;  %v1419_v21 = vsub.s32 1, %v1414_v18  ;;  %v1423_v37 = vsub.s32 2, %v1414_v18  ;;  %v1427_v38 = vsub.s32 3, %v1414_v18  ;;  %s2263_s27 = sshll.u32 %s304_s19, 4  ;;  %s2242_s24 = scalar_lea.sflag [#allocation4], %s3285_s30  ;;  %s3867_s27 = int_to_ptr.vmem [resolvable:$true] %s2263_s27 }
 0x64d   : > { %s3057_s17 = scalar_lea.vmem %s3867_s27, 512  ;;  %s3145_s18 = smov [#allocation3]  }
 0x64e   : > { %v1416_v22 = vrot.slane %v1411_v20, %v1415_v19  ;;  %v1420_v24 = vrot.slane %v1411_v20, %v1419_v21  ;;  %v1424_v39 = vrot.slane %v1411_v20, %v1423_v37  ;;  %v1428_v40 = vrot.slane %v1411_v20, %v1427_v38  ;;  %p3058_p0 = scmp.ne.s32.totalorder %s3867_s27, %s3057_s17  ;;  %s3061_s28 = sshll.u32 %s3145_s18, 4  ;;  %s3062_s28 = int_to_ptr.vmem [resolvable:$false] %s3061_s28 }
 0x64f   : > { %s3063_s8 = scalar_lea.vmem %s3062_s28, 1024  ;;  %p3064_p3 = scmp.lt.s32.totalorder %s3867_s27, %s3062_s28 }
 0x650   : > { %v2108_v26 = vadd.f32 %v2107_v13, %v1416_v22  ;;  %v2110_v29 = vadd.f32 %v2109_v14, %v1420_v24  ;;  %p3059_p1 = pnand %p3058_p0, %p3221_p4  ;;  %p3065_p5 = scmp.lt.s32.totalorder %s3063_s8, %s3057_s17 }
 0x652   : > { %p3060_p2 = pneg %p3059_p1  ;;  %p3066_p6 = por %p3065_p5, %p3064_p3 }
 0x654   : > { %p3067_p7 = pnand %p3066_p6, %p3060_p2 }
 0x676   : > { %v2189_v25 = vpop.f32.mrf.mxu1 }
 0x677   : > { %v2190_v0 = vadd.f32 %v2189_v25, %v1424_v39 }
 0x678   : > { %v2191_v27 = vpop.f32.mrf.mxu1  ;;  %v2148_v28 = vpop.f32.mrf.mxu0 }
 0x679   : > { %v2149_v30 = vadd.f32 %v2148_v28, %v2108_v26  ;;  %v2192_v42 = vadd.f32 %v2191_v27, %v1428_v40 }
 0x67a   : > { %v2193_v31 = vpop.f32.mrf.mxu1  ;;  %v2150_v32 = vpop.f32.mrf.mxu0 }
 0x67b   : > { %2237 = vst [vmem:[%s304_s19] sm:$0xff] %v2149_v30  ;;  %v2151_v33 = vadd.f32 %v2150_v32, %v2110_v29 }
 0x67c   : > { %v2194_v34 = vpop.f32.mrf.mxu1  ;;  %v2152_v35 = vpop.f32.mrf.mxu0 }
 0x67d   : > { %2238 = vst [vmem:[%s304_s19 + $0x8] sm:$0xff] %v2151_v33 }
 0x67e   : > { %v2153_v36 = vpop.f32.mrf.mxu0 }
 0x6b8   : > { %v2230_v41 = vpop.f32.mrf.mxu0 }
 0x6b9   : > { %v2231_v43 = vadd.f32 %v2230_v41, %v2190_v0 }
 0x6ba   : > { %v2232_v44 = vpop.f32.mrf.mxu0 }
 0x6bb   : > { %2239 = vst [vmem:[%s304_s19 + $0x10] sm:$0xff] %v2231_v43  ;;  %v2233_v45 = vadd.f32 %v2232_v44, %v2192_v42 }
 0x6bc   : > { %v2234_v46 = vpop.f32.mrf.mxu0 }
 0x6bd   : > { %2240 = vst [vmem:[%s304_s19 + $0x18] sm:$0xff] %v2233_v45 }
 0x6be   : > { %v2235_v47 = vpop.f32.mrf.mxu0 }
 0x6bf   : > { %3070 = shalt.err (!%p3067_p7)
}
 0x6c0   : > { %s3071_s11 = scalar_lea.hbm %s3865_s16, 512  ;;  %s3075_s13 = scalar_lea.hbm %s3917_s5, 1024 }
 0x6c1   : > { %p3072_p9 = scmp.ne.s32.totalorder %s3865_s16, %s3071_s11  ;;  %p3076_p12 = scmp.lt.s32.totalorder %s3865_s16, %s3917_s5 }
 0x6c2   : > { %p3077_p13 = scmp.lt.s32.totalorder %s3075_s13, %s3071_s11 }
 0x6c3   : > { %p3073_p10 = pnand %p3072_p9, %p3221_p4 }
 0x6c4   : > { %p3078_p0 = por %p3077_p13, %p3076_p12 }
 0x6c5   : > { %p3074_p11 = pneg %p3073_p10 }
 0x6c7   : > { %p3079_p1 = pnand %p3078_p0, %p3074_p11 }
 0x6c9   : > { %3082 = shalt.err (!%p3079_p1)
}
 0x6ca   : > { %2734 = dma.vmem_to_hbm [thread:$0]  (%p3221_p4), %s3867_s27, 512, %s3865_s16, %s2242_s24  }
 0x6cb PF: > { %p2745_p2 = scmp.ge.s32.totalorder %s3137_s26, 2  ;;  %s2292_s14 = sand.u32 1, %s3117_s21  }
 0x6cc   : > { %s2293_s15 = scalar_lea.sflag [#allocation4], %s2292_s14 }
 0x6cd   : > { %p2739_p3 = pnand %p2745_p2, %p3228_p8 }
 0x6cf   : > { %p2740_p5 = pneg %p2739_p3 }
 0x6d1   : > { %3108 = dma.done.wait (%p2740_p5), %s2293_s15, 512  }
 0x6d2   : > { %3110 = vsyncadd (%p2740_p5), %s2293_s15, 4294966784  ;;  %s2302_s17 = scalar_lea.sflag [#allocation6], %s2292_s14 }
 0x6d3   : > { %3112 = dma.done.wait (%p2740_p5), %s2302_s17, 1024  }
 0x6d4   : > { %3114 = vsyncadd (%p2740_p5), %s2302_s17, 4294966272  ;;  %s23_s26 = sadd.s32 1, %s3137_s26   ;;  %s3921_s21 = smov %s3121_s22 }
 0x6d5   : > { %p20_p6 = scmp.ge.s32.totalorder %s23_s26, 4   ;;  %s3922_s22 = smov %s3125_s23 }
 0x6d6   : > { %s3923_s23 = smov %s3234_s10  ;;  %s3924_s24 = smov %s3133_s25 }
 0x6d7   : > { %s3925_s25 = smov %s3927_s29  ;;  %22 = sbr.rel (!%p20_p6) target bundleno = 6 (0x6), region = 105 }
 0x6dc   :  { %2307 = vsyncpa [#allocation4], 1 }
 0x6dd   :  { %2309 = vsyncpa [#allocation4 + $0x1], 1 }
 0x6de   :  { %2310 = vsyncpa [#allocation6], 1 }
 0x6df   :  { %2312 = vsyncpa [#allocation6 + $0x1], 1 }

// kernel: multi_head_attention.2
= control target key start
LH: loop header
LB: loop body
LE: loop exit
PB: predicated region body
PF: predicated region fallthrough
CT: control target
= control target key end

     0   :  { %s5468_s3 = inlined_call_operand.vmem [shape: bf16[512,512], index: 3, kind: input, shape index: {}]   ;;  %s5469_s0 = inlined_call_operand.vmem [shape: bf16[16,512], index: 0, kind: input, shape index: {}]   ;;  %s5470_s4 = inlined_call_operand.vmem [shape: bf16[512,512], index: 4, kind: input, shape index: {}]   ;;  %s5471_s1 = inlined_call_operand.vmem [shape: bf16[16,512], index: 1, kind: input, shape index: {}]   ;;  %s5472_s5 = inlined_call_operand.vmem [shape: bf16[512,512], index: 5, kind: input, shape index: {}]   ;;  %s5473_s2 = inlined_call_operand.vmem [shape: bf16[16,512], index: 2, kind: input, shape index: {}]   ;;  %s5474_s6 = inlined_call_operand.vmem [shape: f32[1,512], index: 6, kind: input, shape index: {}]   ;;  %s5475_s9 = inlined_call_operand.vmem [shape: bf16[16,512], index: 9, kind: output, shape index: {0}]   ;;  %s5476_s7 = inlined_call_operand.vmem [shape: f32[1,512], index: 7, kind: input, shape index: {}]   ;;  %s5477_s10 = inlined_call_operand.vmem [shape: bf16[16,512], index: 10, kind: output, shape index: {1}]   ;;  %s5478_s8 = inlined_call_operand.vmem [shape: f32[1,512], index: 8, kind: input, shape index: {}]   ;;  %s5479_s11 = inlined_call_operand.vmem [shape: bf16[16,512], index: 11, kind: output, shape index: {2}]  }
   0x1   :  { %v3509_v0 = vld [vmem:[%s5468_s3 + $0xe4] ss:$16 sps:$4 sm:$0xff]   ;;  %v3513_v2 = vld [vmem:[%s5468_s3 + $0xe0] ss:$16 sps:$4 sm:$0xff]   ;;  %v3610_v51 = vld [vmem:[%s5469_s0 + $0xc] ss:$16 sps:$4 sm:$0xff]  }
   0x2   :  { %v3511_v1 = vld [vmem:[%s5468_s3 + $0x2e4] ss:$16 sps:$4 sm:$0xff]   ;;  %849 = vmatprep.subr.bf16.mxu0 %v3509_v0  ;;  %v3514_v3 = vld [vmem:[%s5468_s3 + $0x2e0] ss:$16 sps:$4 sm:$0xff]   ;;  %924 = vmatprep.mubr.bf16.mxu1 %v3610_v51 }
   0x3   :  { %892 = vmatprep.subr.bf16.mxu1 %v3511_v1  ;;  %v3515_v4 = vld [vmem:[%s5468_s3 + $0xc4] ss:$16 sps:$4 sm:$0xff]   ;;  %850 = vmatpush1.bf16.msra.mxu0 %v3513_v2  ;;  %v3519_v6 = vld [vmem:[%s5468_s3 + $0xc0] ss:$16 sps:$4 sm:$0xff]   ;;  %v3613_v2 = vld [vmem:[%s5468_s3 + $0xec] ss:$16 sps:$4 sm:$0xff]  }
   0x4   :  { %893 = vmatpush1.bf16.msra.mxu1 %v3514_v3  ;;  %v3517_v5 = vld [vmem:[%s5468_s3 + $0x2c4] ss:$16 sps:$4 sm:$0xff]   ;;  %851 = vmatprep.subr.bf16.mxu0 %v3515_v4  ;;  %v3520_v7 = vld [vmem:[%s5468_s3 + $0x2c0] ss:$16 sps:$4 sm:$0xff]   ;;  %v3616_v3 = vld [vmem:[%s5468_s3 + $0x2ec] ss:$16 sps:$4 sm:$0xff]  }
   0x5   :  { %894 = vmatprep.subr.bf16.mxu1 %v3517_v5  ;;  %v3521_v8 = vld [vmem:[%s5468_s3 + $0xa4] ss:$16 sps:$4 sm:$0xff]   ;;  %v3525_v10 = vld [vmem:[%s5468_s3 + $0xa0] ss:$16 sps:$4 sm:$0xff]   ;;  %v4375_v5 = vld [vmem:[%s5469_s0 + $0x8] ss:$16 sps:$4 sm:$0xff]  }
   0x6   :  { %v3523_v9 = vld [vmem:[%s5468_s3 + $0x2a4] ss:$16 sps:$4 sm:$0xff]   ;;  %v3526_v11 = vld [vmem:[%s5468_s3 + $0x2a0] ss:$16 sps:$4 sm:$0xff]  }
   0x7   :  { %852 = vmatpush1.bf16.msra.mxu0 %v3519_v6  ;;  %v3527_v12 = vld [vmem:[%s5468_s3 + $0x84] ss:$16 sps:$4 sm:$0xff]   ;;  %v3531_v14 = vld [vmem:[%s5468_s3 + $0x80] ss:$16 sps:$4 sm:$0xff]   ;;  %v3611_v6 = vld [vmem:[%s5468_s3 + $0xe8] ss:$16 sps:$4 sm:$0xff]  }
   0x8   :  { %895 = vmatpush1.bf16.msra.mxu1 %v3520_v7  ;;  %853 = vmatprep.subr.bf16.mxu0 %v3521_v8  ;;  %v3529_v13 = vld [vmem:[%s5468_s3 + $0x284] ss:$16 sps:$4 sm:$0xff]   ;;  %v3532_v15 = vld [vmem:[%s5468_s3 + $0x280] ss:$16 sps:$4 sm:$0xff]   ;;  %v3614_v7 = vld [vmem:[%s5468_s3 + $0x2e8] ss:$16 sps:$4 sm:$0xff]  }
   0x9   :  { %896 = vmatprep.subr.bf16.mxu1 %v3523_v9  ;;  %v3533_v16 = vld [vmem:[%s5468_s3 + $0x64] ss:$16 sps:$4 sm:$0xff]   ;;  %v3537_v18 = vld [vmem:[%s5468_s3 + $0x60] ss:$16 sps:$4 sm:$0xff]   ;;  %v3619_v8 = vld [vmem:[%s5468_s3 + $0xcc] ss:$16 sps:$4 sm:$0xff]  }
   0xa   :  { %v3535_v17 = vld [vmem:[%s5468_s3 + $0x264] ss:$16 sps:$4 sm:$0xff]   ;;  %v3538_v19 = vld [vmem:[%s5468_s3 + $0x260] ss:$16 sps:$4 sm:$0xff]   ;;  %v3622_v9 = vld [vmem:[%s5468_s3 + $0x2cc] ss:$16 sps:$4 sm:$0xff]  }
   0xb   :  { %854 = vmatpush1.bf16.msra.mxu0 %v3525_v10  ;;  %v3539_v20 = vld [vmem:[%s5468_s3 + $0x44] ss:$16 sps:$4 sm:$0xff]   ;;  %v3543_v22 = vld [vmem:[%s5468_s3 + $0x40] ss:$16 sps:$4 sm:$0xff]   ;;  %v3617_v10 = vld [vmem:[%s5468_s3 + $0xc8] ss:$16 sps:$4 sm:$0xff]  }
   0xc   :  { %897 = vmatpush1.bf16.msra.mxu1 %v3526_v11  ;;  %855 = vmatprep.subr.bf16.mxu0 %v3527_v12  ;;  %v3541_v21 = vld [vmem:[%s5468_s3 + $0x244] ss:$16 sps:$4 sm:$0xff]   ;;  %v3544_v23 = vld [vmem:[%s5468_s3 + $0x240] ss:$16 sps:$4 sm:$0xff]   ;;  %v3620_v11 = vld [vmem:[%s5468_s3 + $0x2c8] ss:$16 sps:$4 sm:$0xff]  }
   0xd   :  { %898 = vmatprep.subr.bf16.mxu1 %v3529_v13  ;;  %v3545_v24 = vld [vmem:[%s5468_s3 + $0x24] ss:$16 sps:$4 sm:$0xff]   ;;  %v3549_v26 = vld [vmem:[%s5468_s3 + $0x20] ss:$16 sps:$4 sm:$0xff]   ;;  %v3625_v12 = vld [vmem:[%s5468_s3 + $0xac] ss:$16 sps:$4 sm:$0xff]  }
   0xe   :  { %v3547_v25 = vld [vmem:[%s5468_s3 + $0x224] ss:$16 sps:$4 sm:$0xff]   ;;  %v3550_v27 = vld [vmem:[%s5468_s3 + $0x220] ss:$16 sps:$4 sm:$0xff]   ;;  %v3628_v13 = vld [vmem:[%s5468_s3 + $0x2ac] ss:$16 sps:$4 sm:$0xff]  }
   0xf   :  { %856 = vmatpush1.bf16.msra.mxu0 %v3531_v14  ;;  %v3551_v28 = vld [vmem:[%s5468_s3 + $0x4] ss:$16 sps:$4 sm:$0xff]   ;;  %v3555_v30 = vld [vmem:[%s5468_s3] ss:$16 sps:$4 sm:$0xff]   ;;  %v3623_v14 = vld [vmem:[%s5468_s3 + $0xa8] ss:$16 sps:$4 sm:$0xff]  }
  0x10   :  { %899 = vmatpush1.bf16.msra.mxu1 %v3532_v15  ;;  %857 = vmatprep.subr.bf16.mxu0 %v3533_v16  ;;  %v3553_v29 = vld [vmem:[%s5468_s3 + $0x204] ss:$16 sps:$4 sm:$0xff]   ;;  %v3556_v31 = vld [vmem:[%s5468_s3 + $0x200] ss:$16 sps:$4 sm:$0xff]   ;;  %v3626_v15 = vld [vmem:[%s5468_s3 + $0x2a8] ss:$16 sps:$4 sm:$0xff]  }
  0x11   :  { %900 = vmatprep.subr.bf16.mxu1 %v3535_v17  ;;  %v3557_v32 = vld [vmem:[%s5468_s3 + $0x1e4] ss:$16 sps:$4 sm:$0xff]   ;;  %v3561_v34 = vld [vmem:[%s5468_s3 + $0x1e0] ss:$16 sps:$4 sm:$0xff]   ;;  %v3631_v16 = vld [vmem:[%s5468_s3 + $0x8c] ss:$16 sps:$4 sm:$0xff]  }
  0x12   :  { %v3559_v33 = vld [vmem:[%s5468_s3 + $0x3e4] ss:$16 sps:$4 sm:$0xff]   ;;  %v3562_v35 = vld [vmem:[%s5468_s3 + $0x3e0] ss:$16 sps:$4 sm:$0xff]   ;;  %v3634_v17 = vld [vmem:[%s5468_s3 + $0x28c] ss:$16 sps:$4 sm:$0xff]  }
  0x13   :  { %858 = vmatpush1.bf16.msra.mxu0 %v3537_v18  ;;  %v3563_v36 = vld [vmem:[%s5468_s3 + $0x1c4] ss:$16 sps:$4 sm:$0xff]   ;;  %v3567_v38 = vld [vmem:[%s5468_s3 + $0x1c0] ss:$16 sps:$4 sm:$0xff]   ;;  %v3629_v18 = vld [vmem:[%s5468_s3 + $0x88] ss:$16 sps:$4 sm:$0xff]  }
  0x14   :  { %901 = vmatpush1.bf16.msra.mxu1 %v3538_v19  ;;  %859 = vmatprep.subr.bf16.mxu0 %v3539_v20  ;;  %v3565_v37 = vld [vmem:[%s5468_s3 + $0x3c4] ss:$16 sps:$4 sm:$0xff]   ;;  %v3568_v39 = vld [vmem:[%s5468_s3 + $0x3c0] ss:$16 sps:$4 sm:$0xff]   ;;  %v3632_v19 = vld [vmem:[%s5468_s3 + $0x288] ss:$16 sps:$4 sm:$0xff]  }
  0x15   :  { %902 = vmatprep.subr.bf16.mxu1 %v3541_v21  ;;  %v3569_v40 = vld [vmem:[%s5468_s3 + $0x1a4] ss:$16 sps:$4 sm:$0xff]   ;;  %v3573_v42 = vld [vmem:[%s5468_s3 + $0x1a0] ss:$16 sps:$4 sm:$0xff]   ;;  %v3637_v20 = vld [vmem:[%s5468_s3 + $0x6c] ss:$16 sps:$4 sm:$0xff]  }
  0x16   :  { %v3571_v41 = vld [vmem:[%s5468_s3 + $0x3a4] ss:$16 sps:$4 sm:$0xff]   ;;  %v3574_v43 = vld [vmem:[%s5468_s3 + $0x3a0] ss:$16 sps:$4 sm:$0xff]   ;;  %v3640_v21 = vld [vmem:[%s5468_s3 + $0x26c] ss:$16 sps:$4 sm:$0xff]  }
  0x17   :  { %860 = vmatpush1.bf16.msra.mxu0 %v3543_v22  ;;  %v3575_v44 = vld [vmem:[%s5468_s3 + $0x184] ss:$16 sps:$4 sm:$0xff]   ;;  %v3579_v46 = vld [vmem:[%s5468_s3 + $0x180] ss:$16 sps:$4 sm:$0xff]   ;;  %v3635_v22 = vld [vmem:[%s5468_s3 + $0x68] ss:$16 sps:$4 sm:$0xff]  }
  0x18   :  { %903 = vmatpush1.bf16.msra.mxu1 %v3544_v23  ;;  %861 = vmatprep.subr.bf16.mxu0 %v3545_v24  ;;  %v3577_v45 = vld [vmem:[%s5468_s3 + $0x384] ss:$16 sps:$4 sm:$0xff]   ;;  %v3580_v47 = vld [vmem:[%s5468_s3 + $0x380] ss:$16 sps:$4 sm:$0xff]   ;;  %v3638_v23 = vld [vmem:[%s5468_s3 + $0x268] ss:$16 sps:$4 sm:$0xff]  }
  0x19   :  { %904 = vmatprep.subr.bf16.mxu1 %v3547_v25  ;;  %v3581_v48 = vld [vmem:[%s5468_s3 + $0x164] ss:$16 sps:$4 sm:$0xff]   ;;  %v3585_v52 = vld [vmem:[%s5468_s3 + $0x160] ss:$16 sps:$4 sm:$0xff]   ;;  %v3643_v24 = vld [vmem:[%s5468_s3 + $0x4c] ss:$16 sps:$4 sm:$0xff]  }
  0x1a   :  { %v3607_v49 = vld [vmem:[%s5469_s0 + $0x4] ss:$16 sps:$4 sm:$0xff]   ;;  %v3586_v53 = vld [vmem:[%s5468_s3 + $0x360] ss:$16 sps:$4 sm:$0xff]   ;;  %v3646_v25 = vld [vmem:[%s5468_s3 + $0x24c] ss:$16 sps:$4 sm:$0xff]  }
  0x1b   :  { %862 = vmatpush1.bf16.msra.mxu0 %v3549_v26  ;;  %v3583_v50 = vld [vmem:[%s5468_s3 + $0x364] ss:$16 sps:$4 sm:$0xff]   ;;  %881 = vmatprep.mubr.bf16.mxu0 %v3607_v49  ;;  %v3591_v56 = vld [vmem:[%s5468_s3 + $0x140] ss:$16 sps:$4 sm:$0xff]   ;;  %v3641_v26 = vld [vmem:[%s5468_s3 + $0x48] ss:$16 sps:$4 sm:$0xff]  }
  0x1c   :  { %905 = vmatpush1.bf16.msra.mxu1 %v3550_v27  ;;  %863 = vmatprep.subr.bf16.mxu0 %v3551_v28  ;;  %v3587_v54 = vld [vmem:[%s5468_s3 + $0x144] ss:$16 sps:$4 sm:$0xff]   ;;  %v3592_v57 = vld [vmem:[%s5468_s3 + $0x340] ss:$16 sps:$4 sm:$0xff]   ;;  %v3644_v27 = vld [vmem:[%s5468_s3 + $0x248] ss:$16 sps:$4 sm:$0xff]  }
  0x1d   :  { %906 = vmatprep.subr.bf16.mxu1 %v3553_v29  ;;  %v3589_v55 = vld [vmem:[%s5468_s3 + $0x344] ss:$16 sps:$4 sm:$0xff]   ;;  %v3597_v60 = vld [vmem:[%s5468_s3 + $0x120] ss:$16 sps:$4 sm:$0xff]   ;;  %v3649_v28 = vld [vmem:[%s5468_s3 + $0x2c] ss:$16 sps:$4 sm:$0xff]  }
  0x1e   :  { %v3593_v58 = vld [vmem:[%s5468_s3 + $0x124] ss:$16 sps:$4 sm:$0xff]   ;;  %v3598_v61 = vld [vmem:[%s5468_s3 + $0x320] ss:$16 sps:$4 sm:$0xff]   ;;  %v3652_v29 = vld [vmem:[%s5468_s3 + $0x22c] ss:$16 sps:$4 sm:$0xff]  }
  0x1f   :  { %864 = vmatpush1.bf16.msra.mxu0 %v3555_v30  ;;  %v3595_v59 = vld [vmem:[%s5468_s3 + $0x324] ss:$16 sps:$4 sm:$0xff]   ;;  %v3603_v0 = vld [vmem:[%s5468_s3 + $0x100] ss:$16 sps:$4 sm:$0xff]   ;;  %v3647_v30 = vld [vmem:[%s5468_s3 + $0x28] ss:$16 sps:$4 sm:$0xff]  }
  0x20   :  { %907 = vmatpush1.bf16.msra.mxu1 %v3556_v31  ;;  %865 = vmatprep.subr.bf16.mxu0 %v3557_v32  ;;  %v3599_v62 = vld [vmem:[%s5468_s3 + $0x104] ss:$16 sps:$4 sm:$0xff]   ;;  %v3604_v1 = vld [vmem:[%s5468_s3 + $0x300] ss:$16 sps:$4 sm:$0xff]   ;;  %v3650_v31 = vld [vmem:[%s5468_s3 + $0x228] ss:$16 sps:$4 sm:$0xff]  }
  0x21   :  { %908 = vmatprep.subr.bf16.mxu1 %v3559_v33  ;;  %v3601_v63 = vld [vmem:[%s5468_s3 + $0x304] ss:$16 sps:$4 sm:$0xff]   ;;  %v4370_v4 = vld [vmem:[%s5469_s0] ss:$16 sps:$4 sm:$0xff]   ;;  %v3655_v32 = vld [vmem:[%s5468_s3 + $0xc] ss:$16 sps:$4 sm:$0xff]  }
  0x22   :  { %v3658_v33 = vld [vmem:[%s5468_s3 + $0x20c] ss:$16 sps:$4 sm:$0xff]  }
  0x23   :  { %866 = vmatpush2.bf16.msra.mxu0 %v3561_v34  ;;  %v3653_v34 = vld [vmem:[%s5468_s3 + $0x8] ss:$16 sps:$4 sm:$0xff]  }
  0x24   :  { %909 = vmatpush2.bf16.msra.mxu1 %v3562_v35  ;;  %867 = vmatprep.subr.bf16.mxu0 %v3563_v36  ;;  %v3656_v35 = vld [vmem:[%s5468_s3 + $0x208] ss:$16 sps:$4 sm:$0xff]   ;;  %v3661_v36 = vld [vmem:[%s5468_s3 + $0x1ec] ss:$16 sps:$4 sm:$0xff]  }
  0x25   :  { %910 = vmatprep.subr.bf16.mxu1 %v3565_v37  ;;  %v3664_v37 = vld [vmem:[%s5468_s3 + $0x3ec] ss:$16 sps:$4 sm:$0xff]  }
  0x27   :  { %868 = vmatpush2.bf16.msra.mxu0 %v3567_v38  ;;  %v3659_v38 = vld [vmem:[%s5468_s3 + $0x1e8] ss:$16 sps:$4 sm:$0xff]  }
  0x28   :  { %911 = vmatpush2.bf16.msra.mxu1 %v3568_v39  ;;  %869 = vmatprep.subr.bf16.mxu0 %v3569_v40  ;;  %v3662_v39 = vld [vmem:[%s5468_s3 + $0x3e8] ss:$16 sps:$4 sm:$0xff]   ;;  %v3667_v40 = vld [vmem:[%s5468_s3 + $0x1cc] ss:$16 sps:$4 sm:$0xff]  }
  0x29   :  { %912 = vmatprep.subr.bf16.mxu1 %v3571_v41  ;;  %v3670_v41 = vld [vmem:[%s5468_s3 + $0x3cc] ss:$16 sps:$4 sm:$0xff]  }
  0x2b   :  { %870 = vmatpush2.bf16.msra.mxu0 %v3573_v42  ;;  %v3665_v42 = vld [vmem:[%s5468_s3 + $0x1c8] ss:$16 sps:$4 sm:$0xff]  }
  0x2c   :  { %913 = vmatpush2.bf16.msra.mxu1 %v3574_v43  ;;  %871 = vmatprep.subr.bf16.mxu0 %v3575_v44  ;;  %v3668_v43 = vld [vmem:[%s5468_s3 + $0x3c8] ss:$16 sps:$4 sm:$0xff]   ;;  %v3673_v44 = vld [vmem:[%s5468_s3 + $0x1ac] ss:$16 sps:$4 sm:$0xff]  }
  0x2d   :  { %914 = vmatprep.subr.bf16.mxu1 %v3577_v45  ;;  %v3676_v45 = vld [vmem:[%s5468_s3 + $0x3ac] ss:$16 sps:$4 sm:$0xff]  }
  0x2f   :  { %872 = vmatpush2.bf16.msra.mxu0 %v3579_v46  ;;  %v3671_v46 = vld [vmem:[%s5468_s3 + $0x1a8] ss:$16 sps:$4 sm:$0xff]  }
  0x30   :  { %915 = vmatpush2.bf16.msra.mxu1 %v3580_v47  ;;  %873 = vmatprep.subr.bf16.mxu0 %v3581_v48  ;;  %v3674_v47 = vld [vmem:[%s5468_s3 + $0x3a8] ss:$16 sps:$4 sm:$0xff]   ;;  %v3679_v48 = vld [vmem:[%s5468_s3 + $0x18c] ss:$16 sps:$4 sm:$0xff]  }
  0x31   :  { %916 = vmatprep.subr.bf16.mxu1 %v3583_v50  ;;  %v3677_v50 = vld [vmem:[%s5468_s3 + $0x188] ss:$16 sps:$4 sm:$0xff]  }
  0x33   :  { %874 = vmatpush2.bf16.msra.mxu0 %v3585_v52  ;;  %v3685_v52 = vld [vmem:[%s5468_s3 + $0x16c] ss:$16 sps:$4 sm:$0xff]  }
  0x34   :  { %917 = vmatpush2.bf16.msra.mxu1 %v3586_v53  ;;  %875 = vmatprep.subr.bf16.mxu0 %v3587_v54  ;;  %v3688_v53 = vld [vmem:[%s5468_s3 + $0x36c] ss:$16 sps:$4 sm:$0xff]   ;;  %v3683_v54 = vld [vmem:[%s5468_s3 + $0x168] ss:$16 sps:$4 sm:$0xff]  }
  0x35   :  { %918 = vmatprep.subr.bf16.mxu1 %v3589_v55  ;;  %v3686_v55 = vld [vmem:[%s5468_s3 + $0x368] ss:$16 sps:$4 sm:$0xff]  }
  0x37   :  { %876 = vmatpush2.bf16.msra.mxu0 %v3591_v56  ;;  %v3691_v56 = vld [vmem:[%s5468_s3 + $0x14c] ss:$16 sps:$4 sm:$0xff]  }
  0x38   :  { %919 = vmatpush2.bf16.msra.mxu1 %v3592_v57  ;;  %877 = vmatprep.subr.bf16.mxu0 %v3593_v58  ;;  %v3694_v57 = vld [vmem:[%s5468_s3 + $0x34c] ss:$16 sps:$4 sm:$0xff]   ;;  %v3689_v58 = vld [vmem:[%s5468_s3 + $0x148] ss:$16 sps:$4 sm:$0xff]  }
  0x39   :  { %920 = vmatprep.subr.bf16.mxu1 %v3595_v59  ;;  %v3692_v59 = vld [vmem:[%s5468_s3 + $0x348] ss:$16 sps:$4 sm:$0xff]  }
  0x3b   :  { %878 = vmatpush2.bf16.msra.mxu0 %v3597_v60  ;;  %v3697_v60 = vld [vmem:[%s5468_s3 + $0x12c] ss:$16 sps:$4 sm:$0xff]  }
  0x3c   :  { %921 = vmatpush2.bf16.msra.mxu1 %v3598_v61  ;;  %879 = vmatprep.subr.bf16.mxu0 %v3599_v62  ;;  %v3700_v61 = vld [vmem:[%s5468_s3 + $0x32c] ss:$16 sps:$4 sm:$0xff]   ;;  %v3695_v62 = vld [vmem:[%s5468_s3 + $0x128] ss:$16 sps:$4 sm:$0xff]  }
  0x3d   :  { %922 = vmatprep.subr.bf16.mxu1 %v3601_v63  ;;  %v3698_v63 = vld [vmem:[%s5468_s3 + $0x328] ss:$16 sps:$4 sm:$0xff]  }
  0x3f   :  { %880 = vmatpush2.bf16.msra.mxu0 %v3603_v0  ;;  %v3703_v0 = vld [vmem:[%s5468_s3 + $0x10c] ss:$16 sps:$4 sm:$0xff]  }
  0x40   :  { %923 = vmatpush2.bf16.msra.mxu1 %v3604_v1  ;;  %935 = vmatprep.subr.bf16.mxu0 %v3613_v2  ;;  %v3706_v1 = vld [vmem:[%s5468_s3 + $0x30c] ss:$16 sps:$4 sm:$0xff]   ;;  %v3701_v2 = vld [vmem:[%s5468_s3 + $0x108] ss:$16 sps:$4 sm:$0xff]  }
  0x41   :  { %978 = vmatprep.subr.bf16.mxu1 %v3616_v3  ;;  %v3704_v3 = vld [vmem:[%s5468_s3 + $0x308] ss:$16 sps:$4 sm:$0xff]  }
  0x42   :  { %882 = vmatmul.mubr.bf16.vlgmr.msra.gmra.mxu0 %v4370_v4 }
  0x43   :  { %925 = vmatmul.mubr.bf16.vlgmr.msra.gmra.mxu1 %v4375_v5  ;;  %936 = vmatpush1.bf16.msra.mxu0 %v3611_v6  ;;  %v3709_v6 = vld [vmem:[%s5470_s4 + $0xe4] ss:$16 sps:$4 sm:$0xff]  }
  0x44   :  { %979 = vmatpush1.bf16.msra.mxu1 %v3614_v7  ;;  %937 = vmatprep.subr.bf16.mxu0 %v3619_v8  ;;  %v3712_v7 = vld [vmem:[%s5470_s4 + $0x2e4] ss:$16 sps:$4 sm:$0xff]   ;;  %v3707_v8 = vld [vmem:[%s5470_s4 + $0xe0] ss:$16 sps:$4 sm:$0xff]  }
  0x45   :  { %980 = vmatprep.subr.bf16.mxu1 %v3622_v9  ;;  %967 = vmatprep.mubr.bf16.mxu0 %v3607_v49  ;;  %v3682_v49 = vld [vmem:[%s5468_s3 + $0x38c] ss:$16 sps:$4 sm:$0xff]   ;;  %v3710_v9 = vld [vmem:[%s5470_s4 + $0x2e0] ss:$16 sps:$4 sm:$0xff]  }
  0x46   :  { %1010 = vmatprep.mubr.bf16.mxu1 %v3610_v51  ;;  %v3680_v51 = vld [vmem:[%s5468_s3 + $0x388] ss:$16 sps:$4 sm:$0xff]  }
  0x47   :  { %938 = vmatpush1.bf16.msra.mxu0 %v3617_v10  ;;  %v3715_v10 = vld [vmem:[%s5470_s4 + $0xc4] ss:$16 sps:$4 sm:$0xff]  }
  0x48   :  { %981 = vmatpush1.bf16.msra.mxu1 %v3620_v11  ;;  %939 = vmatprep.subr.bf16.mxu0 %v3625_v12  ;;  %v3718_v11 = vld [vmem:[%s5470_s4 + $0x2c4] ss:$16 sps:$4 sm:$0xff]   ;;  %v3713_v12 = vld [vmem:[%s5470_s4 + $0xc0] ss:$16 sps:$4 sm:$0xff]  }
  0x49   :  { %982 = vmatprep.subr.bf16.mxu1 %v3628_v13  ;;  %v3716_v13 = vld [vmem:[%s5470_s4 + $0x2c0] ss:$16 sps:$4 sm:$0xff]  }
  0x4b   :  { %940 = vmatpush1.bf16.msra.mxu0 %v3623_v14  ;;  %v3721_v14 = vld [vmem:[%s5470_s4 + $0xa4] ss:$16 sps:$4 sm:$0xff]  }
  0x4c   :  { %983 = vmatpush1.bf16.msra.mxu1 %v3626_v15  ;;  %941 = vmatprep.subr.bf16.mxu0 %v3631_v16  ;;  %v4597_v15 = vld [vmem:[%s5471_s1 + $0x4] ss:$16 sps:$4 sm:$0xff]  }
  0x4d   :  { %984 = vmatprep.subr.bf16.mxu1 %v3634_v17  ;;  %v3724_v16 = vld [vmem:[%s5470_s4 + $0x2a4] ss:$16 sps:$4 sm:$0xff]   ;;  %v3722_v17 = vld [vmem:[%s5470_s4 + $0x2a0] ss:$16 sps:$4 sm:$0xff]  }
  0x4f   :  { %942 = vmatpush1.bf16.msra.mxu0 %v3629_v18  ;;  %v3727_v18 = vld [vmem:[%s5470_s4 + $0x84] ss:$16 sps:$4 sm:$0xff]  }
  0x50   :  { %985 = vmatpush1.bf16.msra.mxu1 %v3632_v19  ;;  %943 = vmatprep.subr.bf16.mxu0 %v3637_v20  ;;  %v3730_v19 = vld [vmem:[%s5470_s4 + $0x284] ss:$16 sps:$4 sm:$0xff]   ;;  %v3725_v20 = vld [vmem:[%s5470_s4 + $0x80] ss:$16 sps:$4 sm:$0xff]  }
  0x51   :  { %986 = vmatprep.subr.bf16.mxu1 %v3640_v21  ;;  %v3728_v21 = vld [vmem:[%s5470_s4 + $0x280] ss:$16 sps:$4 sm:$0xff]  }
  0x53   :  { %944 = vmatpush1.bf16.msra.mxu0 %v3635_v22  ;;  %v3733_v22 = vld [vmem:[%s5470_s4 + $0x64] ss:$16 sps:$4 sm:$0xff]  }
  0x54   :  { %987 = vmatpush1.bf16.msra.mxu1 %v3638_v23  ;;  %945 = vmatprep.subr.bf16.mxu0 %v3643_v24  ;;  %v3736_v23 = vld [vmem:[%s5470_s4 + $0x264] ss:$16 sps:$4 sm:$0xff]   ;;  %v3731_v24 = vld [vmem:[%s5470_s4 + $0x60] ss:$16 sps:$4 sm:$0xff]  }
  0x55   :  { %988 = vmatprep.subr.bf16.mxu1 %v3646_v25  ;;  %v3734_v25 = vld [vmem:[%s5470_s4 + $0x260] ss:$16 sps:$4 sm:$0xff]  }
  0x57   :  { %946 = vmatpush1.bf16.msra.mxu0 %v3641_v26  ;;  %v3739_v26 = vld [vmem:[%s5470_s4 + $0x44] ss:$16 sps:$4 sm:$0xff]  }
  0x58   :  { %989 = vmatpush1.bf16.msra.mxu1 %v3644_v27  ;;  %947 = vmatprep.subr.bf16.mxu0 %v3649_v28  ;;  %v3742_v27 = vld [vmem:[%s5470_s4 + $0x244] ss:$16 sps:$4 sm:$0xff]   ;;  %v3737_v28 = vld [vmem:[%s5470_s4 + $0x40] ss:$16 sps:$4 sm:$0xff]  }
  0x59   :  { %990 = vmatprep.subr.bf16.mxu1 %v3652_v29  ;;  %v3740_v29 = vld [vmem:[%s5470_s4 + $0x240] ss:$16 sps:$4 sm:$0xff]  }
  0x5b   :  { %948 = vmatpush1.bf16.msra.mxu0 %v3647_v30  ;;  %v3745_v30 = vld [vmem:[%s5470_s4 + $0x24] ss:$16 sps:$4 sm:$0xff]  }
  0x5c   :  { %991 = vmatpush1.bf16.msra.mxu1 %v3650_v31  ;;  %949 = vmatprep.subr.bf16.mxu0 %v3655_v32  ;;  %v3748_v31 = vld [vmem:[%s5470_s4 + $0x224] ss:$16 sps:$4 sm:$0xff]   ;;  %v3743_v32 = vld [vmem:[%s5470_s4 + $0x20] ss:$16 sps:$4 sm:$0xff]  }
  0x5d   :  { %992 = vmatprep.subr.bf16.mxu1 %v3658_v33  ;;  %v3746_v33 = vld [vmem:[%s5470_s4 + $0x220] ss:$16 sps:$4 sm:$0xff]  }
  0x5f   :  { %950 = vmatpush1.bf16.msra.mxu0 %v3653_v34  ;;  %v3751_v34 = vld [vmem:[%s5470_s4 + $0x4] ss:$16 sps:$4 sm:$0xff]  }
  0x60   :  { %993 = vmatpush1.bf16.msra.mxu1 %v3656_v35  ;;  %951 = vmatprep.subr.bf16.mxu0 %v3661_v36  ;;  %v3754_v35 = vld [vmem:[%s5470_s4 + $0x204] ss:$16 sps:$4 sm:$0xff]   ;;  %v3749_v36 = vld [vmem:[%s5470_s4] ss:$16 sps:$4 sm:$0xff]  }
  0x61   :  { %994 = vmatprep.subr.bf16.mxu1 %v3664_v37  ;;  %v3752_v37 = vld [vmem:[%s5470_s4 + $0x200] ss:$16 sps:$4 sm:$0xff]  }
  0x63   :  { %952 = vmatpush2.bf16.msra.mxu0 %v3659_v38  ;;  %v3757_v38 = vld [vmem:[%s5470_s4 + $0x1e4] ss:$16 sps:$4 sm:$0xff]  }
  0x64   :  { %995 = vmatpush2.bf16.msra.mxu1 %v3662_v39  ;;  %953 = vmatprep.subr.bf16.mxu0 %v3667_v40  ;;  %v3760_v39 = vld [vmem:[%s5470_s4 + $0x3e4] ss:$16 sps:$4 sm:$0xff]   ;;  %v3755_v40 = vld [vmem:[%s5470_s4 + $0x1e0] ss:$16 sps:$4 sm:$0xff]  }
  0x65   :  { %996 = vmatprep.subr.bf16.mxu1 %v3670_v41  ;;  %v3758_v41 = vld [vmem:[%s5470_s4 + $0x3e0] ss:$16 sps:$4 sm:$0xff]  }
  0x67   :  { %954 = vmatpush2.bf16.msra.mxu0 %v3665_v42  ;;  %v3763_v42 = vld [vmem:[%s5470_s4 + $0x1c4] ss:$16 sps:$4 sm:$0xff]  }
  0x68   :  { %997 = vmatpush2.bf16.msra.mxu1 %v3668_v43  ;;  %955 = vmatprep.subr.bf16.mxu0 %v3673_v44  ;;  %v3766_v43 = vld [vmem:[%s5470_s4 + $0x3c4] ss:$16 sps:$4 sm:$0xff]   ;;  %v3761_v44 = vld [vmem:[%s5470_s4 + $0x1c0] ss:$16 sps:$4 sm:$0xff]  }
  0x69   :  { %998 = vmatprep.subr.bf16.mxu1 %v3676_v45  ;;  %v3764_v45 = vld [vmem:[%s5470_s4 + $0x3c0] ss:$16 sps:$4 sm:$0xff]  }
  0x6b   :  { %956 = vmatpush2.bf16.msra.mxu0 %v3671_v46  ;;  %v3769_v46 = vld [vmem:[%s5470_s4 + $0x1a4] ss:$16 sps:$4 sm:$0xff]  }
  0x6c   :  { %999 = vmatpush2.bf16.msra.mxu1 %v3674_v47  ;;  %957 = vmatprep.subr.bf16.mxu0 %v3679_v48  ;;  %v3772_v47 = vld [vmem:[%s5470_s4 + $0x3a4] ss:$16 sps:$4 sm:$0xff]   ;;  %v3767_v48 = vld [vmem:[%s5470_s4 + $0x1a0] ss:$16 sps:$4 sm:$0xff]  }
  0x6d   :  { %1000 = vmatprep.subr.bf16.mxu1 %v3682_v49  ;;  %v3770_v49 = vld [vmem:[%s5470_s4 + $0x3a0] ss:$16 sps:$4 sm:$0xff]  }
  0x6f   :  { %958 = vmatpush2.bf16.msra.mxu0 %v3677_v50  ;;  %v3775_v50 = vld [vmem:[%s5470_s4 + $0x184] ss:$16 sps:$4 sm:$0xff]  }
  0x70   :  { %1001 = vmatpush2.bf16.msra.mxu1 %v3680_v51  ;;  %959 = vmatprep.subr.bf16.mxu0 %v3685_v52  ;;  %v3778_v51 = vld [vmem:[%s5470_s4 + $0x384] ss:$16 sps:$4 sm:$0xff]   ;;  %v3773_v52 = vld [vmem:[%s5470_s4 + $0x180] ss:$16 sps:$4 sm:$0xff]  }
  0x71   :  { %1002 = vmatprep.subr.bf16.mxu1 %v3688_v53  ;;  %v3776_v53 = vld [vmem:[%s5470_s4 + $0x380] ss:$16 sps:$4 sm:$0xff]  }
  0x73   :  { %960 = vmatpush2.bf16.msra.mxu0 %v3683_v54  ;;  %v3781_v54 = vld [vmem:[%s5470_s4 + $0x164] ss:$16 sps:$4 sm:$0xff]  }
  0x74   :  { %1003 = vmatpush2.bf16.msra.mxu1 %v3686_v55  ;;  %961 = vmatprep.subr.bf16.mxu0 %v3691_v56  ;;  %v3784_v55 = vld [vmem:[%s5470_s4 + $0x364] ss:$16 sps:$4 sm:$0xff]   ;;  %v3779_v56 = vld [vmem:[%s5470_s4 + $0x160] ss:$16 sps:$4 sm:$0xff]  }
  0x75   :  { %1004 = vmatprep.subr.bf16.mxu1 %v3694_v57  ;;  %v3782_v57 = vld [vmem:[%s5470_s4 + $0x360] ss:$16 sps:$4 sm:$0xff]  }
  0x77   :  { %962 = vmatpush2.bf16.msra.mxu0 %v3689_v58  ;;  %v3787_v58 = vld [vmem:[%s5470_s4 + $0x144] ss:$16 sps:$4 sm:$0xff]  }
  0x78   :  { %1005 = vmatpush2.bf16.msra.mxu1 %v3692_v59  ;;  %963 = vmatprep.subr.bf16.mxu0 %v3697_v60  ;;  %v3790_v59 = vld [vmem:[%s5470_s4 + $0x344] ss:$16 sps:$4 sm:$0xff]   ;;  %v3785_v60 = vld [vmem:[%s5470_s4 + $0x140] ss:$16 sps:$4 sm:$0xff]  }
  0x79   :  { %1006 = vmatprep.subr.bf16.mxu1 %v3700_v61  ;;  %v3788_v61 = vld [vmem:[%s5470_s4 + $0x340] ss:$16 sps:$4 sm:$0xff]  }
  0x7b   :  { %964 = vmatpush2.bf16.msra.mxu0 %v3695_v62  ;;  %v3793_v62 = vld [vmem:[%s5470_s4 + $0x124] ss:$16 sps:$4 sm:$0xff]  }
  0x7c   :  { %1007 = vmatpush2.bf16.msra.mxu1 %v3698_v63  ;;  %965 = vmatprep.subr.bf16.mxu0 %v3703_v0  ;;  %v3796_v63 = vld [vmem:[%s5470_s4 + $0x324] ss:$16 sps:$4 sm:$0xff]   ;;  %v3791_v0 = vld [vmem:[%s5470_s4 + $0x120] ss:$16 sps:$4 sm:$0xff]  }
  0x7d   :  { %1008 = vmatprep.subr.bf16.mxu1 %v3706_v1  ;;  %v3794_v1 = vld [vmem:[%s5470_s4 + $0x320] ss:$16 sps:$4 sm:$0xff]  }
  0x7f   :  { %966 = vmatpush2.bf16.msra.mxu0 %v3701_v2  ;;  %v3799_v2 = vld [vmem:[%s5470_s4 + $0x104] ss:$16 sps:$4 sm:$0xff]  }
  0x80   :  { %1009 = vmatpush2.bf16.msra.mxu1 %v3704_v3  ;;  %1863 = vmatprep.subr.bf16.mxu0 %v3709_v6  ;;  %v3802_v3 = vld [vmem:[%s5470_s4 + $0x304] ss:$16 sps:$4 sm:$0xff]   ;;  %v3797_v6 = vld [vmem:[%s5470_s4 + $0x100] ss:$16 sps:$4 sm:$0xff]  }
  0x81   :  { %1906 = vmatprep.subr.bf16.mxu1 %v3712_v7  ;;  %v3800_v7 = vld [vmem:[%s5470_s4 + $0x300] ss:$16 sps:$4 sm:$0xff]  }
  0x82   :  { %968 = vmatmul.mubr.bf16.vlgmr.msra.gmra.mxu0 %v4370_v4  ;;  %v4605_v4 = vld [vmem:[%s5471_s1 + $0xc] ss:$16 sps:$4 sm:$0xff]  }
  0x83   :  { %1011 = vmatmul.mubr.bf16.vlgmr.msra.gmra.mxu1 %v4375_v5  ;;  %1864 = vmatpush1.bf16.msra.mxu0 %v3707_v8  ;;  %v3719_v5 = vld [vmem:[%s5470_s4 + $0xa0] ss:$16 sps:$4 sm:$0xff]   ;;  %v3811_v8 = vld [vmem:[%s5470_s4 + $0xec] ss:$16 sps:$4 sm:$0xff]  }
  0x84   :  { %1907 = vmatpush1.bf16.msra.mxu1 %v3710_v9  ;;  %1865 = vmatprep.subr.bf16.mxu0 %v3715_v10  ;;  %v3814_v9 = vld [vmem:[%s5470_s4 + $0x2ec] ss:$16 sps:$4 sm:$0xff]   ;;  %v4780_v10 = vld [vmem:[%s5471_s1] ss:$16 sps:$4 sm:$0xff]  }
  0x85   :  { %1908 = vmatprep.subr.bf16.mxu1 %v3718_v11  ;;  %1895 = vmatprep.mubr.bf16.mxu0 %v4597_v15  ;;  %v4785_v11 = vld [vmem:[%s5471_s1 + $0x8] ss:$16 sps:$4 sm:$0xff]  }
  0x86   :  { %1938 = vmatprep.mubr.bf16.mxu1 %v4605_v4 }
  0x87   :  { %1866 = vmatpush1.bf16.msra.mxu0 %v3713_v12  ;;  %v3809_v12 = vld [vmem:[%s5470_s4 + $0xe8] ss:$16 sps:$4 sm:$0xff]  }
  0x88   :  { %1909 = vmatpush1.bf16.msra.mxu1 %v3716_v13  ;;  %1867 = vmatprep.subr.bf16.mxu0 %v3721_v14  ;;  %v3812_v13 = vld [vmem:[%s5470_s4 + $0x2e8] ss:$16 sps:$4 sm:$0xff]   ;;  %v3817_v14 = vld [vmem:[%s5470_s4 + $0xcc] ss:$16 sps:$4 sm:$0xff]  }
  0x89   :  { %1910 = vmatprep.subr.bf16.mxu1 %v3724_v16  ;;  %v3820_v16 = vld [vmem:[%s5470_s4 + $0x2cc] ss:$16 sps:$4 sm:$0xff]  }
  0x8b   :  { %1868 = vmatpush1.bf16.msra.mxu0 %v3719_v5  ;;  %v3815_v5 = vld [vmem:[%s5470_s4 + $0xc8] ss:$16 sps:$4 sm:$0xff]  }
  0x8c   :  { %1911 = vmatpush1.bf16.msra.mxu1 %v3722_v17  ;;  %1869 = vmatprep.subr.bf16.mxu0 %v3727_v18  ;;  %v3818_v17 = vld [vmem:[%s5470_s4 + $0x2c8] ss:$16 sps:$4 sm:$0xff]   ;;  %v3823_v18 = vld [vmem:[%s5470_s4 + $0xac] ss:$16 sps:$4 sm:$0xff]  }
  0x8d   :  { %1912 = vmatprep.subr.bf16.mxu1 %v3730_v19  ;;  %v3826_v19 = vld [vmem:[%s5470_s4 + $0x2ac] ss:$16 sps:$4 sm:$0xff]  }
  0x8f   :  { %1870 = vmatpush1.bf16.msra.mxu0 %v3725_v20  ;;  %v3821_v20 = vld [vmem:[%s5470_s4 + $0xa8] ss:$16 sps:$4 sm:$0xff]  }
  0x90   :  { %1913 = vmatpush1.bf16.msra.mxu1 %v3728_v21  ;;  %1871 = vmatprep.subr.bf16.mxu0 %v3733_v22  ;;  %v3824_v21 = vld [vmem:[%s5470_s4 + $0x2a8] ss:$16 sps:$4 sm:$0xff]   ;;  %v3829_v22 = vld [vmem:[%s5470_s4 + $0x8c] ss:$16 sps:$4 sm:$0xff]  }
  0x91   :  { %1914 = vmatprep.subr.bf16.mxu1 %v3736_v23  ;;  %v3830_v23 = vld [vmem:[%s5470_s4 + $0x288] ss:$16 sps:$4 sm:$0xff]  }
  0x93   :  { %1872 = vmatpush1.bf16.msra.mxu0 %v3731_v24  ;;  %v3835_v24 = vld [vmem:[%s5470_s4 + $0x6c] ss:$16 sps:$4 sm:$0xff]  }
  0x94   :  { %1915 = vmatpush1.bf16.msra.mxu1 %v3734_v25  ;;  %1873 = vmatprep.subr.bf16.mxu0 %v3739_v26  ;;  %v3838_v25 = vld [vmem:[%s5470_s4 + $0x26c] ss:$16 sps:$4 sm:$0xff]   ;;  %v3833_v26 = vld [vmem:[%s5470_s4 + $0x68] ss:$16 sps:$4 sm:$0xff]  }
  0x95   :  { %1916 = vmatprep.subr.bf16.mxu1 %v3742_v27  ;;  %v3836_v27 = vld [vmem:[%s5470_s4 + $0x268] ss:$16 sps:$4 sm:$0xff]  }
  0x97   :  { %1874 = vmatpush1.bf16.msra.mxu0 %v3737_v28  ;;  %v3841_v28 = vld [vmem:[%s5470_s4 + $0x4c] ss:$16 sps:$4 sm:$0xff]  }
  0x98   :  { %1917 = vmatpush1.bf16.msra.mxu1 %v3740_v29  ;;  %1875 = vmatprep.subr.bf16.mxu0 %v3745_v30  ;;  %v3844_v29 = vld [vmem:[%s5470_s4 + $0x24c] ss:$16 sps:$4 sm:$0xff]   ;;  %v3839_v30 = vld [vmem:[%s5470_s4 + $0x48] ss:$16 sps:$4 sm:$0xff]  }
  0x99   :  { %1918 = vmatprep.subr.bf16.mxu1 %v3748_v31  ;;  %v3842_v31 = vld [vmem:[%s5470_s4 + $0x248] ss:$16 sps:$4 sm:$0xff]  }
  0x9b   :  { %1876 = vmatpush1.bf16.msra.mxu0 %v3743_v32  ;;  %v3847_v32 = vld [vmem:[%s5470_s4 + $0x2c] ss:$16 sps:$4 sm:$0xff]  }
  0x9c   :  { %1919 = vmatpush1.bf16.msra.mxu1 %v3746_v33  ;;  %1877 = vmatprep.subr.bf16.mxu0 %v3751_v34  ;;  %v3850_v33 = vld [vmem:[%s5470_s4 + $0x22c] ss:$16 sps:$4 sm:$0xff]   ;;  %v3845_v34 = vld [vmem:[%s5470_s4 + $0x28] ss:$16 sps:$4 sm:$0xff]  }
  0x9d   :  { %1920 = vmatprep.subr.bf16.mxu1 %v3754_v35  ;;  %v3848_v35 = vld [vmem:[%s5470_s4 + $0x228] ss:$16 sps:$4 sm:$0xff]  }
  0x9f   :  { %1878 = vmatpush1.bf16.msra.mxu0 %v3749_v36  ;;  %v3853_v36 = vld [vmem:[%s5470_s4 + $0xc] ss:$16 sps:$4 sm:$0xff]  }
  0xa0   :  { %1921 = vmatpush1.bf16.msra.mxu1 %v3752_v37  ;;  %1879 = vmatprep.subr.bf16.mxu0 %v3757_v38  ;;  %v3856_v37 = vld [vmem:[%s5470_s4 + $0x20c] ss:$16 sps:$4 sm:$0xff]   ;;  %v3851_v38 = vld [vmem:[%s5470_s4 + $0x8] ss:$16 sps:$4 sm:$0xff]  }
  0xa1   :  { %1922 = vmatprep.subr.bf16.mxu1 %v3760_v39  ;;  %v3854_v39 = vld [vmem:[%s5470_s4 + $0x208] ss:$16 sps:$4 sm:$0xff]  }
  0xa3   :  { %1880 = vmatpush2.bf16.msra.mxu0 %v3755_v40  ;;  %v3859_v40 = vld [vmem:[%s5470_s4 + $0x1ec] ss:$16 sps:$4 sm:$0xff]  }
  0xa4   :  { %1923 = vmatpush2.bf16.msra.mxu1 %v3758_v41  ;;  %1881 = vmatprep.subr.bf16.mxu0 %v3763_v42  ;;  %v3862_v41 = vld [vmem:[%s5470_s4 + $0x3ec] ss:$16 sps:$4 sm:$0xff]   ;;  %v3857_v42 = vld [vmem:[%s5470_s4 + $0x1e8] ss:$16 sps:$4 sm:$0xff]  }
  0xa5   :  { %1924 = vmatprep.subr.bf16.mxu1 %v3766_v43  ;;  %v3860_v43 = vld [vmem:[%s5470_s4 + $0x3e8] ss:$16 sps:$4 sm:$0xff]  }
  0xa7   :  { %1882 = vmatpush2.bf16.msra.mxu0 %v3761_v44  ;;  %v3865_v44 = vld [vmem:[%s5470_s4 + $0x1cc] ss:$16 sps:$4 sm:$0xff]  }
  0xa8   :  { %1925 = vmatpush2.bf16.msra.mxu1 %v3764_v45  ;;  %1883 = vmatprep.subr.bf16.mxu0 %v3769_v46  ;;  %v3868_v45 = vld [vmem:[%s5470_s4 + $0x3cc] ss:$16 sps:$4 sm:$0xff]   ;;  %v3863_v46 = vld [vmem:[%s5470_s4 + $0x1c8] ss:$16 sps:$4 sm:$0xff]  }
  0xa9   :  { %1926 = vmatprep.subr.bf16.mxu1 %v3772_v47  ;;  %v3866_v47 = vld [vmem:[%s5470_s4 + $0x3c8] ss:$16 sps:$4 sm:$0xff]  }
  0xab   :  { %1884 = vmatpush2.bf16.msra.mxu0 %v3767_v48  ;;  %v3871_v48 = vld [vmem:[%s5470_s4 + $0x1ac] ss:$16 sps:$4 sm:$0xff]  }
  0xac   :  { %1927 = vmatpush2.bf16.msra.mxu1 %v3770_v49  ;;  %1885 = vmatprep.subr.bf16.mxu0 %v3775_v50  ;;  %v3874_v49 = vld [vmem:[%s5470_s4 + $0x3ac] ss:$16 sps:$4 sm:$0xff]   ;;  %v3869_v50 = vld [vmem:[%s5470_s4 + $0x1a8] ss:$16 sps:$4 sm:$0xff]  }
  0xad   :  { %1928 = vmatprep.subr.bf16.mxu1 %v3778_v51  ;;  %v3872_v51 = vld [vmem:[%s5470_s4 + $0x3a8] ss:$16 sps:$4 sm:$0xff]  }
  0xaf   :  { %1886 = vmatpush2.bf16.msra.mxu0 %v3773_v52  ;;  %v3877_v52 = vld [vmem:[%s5470_s4 + $0x18c] ss:$16 sps:$4 sm:$0xff]  }
  0xb0   :  { %1929 = vmatpush2.bf16.msra.mxu1 %v3776_v53  ;;  %1887 = vmatprep.subr.bf16.mxu0 %v3781_v54  ;;  %v3880_v53 = vld [vmem:[%s5470_s4 + $0x38c] ss:$16 sps:$4 sm:$0xff]   ;;  %v3875_v54 = vld [vmem:[%s5470_s4 + $0x188] ss:$16 sps:$4 sm:$0xff]  }
  0xb1   :  { %1930 = vmatprep.subr.bf16.mxu1 %v3784_v55  ;;  %v3878_v55 = vld [vmem:[%s5470_s4 + $0x388] ss:$16 sps:$4 sm:$0xff]  }
  0xb3   :  { %1888 = vmatpush2.bf16.msra.mxu0 %v3779_v56  ;;  %v3883_v56 = vld [vmem:[%s5470_s4 + $0x16c] ss:$16 sps:$4 sm:$0xff]  }
  0xb4   :  { %1931 = vmatpush2.bf16.msra.mxu1 %v3782_v57  ;;  %1889 = vmatprep.subr.bf16.mxu0 %v3787_v58  ;;  %v3886_v57 = vld [vmem:[%s5470_s4 + $0x36c] ss:$16 sps:$4 sm:$0xff]   ;;  %v3881_v58 = vld [vmem:[%s5470_s4 + $0x168] ss:$16 sps:$4 sm:$0xff]  }
  0xb5   :  { %1932 = vmatprep.subr.bf16.mxu1 %v3790_v59  ;;  %v3884_v59 = vld [vmem:[%s5470_s4 + $0x368] ss:$16 sps:$4 sm:$0xff]  }
  0xb7   :  { %1890 = vmatpush2.bf16.msra.mxu0 %v3785_v60  ;;  %v3889_v60 = vld [vmem:[%s5470_s4 + $0x14c] ss:$16 sps:$4 sm:$0xff]  }
  0xb8   :  { %1933 = vmatpush2.bf16.msra.mxu1 %v3788_v61  ;;  %1891 = vmatprep.subr.bf16.mxu0 %v3793_v62  ;;  %v3892_v61 = vld [vmem:[%s5470_s4 + $0x34c] ss:$16 sps:$4 sm:$0xff]   ;;  %v3887_v62 = vld [vmem:[%s5470_s4 + $0x148] ss:$16 sps:$4 sm:$0xff]  }
  0xb9   :  { %1934 = vmatprep.subr.bf16.mxu1 %v3796_v63  ;;  %v3890_v63 = vld [vmem:[%s5470_s4 + $0x348] ss:$16 sps:$4 sm:$0xff]  }
  0xbb   :  { %1892 = vmatpush2.bf16.msra.mxu0 %v3791_v0  ;;  %v169_v0 = vlaneseq }
  0xbc   :  { %1935 = vmatpush2.bf16.msra.mxu1 %v3794_v1  ;;  %1893 = vmatprep.subr.bf16.mxu0 %v3799_v2  ;;  %v3895_v1 = vld [vmem:[%s5470_s4 + $0x12c] ss:$16 sps:$4 sm:$0xff]  }
  0xbd   :  { %1936 = vmatprep.subr.bf16.mxu1 %v3802_v3  ;;  %v3898_v2 = vld [vmem:[%s5470_s4 + $0x32c] ss:$16 sps:$4 sm:$0xff]   ;;  %v3893_v3 = vld [vmem:[%s5470_s4 + $0x128] ss:$16 sps:$4 sm:$0xff]  }
  0xbf   :  { %1894 = vmatpush2.bf16.msra.mxu0 %v3797_v6  ;;  %v3896_v6 = vld [vmem:[%s5470_s4 + $0x328] ss:$16 sps:$4 sm:$0xff]  }
  0xc0   :  { %1937 = vmatpush2.bf16.msra.mxu1 %v3800_v7  ;;  %1949 = vmatprep.subr.bf16.mxu0 %v3811_v8  ;;  %v4965_v7 = vshrl.u32 %v169_v0, 7  ;;  %v3901_v8 = vld [vmem:[%s5470_s4 + $0x10c] ss:$16 sps:$4 sm:$0xff]   ;;  %v3952_v0 = vld [vmem:[%s5472_s5 + $0x204] ss:$16 sps:$4 sm:$0xff]  }
  0xc1   :  { %1992 = vmatprep.subr.bf16.mxu1 %v3814_v9  ;;  %v3904_v9 = vld [vmem:[%s5470_s4 + $0x30c] ss:$16 sps:$4 sm:$0xff]  }
  0xc2   :  { %1896 = vmatmul.mubr.bf16.vlgmr.msra.gmra.mxu0 %v4780_v10 }
  0xc3   :  { %1939 = vmatmul.mubr.bf16.vlgmr.msra.gmra.mxu1 %v4785_v11  ;;  %1950 = vmatpush1.bf16.msra.mxu0 %v3809_v12  ;;  %v3899_v12 = vld [vmem:[%s5470_s4 + $0x108] ss:$16 sps:$4 sm:$0xff]  }
  0xc4   :  { %1993 = vmatpush1.bf16.msra.mxu1 %v3812_v13  ;;  %1951 = vmatprep.subr.bf16.mxu0 %v3817_v14  ;;  %v3902_v13 = vld [vmem:[%s5470_s4 + $0x308] ss:$16 sps:$4 sm:$0xff]   ;;  %v4982_v14 = vld [vmem:[%s5474_s6] sm:$0xf] }
  0xc5   :  { %1994 = vmatprep.subr.bf16.mxu1 %v3820_v16  ;;  %1981 = vmatprep.mubr.bf16.mxu0 %v4597_v15  ;;  %v3832_v15 = vld [vmem:[%s5470_s4 + $0x28c] ss:$16 sps:$4 sm:$0xff]   ;;  %v4985_v16 = vsub.s32 0, %v4965_v7 }
  0xc6   :  { %2024 = vmatprep.mubr.bf16.mxu1 %v4605_v4  ;;  %v3827_v4 = vld [vmem:[%s5470_s4 + $0x88] ss:$16 sps:$4 sm:$0xff]  }
  0xc7   :  { %1952 = vmatpush1.bf16.msra.mxu0 %v3815_v5  ;;  %v3907_v5 = vld [vmem:[%s5472_s5 + $0xe4] ss:$16 sps:$4 sm:$0xff]  }
  0xc8   :  { %1995 = vmatpush1.bf16.msra.mxu1 %v3818_v17  ;;  %1953 = vmatprep.subr.bf16.mxu0 %v3823_v18  ;;  %v3910_v17 = vld [vmem:[%s5472_s5 + $0x2e4] ss:$16 sps:$4 sm:$0xff]   ;;  %v4994_v18 = vsub.s32 1, %v4965_v7 }
  0xc9   :  { %1996 = vmatprep.subr.bf16.mxu1 %v3826_v19  ;;  %v3905_v19 = vld [vmem:[%s5472_s5 + $0xe0] ss:$16 sps:$4 sm:$0xff]  }
  0xcb   :  { %1954 = vmatpush1.bf16.msra.mxu0 %v3821_v20  ;;  %v172_v20 = vrot.slane %v4982_v14, %v4985_v16 }
  0xcc   :  { %1997 = vmatpush1.bf16.msra.mxu1 %v3824_v21  ;;  %1955 = vmatprep.subr.bf16.mxu0 %v3829_v22  ;;  %v3908_v21 = vld [vmem:[%s5472_s5 + $0x2e0] ss:$16 sps:$4 sm:$0xff]   ;;  %v3913_v22 = vld [vmem:[%s5472_s5 + $0xc4] ss:$16 sps:$4 sm:$0xff]  }
  0xcd   :  { %1998 = vmatprep.subr.bf16.mxu1 %v3832_v15  ;;  %v3916_v15 = vld [vmem:[%s5472_s5 + $0x2c4] ss:$16 sps:$4 sm:$0xff]  }
  0xcf   :  { %1956 = vmatpush1.bf16.msra.mxu0 %v3827_v4  ;;  %v176_v4 = vrot.slane %v4982_v14, %v4994_v18 }
  0xd0   :  { %1999 = vmatpush1.bf16.msra.mxu1 %v3830_v23  ;;  %1957 = vmatprep.subr.bf16.mxu0 %v3835_v24  ;;  %v5015_v23 = vld [vmem:[%s5473_s2 + $0x4] ss:$16 sps:$4 sm:$0xff]   ;;  %v5020_v24 = vld [vmem:[%s5473_s2 + $0xc] ss:$16 sps:$4 sm:$0xff]  }
  0xd1   :  { %2000 = vmatprep.subr.bf16.mxu1 %v3838_v25 }
  0xd3   :  { %1958 = vmatpush1.bf16.msra.mxu0 %v3833_v26 }
  0xd4   :  { %2001 = vmatpush1.bf16.msra.mxu1 %v3836_v27  ;;  %1959 = vmatprep.subr.bf16.mxu0 %v3841_v28  ;;  %v3911_v27 = vld [vmem:[%s5472_s5 + $0xc0] ss:$16 sps:$4 sm:$0xff]  }
  0xd5   :  { %2002 = vmatprep.subr.bf16.mxu1 %v3844_v29  ;;  %v3914_v29 = vld [vmem:[%s5472_s5 + $0x2c0] ss:$16 sps:$4 sm:$0xff]  }
  0xd7   :  { %1960 = vmatpush1.bf16.msra.mxu0 %v3839_v30 }
  0xd8   :  { %2003 = vmatpush1.bf16.msra.mxu1 %v3842_v31  ;;  %1961 = vmatprep.subr.bf16.mxu0 %v3847_v32 }
  0xd9   :  { %2004 = vmatprep.subr.bf16.mxu1 %v3850_v33 }
  0xdb   :  { %1962 = vmatpush1.bf16.msra.mxu0 %v3845_v34 }
  0xdc   :  { %2005 = vmatpush1.bf16.msra.mxu1 %v3848_v35  ;;  %1963 = vmatprep.subr.bf16.mxu0 %v3853_v36 }
  0xdd   :  { %2006 = vmatprep.subr.bf16.mxu1 %v3856_v37 }
  0xdf   :  { %1964 = vmatpush1.bf16.msra.mxu0 %v3851_v38  ;;  %v3917_v38 = vld [vmem:[%s5472_s5 + $0xa0] ss:$16 sps:$4 sm:$0xff]  }
  0xe0   :  { %2007 = vmatpush1.bf16.msra.mxu1 %v3854_v39  ;;  %1965 = vmatprep.subr.bf16.mxu0 %v3859_v40  ;;  %v3920_v39 = vld [vmem:[%s5472_s5 + $0x2a0] ss:$16 sps:$4 sm:$0xff]  }
  0xe1   :  { %2008 = vmatprep.subr.bf16.mxu1 %v3862_v41  ;;  %v3925_v41 = vld [vmem:[%s5472_s5 + $0x84] ss:$16 sps:$4 sm:$0xff]  }
  0xe3   :  { %1966 = vmatpush2.bf16.msra.mxu0 %v3857_v42  ;;  %v3928_v42 = vld [vmem:[%s5472_s5 + $0x284] ss:$16 sps:$4 sm:$0xff]  }
  0xe4   :  { %2009 = vmatpush2.bf16.msra.mxu1 %v3860_v43  ;;  %1967 = vmatprep.subr.bf16.mxu0 %v3865_v44 }
  0xe5   :  { %2010 = vmatprep.subr.bf16.mxu1 %v3868_v45 }
  0xe7   :  { %1968 = vmatpush2.bf16.msra.mxu0 %v3863_v46 }
  0xe8   :  { %2011 = vmatpush2.bf16.msra.mxu1 %v3866_v47  ;;  %1969 = vmatprep.subr.bf16.mxu0 %v3871_v48  ;;  %v3923_v48 = vld [vmem:[%s5472_s5 + $0x80] ss:$16 sps:$4 sm:$0xff]  }
  0xe9   :  { %2012 = vmatprep.subr.bf16.mxu1 %v3874_v49  ;;  %v3926_v49 = vld [vmem:[%s5472_s5 + $0x280] ss:$16 sps:$4 sm:$0xff]  }
  0xeb   :  { %1970 = vmatpush2.bf16.msra.mxu0 %v3869_v50  ;;  %v3931_v50 = vld [vmem:[%s5472_s5 + $0x64] ss:$16 sps:$4 sm:$0xff]  }
  0xec   :  { %2013 = vmatpush2.bf16.msra.mxu1 %v3872_v51  ;;  %1971 = vmatprep.subr.bf16.mxu0 %v3877_v52  ;;  %v3934_v51 = vld [vmem:[%s5472_s5 + $0x264] ss:$16 sps:$4 sm:$0xff]  }
  0xed   :  { %2014 = vmatprep.subr.bf16.mxu1 %v3880_v53  ;;  %v3929_v53 = vld [vmem:[%s5472_s5 + $0x60] ss:$16 sps:$4 sm:$0xff]  }
  0xef   :  { %1972 = vmatpush2.bf16.msra.mxu0 %v3875_v54  ;;  %v3932_v54 = vld [vmem:[%s5472_s5 + $0x260] ss:$16 sps:$4 sm:$0xff]  }
  0xf0   :  { %2015 = vmatpush2.bf16.msra.mxu1 %v3878_v55  ;;  %1973 = vmatprep.subr.bf16.mxu0 %v3883_v56  ;;  %v3937_v55 = vld [vmem:[%s5472_s5 + $0x44] ss:$16 sps:$4 sm:$0xff]  }
  0xf1   :  { %2016 = vmatprep.subr.bf16.mxu1 %v3886_v57  ;;  %v3940_v56 = vld [vmem:[%s5472_s5 + $0x244] ss:$16 sps:$4 sm:$0xff]   ;;  %v3935_v57 = vld [vmem:[%s5472_s5 + $0x40] ss:$16 sps:$4 sm:$0xff]  }
  0xf3   :  { %1974 = vmatpush2.bf16.msra.mxu0 %v3881_v58  ;;  %v3938_v58 = vld [vmem:[%s5472_s5 + $0x240] ss:$16 sps:$4 sm:$0xff]  }
  0xf4   :  { %2017 = vmatpush2.bf16.msra.mxu1 %v3884_v59  ;;  %1975 = vmatprep.subr.bf16.mxu0 %v3889_v60  ;;  %v3943_v59 = vld [vmem:[%s5472_s5 + $0x24] ss:$16 sps:$4 sm:$0xff]  }
  0xf5   :  { %2018 = vmatprep.subr.bf16.mxu1 %v3892_v61  ;;  %v3946_v60 = vld [vmem:[%s5472_s5 + $0x224] ss:$16 sps:$4 sm:$0xff]   ;;  %v3941_v61 = vld [vmem:[%s5472_s5 + $0x20] ss:$16 sps:$4 sm:$0xff]  }
  0xf7   :  { %1976 = vmatpush2.bf16.msra.mxu0 %v3887_v62  ;;  %v3944_v62 = vld [vmem:[%s5472_s5 + $0x220] ss:$16 sps:$4 sm:$0xff]  }
  0xf8   :  { %2019 = vmatpush2.bf16.msra.mxu1 %v3890_v63  ;;  %1977 = vmatprep.subr.bf16.mxu0 %v3895_v1  ;;  %v3949_v63 = vld [vmem:[%s5472_s5 + $0x4] ss:$16 sps:$4 sm:$0xff]   ;;  %v3947_v1 = vld [vmem:[%s5472_s5] ss:$16 sps:$4 sm:$0xff]  }
  0xf9   :  { %2020 = vmatprep.subr.bf16.mxu1 %v3898_v2  ;;  %v3950_v2 = vld [vmem:[%s5472_s5 + $0x200] ss:$16 sps:$4 sm:$0xff]  }
  0xfb   :  { %1978 = vmatpush2.bf16.msra.mxu0 %v3893_v3  ;;  %v3955_v3 = vld [vmem:[%s5472_s5 + $0x1e4] ss:$16 sps:$4 sm:$0xff]  }
  0xfc   :  { %2021 = vmatpush2.bf16.msra.mxu1 %v3896_v6  ;;  %1979 = vmatprep.subr.bf16.mxu0 %v3901_v8  ;;  %v3958_v6 = vld [vmem:[%s5472_s5 + $0x3e4] ss:$16 sps:$4 sm:$0xff]   ;;  %v3953_v8 = vld [vmem:[%s5472_s5 + $0x1e0] ss:$16 sps:$4 sm:$0xff]  }
  0xfd   :  { %2022 = vmatprep.subr.bf16.mxu1 %v3904_v9  ;;  %v3956_v9 = vld [vmem:[%s5472_s5 + $0x3e0] ss:$16 sps:$4 sm:$0xff]  }
  0xff   :  { %1980 = vmatpush2.bf16.msra.mxu0 %v3899_v12  ;;  %v3961_v12 = vld [vmem:[%s5472_s5 + $0x1c4] ss:$16 sps:$4 sm:$0xff]  }
 0x100   :  { %2023 = vmatpush2.bf16.msra.mxu1 %v3902_v13  ;;  %2877 = vmatprep.subr.bf16.mxu0 %v3907_v5  ;;  %v3964_v13 = vld [vmem:[%s5472_s5 + $0x3c4] ss:$16 sps:$4 sm:$0xff]   ;;  %v3959_v5 = vld [vmem:[%s5472_s5 + $0x1c0] ss:$16 sps:$4 sm:$0xff]  }
 0x101   :  { %2920 = vmatprep.subr.bf16.mxu1 %v3910_v17  ;;  %v3962_v17 = vld [vmem:[%s5472_s5 + $0x3c0] ss:$16 sps:$4 sm:$0xff]  }
 0x102   :  { %v883_v25 = vpop.f32.mrf.mxu0  ;;  %1982 = vmatmul.mubr.bf16.vlgmr.msra.gmra.mxu0 %v4780_v10  ;;  %v3919_v10 = vld [vmem:[%s5472_s5 + $0xa4] ss:$16 sps:$4 sm:$0xff]  }
 0x103   :  { %v926_v26 = vpop.f32.mrf.mxu1  ;;  %2025 = vmatmul.mubr.bf16.vlgmr.msra.gmra.mxu1 %v4785_v11  ;;  %v884_v28 = vadd.f32 %v883_v25, %v172_v20  ;;  %2878 = vmatpush1.bf16.msra.mxu0 %v3905_v19  ;;  %v3922_v11 = vld [vmem:[%s5472_s5 + $0x2a4] ss:$16 sps:$4 sm:$0xff]   ;;  %v3971_v25 = vld [vmem:[%s5472_s5 + $0x180] ss:$16 sps:$4 sm:$0xff]  }
 0x104   :  { %2921 = vmatpush1.bf16.msra.mxu1 %v3908_v21  ;;  %v885_v30 = vpop.f32.mrf.mxu0  ;;  %2879 = vmatprep.subr.bf16.mxu0 %v3913_v22  ;;  %v3967_v19 = vld [vmem:[%s5472_s5 + $0x1a4] ss:$16 sps:$4 sm:$0xff]   ;;  %v3965_v21 = vld [vmem:[%s5472_s5 + $0x1a0] ss:$16 sps:$4 sm:$0xff]  }
 0x105   :  { %v928_v31 = vpop.f32.mrf.mxu1  ;;  %2922 = vmatprep.subr.bf16.mxu1 %v3916_v15  ;;  %v927_v32 = vadd.f32 %v926_v26, %v884_v28  ;;  %v886_v33 = vadd.f32 %v885_v30, %v176_v4  ;;  %2909 = vmatprep.mubr.bf16.mxu0 %v5015_v23  ;;  %v3968_v22 = vld [vmem:[%s5472_s5 + $0x3a0] ss:$16 sps:$4 sm:$0xff]   ;;  %v3973_v15 = vld [vmem:[%s5472_s5 + $0x184] ss:$16 sps:$4 sm:$0xff]  }
 0x106   :  { %2952 = vmatprep.mubr.bf16.mxu1 %v5020_v24  ;;  %v887_v34 = vpop.f32.mrf.mxu0  ;;  %v3974_v26 = vld [vmem:[%s5472_s5 + $0x380] ss:$16 sps:$4 sm:$0xff]   ;;  %v3982_v28 = vld [vmem:[%s5472_s5 + $0x364] ss:$16 sps:$4 sm:$0xff]  }
 0x107   :  { %v930_v35 = vpop.f32.mrf.mxu1  ;;  %v929_v36 = vadd.f32 %v928_v31, %v886_v33  ;;  %v888_v37 = vadd.f32 %v887_v34, %v172_v20  ;;  %2880 = vmatpush1.bf16.msra.mxu0 %v3911_v27  ;;  %v3970_v20 = vld [vmem:[%s5472_s5 + $0x3a4] ss:$16 sps:$4 sm:$0xff]   ;;  %v3980_v30 = vld [vmem:[%s5472_s5 + $0x360] ss:$16 sps:$4 sm:$0xff]  }
 0x108   :  { %2923 = vmatpush1.bf16.msra.mxu1 %v3914_v29  ;;  %v889_v40 = vpop.f32.mrf.mxu0  ;;  %2881 = vmatprep.subr.bf16.mxu0 %v3919_v10  ;;  %v3979_v27 = vld [vmem:[%s5472_s5 + $0x164] ss:$16 sps:$4 sm:$0xff]   ;;  %v3977_v29 = vld [vmem:[%s5472_s5 + $0x160] ss:$16 sps:$4 sm:$0xff]  }
 0x109   :  { %2924 = vmatprep.subr.bf16.mxu1 %v3922_v11  ;;  %v3497_v43 = vpack.c.bf16 %v929_v36, %v927_v32  ;;  %v890_v44 = vadd.f32 %v889_v40, %v176_v4  ;;  %v932_v45 = vpop.f32.mrf.mxu1  ;;  %v931_v46 = vadd.f32 %v930_v35, %v888_v37  ;;  %v3976_v4 = vld [vmem:[%s5472_s5 + $0x384] ss:$16 sps:$4 sm:$0xff]   ;;  %v3983_v11 = vld [vmem:[%s5472_s5 + $0x140] ss:$16 sps:$4 sm:$0xff]  }
 0x10a   :  { %v3985_v31 = vld [vmem:[%s5472_s5 + $0x144] ss:$16 sps:$4 sm:$0xff]   ;;  %v3986_v32 = vld [vmem:[%s5472_s5 + $0x340] ss:$16 sps:$4 sm:$0xff]  }
 0x10b   :  { %1045 = vst [vmem:[%s5475_s9] sm:$0xff] %v3497_v43  ;;  %v933_v47 = vadd.f32 %v932_v45, %v890_v44  ;;  %2882 = vmatpush1.bf16.msra.mxu0 %v3917_v38  ;;  %v3988_v10 = vld [vmem:[%s5472_s5 + $0x344] ss:$16 sps:$4 sm:$0xff]   ;;  %v3989_v35 = vld [vmem:[%s5472_s5 + $0x120] ss:$16 sps:$4 sm:$0xff]   ;;  %v4012_v43 = vld [vmem:[%s5472_s5 + $0x2ec] ss:$16 sps:$4 sm:$0xff]  }
 0x10c   :  { %2925 = vmatpush1.bf16.msra.mxu1 %v3920_v39  ;;  %2883 = vmatprep.subr.bf16.mxu0 %v3925_v41  ;;  %v3991_v33 = vld [vmem:[%s5472_s5 + $0x124] ss:$16 sps:$4 sm:$0xff]   ;;  %v3992_v36 = vld [vmem:[%s5472_s5 + $0x320] ss:$16 sps:$4 sm:$0xff]   ;;  %v5207_v41 = vsub.s32 2, %v4965_v7  ;;  %v5216_v44 = vsub.s32 3, %v4965_v7 }
 0x10d   :  { %2926 = vmatprep.subr.bf16.mxu1 %v3928_v42  ;;  %v3499_v52 = vpack.c.bf16 %v933_v47, %v931_v46  ;;  %v3994_v34 = vld [vmem:[%s5472_s5 + $0x324] ss:$16 sps:$4 sm:$0xff]   ;;  %v3995_v39 = vld [vmem:[%s5472_s5 + $0x100] ss:$16 sps:$4 sm:$0xff]   ;;  %v4009_v42 = vld [vmem:[%s5472_s5 + $0xec] ss:$16 sps:$4 sm:$0xff]  }
 0x10e   :  { %v3997_v37 = vld [vmem:[%s5472_s5 + $0x104] ss:$16 sps:$4 sm:$0xff]   ;;  %v3998_v40 = vld [vmem:[%s5472_s5 + $0x300] ss:$16 sps:$4 sm:$0xff]   ;;  %v5226_v46 = vld [vmem:[%s5473_s2 + $0x8] ss:$16 sps:$4 sm:$0xff]   ;;  %v180_v47 = vrot.slane %v4982_v14, %v5207_v41 }
 0x10f   :  { %1047 = vst [vmem:[%s5475_s9 + $0x10] sm:$0xff] %v3499_v52  ;;  %2884 = vmatpush1.bf16.msra.mxu0 %v3923_v48  ;;  %v4000_v38 = vld [vmem:[%s5472_s5 + $0x304] ss:$16 sps:$4 sm:$0xff]   ;;  %v5221_v45 = vld [vmem:[%s5473_s2] ss:$16 sps:$4 sm:$0xff]  }
 0x110   :  { %2927 = vmatpush1.bf16.msra.mxu1 %v3926_v49  ;;  %2885 = vmatprep.subr.bf16.mxu0 %v3931_v50  ;;  %v4007_v7 = vld [vmem:[%s5472_s5 + $0xe8] ss:$16 sps:$4 sm:$0xff]   ;;  %v4015_v49 = vld [vmem:[%s5472_s5 + $0xcc] ss:$16 sps:$4 sm:$0xff]  }
 0x111   :  { %2928 = vmatprep.subr.bf16.mxu1 %v3934_v51  ;;  %v4010_v48 = vld [vmem:[%s5472_s5 + $0x2e8] ss:$16 sps:$4 sm:$0xff]   ;;  %v4018_v50 = vld [vmem:[%s5472_s5 + $0x2cc] ss:$16 sps:$4 sm:$0xff]   ;;  %v184_v51 = vrot.slane %v4982_v14, %v5216_v44 }
 0x112   :  { %v4021_v14 = vld [vmem:[%s5472_s5 + $0xac] ss:$16 sps:$4 sm:$0xff]  }
 0x113   :  { %2886 = vmatpush1.bf16.msra.mxu0 %v3929_v53 }
 0x114   :  { %2929 = vmatpush1.bf16.msra.mxu1 %v3932_v54  ;;  %2887 = vmatprep.subr.bf16.mxu0 %v3937_v55  ;;  %v4013_v55 = vld [vmem:[%s5472_s5 + $0xc8] ss:$16 sps:$4 sm:$0xff]  }
 0x115   :  { %2930 = vmatprep.subr.bf16.mxu1 %v3940_v56  ;;  %v4016_v56 = vld [vmem:[%s5472_s5 + $0x2c8] ss:$16 sps:$4 sm:$0xff]  }
 0x117   :  { %2888 = vmatpush1.bf16.msra.mxu0 %v3935_v57 }
 0x118   :  { %2931 = vmatpush1.bf16.msra.mxu1 %v3938_v58  ;;  %2889 = vmatprep.subr.bf16.mxu0 %v3943_v59  ;;  %v4024_v59 = vld [vmem:[%s5472_s5 + $0x2ac] ss:$16 sps:$4 sm:$0xff]  }
 0x119   :  { %2932 = vmatprep.subr.bf16.mxu1 %v3946_v60 }
 0x11b   :  { %2890 = vmatpush1.bf16.msra.mxu0 %v3941_v61 }
 0x11c   :  { %2933 = vmatpush1.bf16.msra.mxu1 %v3944_v62  ;;  %2891 = vmatprep.subr.bf16.mxu0 %v3949_v63 }
 0x11d   :  { %2934 = vmatprep.subr.bf16.mxu1 %v3952_v0 }
 0x11f   :  { %2892 = vmatpush1.bf16.msra.mxu0 %v3947_v1 }
 0x120   :  { %2935 = vmatpush1.bf16.msra.mxu1 %v3950_v2  ;;  %2893 = vmatprep.subr.bf16.mxu0 %v3955_v3  ;;  %v4019_v2 = vld [vmem:[%s5472_s5 + $0xa8] ss:$16 sps:$4 sm:$0xff]  }
 0x121   :  { %2936 = vmatprep.subr.bf16.mxu1 %v3958_v6  ;;  %v4022_v3 = vld [vmem:[%s5472_s5 + $0x2a8] ss:$16 sps:$4 sm:$0xff]  }
 0x123   :  { %2894 = vmatpush2.bf16.msra.mxu0 %v3953_v8 }
 0x124   :  { %2937 = vmatpush2.bf16.msra.mxu1 %v3956_v9  ;;  %2895 = vmatprep.subr.bf16.mxu0 %v3961_v12 }
 0x125   :  { %2938 = vmatprep.subr.bf16.mxu1 %v3964_v13 }
 0x127   :  { %2896 = vmatpush2.bf16.msra.mxu0 %v3959_v5 }
 0x128   :  { %2939 = vmatpush2.bf16.msra.mxu1 %v3962_v17  ;;  %2897 = vmatprep.subr.bf16.mxu0 %v3967_v19  ;;  %v4025_v17 = vld [vmem:[%s5472_s5 + $0x88] ss:$16 sps:$4 sm:$0xff]  }
 0x129   :  { %2940 = vmatprep.subr.bf16.mxu1 %v3970_v20  ;;  %v4028_v19 = vld [vmem:[%s5472_s5 + $0x288] ss:$16 sps:$4 sm:$0xff]   ;;  %v4033_v20 = vld [vmem:[%s5472_s5 + $0x6c] ss:$16 sps:$4 sm:$0xff]  }
 0x12b   :  { %2898 = vmatpush2.bf16.msra.mxu0 %v3965_v21  ;;  %v4036_v21 = vld [vmem:[%s5472_s5 + $0x26c] ss:$16 sps:$4 sm:$0xff]  }
 0x12c   :  { %2941 = vmatpush2.bf16.msra.mxu1 %v3968_v22  ;;  %2899 = vmatprep.subr.bf16.mxu0 %v3973_v15  ;;  %v4031_v15 = vld [vmem:[%s5472_s5 + $0x68] ss:$16 sps:$4 sm:$0xff]  }
 0x12d   :  { %2942 = vmatprep.subr.bf16.mxu1 %v3976_v4  ;;  %v4034_v4 = vld [vmem:[%s5472_s5 + $0x268] ss:$16 sps:$4 sm:$0xff]  }
 0x12f   :  { %2900 = vmatpush2.bf16.msra.mxu0 %v3971_v25  ;;  %v4039_v25 = vld [vmem:[%s5472_s5 + $0x4c] ss:$16 sps:$4 sm:$0xff]  }
 0x130   :  { %2943 = vmatpush2.bf16.msra.mxu1 %v3974_v26  ;;  %2901 = vmatprep.subr.bf16.mxu0 %v3979_v27  ;;  %v4042_v26 = vld [vmem:[%s5472_s5 + $0x24c] ss:$16 sps:$4 sm:$0xff]   ;;  %v4037_v27 = vld [vmem:[%s5472_s5 + $0x48] ss:$16 sps:$4 sm:$0xff]  }
 0x131   :  { %2944 = vmatprep.subr.bf16.mxu1 %v3982_v28  ;;  %v4040_v28 = vld [vmem:[%s5472_s5 + $0x248] ss:$16 sps:$4 sm:$0xff]  }
 0x133   :  { %2902 = vmatpush2.bf16.msra.mxu0 %v3977_v29  ;;  %v4045_v29 = vld [vmem:[%s5472_s5 + $0x2c] ss:$16 sps:$4 sm:$0xff]  }
 0x134   :  { %2945 = vmatpush2.bf16.msra.mxu1 %v3980_v30  ;;  %2903 = vmatprep.subr.bf16.mxu0 %v3985_v31  ;;  %v4048_v30 = vld [vmem:[%s5472_s5 + $0x22c] ss:$16 sps:$4 sm:$0xff]   ;;  %v4043_v31 = vld [vmem:[%s5472_s5 + $0x28] ss:$16 sps:$4 sm:$0xff]  }
 0x135   :  { %2946 = vmatprep.subr.bf16.mxu1 %v3988_v10  ;;  %v4046_v10 = vld [vmem:[%s5472_s5 + $0x228] ss:$16 sps:$4 sm:$0xff]  }
 0x137   :  { %2904 = vmatpush2.bf16.msra.mxu0 %v3983_v11  ;;  %v4051_v11 = vld [vmem:[%s5472_s5 + $0xc] ss:$16 sps:$4 sm:$0xff]  }
 0x138   :  { %2947 = vmatpush2.bf16.msra.mxu1 %v3986_v32  ;;  %2905 = vmatprep.subr.bf16.mxu0 %v3991_v33  ;;  %v4054_v32 = vld [vmem:[%s5472_s5 + $0x20c] ss:$16 sps:$4 sm:$0xff]   ;;  %v4049_v33 = vld [vmem:[%s5472_s5 + $0x8] ss:$16 sps:$4 sm:$0xff]  }
 0x139   :  { %2948 = vmatprep.subr.bf16.mxu1 %v3994_v34  ;;  %v4052_v34 = vld [vmem:[%s5472_s5 + $0x208] ss:$16 sps:$4 sm:$0xff]  }
 0x13b   :  { %2906 = vmatpush2.bf16.msra.mxu0 %v3989_v35  ;;  %v4057_v35 = vld [vmem:[%s5472_s5 + $0x1ec] ss:$16 sps:$4 sm:$0xff]  }
 0x13c   :  { %2949 = vmatpush2.bf16.msra.mxu1 %v3992_v36  ;;  %2907 = vmatprep.subr.bf16.mxu0 %v3997_v37  ;;  %v4060_v36 = vld [vmem:[%s5472_s5 + $0x3ec] ss:$16 sps:$4 sm:$0xff]   ;;  %v4055_v37 = vld [vmem:[%s5472_s5 + $0x1e8] ss:$16 sps:$4 sm:$0xff]  }
 0x13d   :  { %2950 = vmatprep.subr.bf16.mxu1 %v4000_v38  ;;  %v4058_v38 = vld [vmem:[%s5472_s5 + $0x3e8] ss:$16 sps:$4 sm:$0xff]  }
 0x13f   :  { %2908 = vmatpush2.bf16.msra.mxu0 %v3995_v39  ;;  %v4063_v39 = vld [vmem:[%s5472_s5 + $0x1cc] ss:$16 sps:$4 sm:$0xff]  }
 0x140   :  { %2951 = vmatpush2.bf16.msra.mxu1 %v3998_v40  ;;  %2963 = vmatprep.subr.bf16.mxu0 %v4009_v42  ;;  %v4066_v40 = vld [vmem:[%s5472_s5 + $0x3cc] ss:$16 sps:$4 sm:$0xff]   ;;  %v4061_v42 = vld [vmem:[%s5472_s5 + $0x1c8] ss:$16 sps:$4 sm:$0xff]  }
 0x141   :  { %3006 = vmatprep.subr.bf16.mxu1 %v4012_v43  ;;  %v4064_v43 = vld [vmem:[%s5472_s5 + $0x3c8] ss:$16 sps:$4 sm:$0xff]  }
 0x142   :  { %v969_v52 = vpop.f32.mrf.mxu0  ;;  %2910 = vmatmul.mubr.bf16.vlgmr.msra.gmra.mxu0 %v5221_v45 }
 0x143   :  { %v1012_v53 = vpop.f32.mrf.mxu1  ;;  %2953 = vmatmul.mubr.bf16.vlgmr.msra.gmra.mxu1 %v5226_v46  ;;  %v970_v54 = vadd.f32 %v969_v52, %v180_v47  ;;  %2964 = vmatpush1.bf16.msra.mxu0 %v4007_v7  ;;  %v4072_v7 = vld [vmem:[%s5472_s5 + $0x3ac] ss:$16 sps:$4 sm:$0xff]   ;;  %v4073_v52 = vld [vmem:[%s5472_s5 + $0x188] ss:$16 sps:$4 sm:$0xff]  }
 0x144   :  { %3007 = vmatpush1.bf16.msra.mxu1 %v4010_v48  ;;  %v971_v57 = vpop.f32.mrf.mxu0  ;;  %2965 = vmatprep.subr.bf16.mxu0 %v4015_v49  ;;  %v4067_v48 = vld [vmem:[%s5472_s5 + $0x1a8] ss:$16 sps:$4 sm:$0xff]  }
 0x145   :  { %v1014_v58 = vpop.f32.mrf.mxu1  ;;  %3008 = vmatprep.subr.bf16.mxu1 %v4018_v50  ;;  %v1013_v60 = vadd.f32 %v1012_v53, %v970_v54  ;;  %v972_v61 = vadd.f32 %v971_v57, %v184_v51  ;;  %2995 = vmatprep.mubr.bf16.mxu0 %v5015_v23  ;;  %v4027_v23 = vld [vmem:[%s5472_s5 + $0x8c] ss:$16 sps:$4 sm:$0xff]   ;;  %v4070_v49 = vld [vmem:[%s5472_s5 + $0x3a8] ss:$16 sps:$4 sm:$0xff]  }
 0x146   :  { %3038 = vmatprep.mubr.bf16.mxu1 %v5020_v24  ;;  %v973_v62 = vpop.f32.mrf.mxu0  ;;  %v4030_v24 = vld [vmem:[%s5472_s5 + $0x28c] ss:$16 sps:$4 sm:$0xff]   ;;  %v4076_v53 = vld [vmem:[%s5472_s5 + $0x388] ss:$16 sps:$4 sm:$0xff]  }
 0x147   :  { %v1016_v63 = vpop.f32.mrf.mxu1  ;;  %v1015_v0 = vadd.f32 %v1014_v58, %v972_v61  ;;  %v974_v1 = vadd.f32 %v973_v62, %v180_v47  ;;  %2966 = vmatpush1.bf16.msra.mxu0 %v4013_v55  ;;  %v4069_v47 = vld [vmem:[%s5472_s5 + $0x1ac] ss:$16 sps:$4 sm:$0xff]   ;;  %v4082_v57 = vld [vmem:[%s5472_s5 + $0x368] ss:$16 sps:$4 sm:$0xff]  }
 0x148   :  { %3009 = vmatpush1.bf16.msra.mxu1 %v4016_v56  ;;  %v975_v6 = vpop.f32.mrf.mxu0  ;;  %2967 = vmatprep.subr.bf16.mxu0 %v4021_v14  ;;  %v4075_v50 = vld [vmem:[%s5472_s5 + $0x18c] ss:$16 sps:$4 sm:$0xff]   ;;  %v4079_v56 = vld [vmem:[%s5472_s5 + $0x168] ss:$16 sps:$4 sm:$0xff]  }
 0x149   :  { %3010 = vmatprep.subr.bf16.mxu1 %v4024_v59  ;;  %v3498_v8 = vpack.c.bf16 %v1015_v0, %v1013_v60  ;;  %v976_v9 = vadd.f32 %v975_v6, %v184_v51  ;;  %v1018_v12 = vpop.f32.mrf.mxu1  ;;  %v1017_v13 = vadd.f32 %v1016_v63, %v974_v1  ;;  %v4078_v51 = vld [vmem:[%s5472_s5 + $0x38c] ss:$16 sps:$4 sm:$0xff]   ;;  %v4085_v59 = vld [vmem:[%s5472_s5 + $0x148] ss:$16 sps:$4 sm:$0xff]  }
 0x14a   :  { %v4081_v54 = vld [vmem:[%s5472_s5 + $0x16c] ss:$16 sps:$4 sm:$0xff]   ;;  %v4088_v60 = vld [vmem:[%s5472_s5 + $0x348] ss:$16 sps:$4 sm:$0xff]  }
 0x14b   :  { %1046 = vst [vmem:[%s5475_s9 + $0x8] sm:$0xff] %v3498_v8  ;;  %v1019_v5 = vadd.f32 %v1018_v12, %v976_v9  ;;  %2968 = vmatpush1.bf16.msra.mxu0 %v4019_v2  ;;  %v4084_v55 = vld [vmem:[%s5472_s5 + $0x36c] ss:$16 sps:$4 sm:$0xff]   ;;  %v4091_v63 = vld [vmem:[%s5472_s5 + $0x128] ss:$16 sps:$4 sm:$0xff]  }
 0x14c   :  { %3011 = vmatpush1.bf16.msra.mxu1 %v4022_v3  ;;  %2969 = vmatprep.subr.bf16.mxu0 %v4027_v23  ;;  %v4087_v58 = vld [vmem:[%s5472_s5 + $0x14c] ss:$16 sps:$4 sm:$0xff]   ;;  %v4094_v0 = vld [vmem:[%s5472_s5 + $0x328] ss:$16 sps:$4 sm:$0xff]   ;;  %v1181_v23 = vld [vmem:[%s5476_s7] sm:$0xf] }
 0x14d   :  { %3012 = vmatprep.subr.bf16.mxu1 %v4030_v24  ;;  %v3500_v22 = vpack.c.bf16 %v1019_v5, %v1017_v13  ;;  %v4090_v14 = vld [vmem:[%s5472_s5 + $0x34c] ss:$16 sps:$4 sm:$0xff]   ;;  %v4097_v3 = vld [vmem:[%s5472_s5 + $0x108] ss:$16 sps:$4 sm:$0xff]   ;;  %v1186_v24 = vrot.slane %v1181_v23, %v4985_v16  ;;  %v1190_v8 = vrot.slane %v1181_v23, %v4994_v18 }
 0x14e   :  { %v4093_v61 = vld [vmem:[%s5472_s5 + $0x12c] ss:$16 sps:$4 sm:$0xff]   ;;  %v4100_v6 = vld [vmem:[%s5472_s5 + $0x308] ss:$16 sps:$4 sm:$0xff]  }
 0x14f   :  { %1048 = vst [vmem:[%s5475_s9 + $0x18] sm:$0xff] %v3500_v22  ;;  %2970 = vmatpush1.bf16.msra.mxu0 %v4025_v17  ;;  %v4096_v62 = vld [vmem:[%s5472_s5 + $0x32c] ss:$16 sps:$4 sm:$0xff]  }
 0x150   :  { %3013 = vmatpush1.bf16.msra.mxu1 %v4028_v19  ;;  %2971 = vmatprep.subr.bf16.mxu0 %v4033_v20  ;;  %v4099_v1 = vld [vmem:[%s5472_s5 + $0x10c] ss:$16 sps:$4 sm:$0xff]  }
 0x151   :  { %3014 = vmatprep.subr.bf16.mxu1 %v4036_v21  ;;  %v4102_v2 = vld [vmem:[%s5472_s5 + $0x30c] ss:$16 sps:$4 sm:$0xff]  }
 0x153   :  { %2972 = vmatpush1.bf16.msra.mxu0 %v4031_v15 }
 0x154   :  { %3015 = vmatpush1.bf16.msra.mxu1 %v4034_v4  ;;  %2973 = vmatprep.subr.bf16.mxu0 %v4039_v25 }
 0x155   :  { %3016 = vmatprep.subr.bf16.mxu1 %v4042_v26 }
 0x157   :  { %2974 = vmatpush1.bf16.msra.mxu0 %v4037_v27 }
 0x158   :  { %3017 = vmatpush1.bf16.msra.mxu1 %v4040_v28  ;;  %2975 = vmatprep.subr.bf16.mxu0 %v4045_v29 }
 0x159   :  { %3018 = vmatprep.subr.bf16.mxu1 %v4048_v30  ;;  %v1194_v30 = vrot.slane %v1181_v23, %v5207_v41 }
 0x15b   :  { %2976 = vmatpush1.bf16.msra.mxu0 %v4043_v31  ;;  %v1198_v31 = vrot.slane %v1181_v23, %v5216_v44 }
 0x15c   :  { %3019 = vmatpush1.bf16.msra.mxu1 %v4046_v10  ;;  %2977 = vmatprep.subr.bf16.mxu0 %v4051_v11 }
 0x15d   :  { %3020 = vmatprep.subr.bf16.mxu1 %v4054_v32 }
 0x15f   :  { %2978 = vmatpush1.bf16.msra.mxu0 %v4049_v33 }
 0x160   :  { %3021 = vmatpush1.bf16.msra.mxu1 %v4052_v34  ;;  %2979 = vmatprep.subr.bf16.mxu0 %v4057_v35 }
 0x161   :  { %3022 = vmatprep.subr.bf16.mxu1 %v4060_v36 }
 0x163   :  { %2980 = vmatpush2.bf16.msra.mxu0 %v4055_v37 }
 0x164   :  { %3023 = vmatpush2.bf16.msra.mxu1 %v4058_v38  ;;  %2981 = vmatprep.subr.bf16.mxu0 %v4063_v39 }
 0x165   :  { %3024 = vmatprep.subr.bf16.mxu1 %v4066_v40 }
 0x167   :  { %2982 = vmatpush2.bf16.msra.mxu0 %v4061_v42 }
 0x168   :  { %3025 = vmatpush2.bf16.msra.mxu1 %v4064_v43  ;;  %2983 = vmatprep.subr.bf16.mxu0 %v4069_v47 }
 0x169   :  { %3026 = vmatprep.subr.bf16.mxu1 %v4072_v7 }
 0x16b   :  { %2984 = vmatpush2.bf16.msra.mxu0 %v4067_v48 }
 0x16c   :  { %3027 = vmatpush2.bf16.msra.mxu1 %v4070_v49  ;;  %2985 = vmatprep.subr.bf16.mxu0 %v4075_v50 }
 0x16d   :  { %3028 = vmatprep.subr.bf16.mxu1 %v4078_v51  ;;  %v2195_v51 = vld [vmem:[%s5478_s8] sm:$0xf] }
 0x16e   :  { %v2208_v23 = vrot.slane %v2195_v51, %v5207_v41 }
 0x16f   :  { %2986 = vmatpush2.bf16.msra.mxu0 %v4073_v52  ;;  %v2200_v52 = vrot.slane %v2195_v51, %v4985_v16 }
 0x170   :  { %3029 = vmatpush2.bf16.msra.mxu1 %v4076_v53  ;;  %2987 = vmatprep.subr.bf16.mxu0 %v4081_v54  ;;  %v2204_v53 = vrot.slane %v2195_v51, %v4994_v18 }
 0x171   :  { %3030 = vmatprep.subr.bf16.mxu1 %v4084_v55 }
 0x173   :  { %2988 = vmatpush2.bf16.msra.mxu0 %v4079_v56 }
 0x174   :  { %3031 = vmatpush2.bf16.msra.mxu1 %v4082_v57  ;;  %2989 = vmatprep.subr.bf16.mxu0 %v4087_v58 }
 0x175   :  { %3032 = vmatprep.subr.bf16.mxu1 %v4090_v14 }
 0x177   :  { %2990 = vmatpush2.bf16.msra.mxu0 %v4085_v59 }
 0x178   :  { %3033 = vmatpush2.bf16.msra.mxu1 %v4088_v60  ;;  %2991 = vmatprep.subr.bf16.mxu0 %v4093_v61 }
 0x179   :  { %3034 = vmatprep.subr.bf16.mxu1 %v4096_v62 }
 0x17b   :  { %2992 = vmatpush2.bf16.msra.mxu0 %v4091_v63 }
 0x17c   :  { %3035 = vmatpush2.bf16.msra.mxu1 %v4094_v0  ;;  %2993 = vmatprep.subr.bf16.mxu0 %v4099_v1 }
 0x17d   :  { %3036 = vmatprep.subr.bf16.mxu1 %v4102_v2 }
 0x17f   :  { %2994 = vmatpush2.bf16.msra.mxu0 %v4097_v3 }
 0x180   :  { %3037 = vmatpush2.bf16.msra.mxu1 %v4100_v6 }
 0x182   :  { %v1897_v9 = vpop.f32.mrf.mxu0  ;;  %2996 = vmatmul.mubr.bf16.vlgmr.msra.gmra.mxu0 %v5221_v45 }
 0x183   :  { %v1940_v12 = vpop.f32.mrf.mxu1  ;;  %3039 = vmatmul.mubr.bf16.vlgmr.msra.gmra.mxu1 %v5226_v46  ;;  %v1898_v13 = vadd.f32 %v1897_v9, %v1186_v24 }
 0x184   :  { %v1899_v5 = vpop.f32.mrf.mxu0 }
 0x185   :  { %v1942_v17 = vpop.f32.mrf.mxu1  ;;  %v1941_v19 = vadd.f32 %v1940_v12, %v1898_v13  ;;  %v1900_v20 = vadd.f32 %v1899_v5, %v1190_v8 }
 0x186   :  { %v1901_v21 = vpop.f32.mrf.mxu0 }
 0x187   :  { %v1944_v22 = vpop.f32.mrf.mxu1  ;;  %v1943_v15 = vadd.f32 %v1942_v17, %v1900_v20  ;;  %v1902_v4 = vadd.f32 %v1901_v21, %v1186_v24  ;;  %v2212_v24 = vrot.slane %v2195_v51, %v5216_v44 }
 0x188   :  { %v1903_v25 = vpop.f32.mrf.mxu0 }
 0x189   :  { %v3501_v26 = vpack.c.bf16 %v1943_v15, %v1941_v19  ;;  %v1904_v27 = vadd.f32 %v1903_v25, %v1190_v8  ;;  %v1946_v28 = vpop.f32.mrf.mxu1  ;;  %v1945_v45 = vadd.f32 %v1944_v22, %v1902_v4 }
 0x18b   :  { %2059 = vst [vmem:[%s5477_s10] sm:$0xff] %v3501_v26  ;;  %v1947_v29 = vadd.f32 %v1946_v28, %v1904_v27 }
 0x18d   :  { %v3503_v46 = vpack.c.bf16 %v1947_v29, %v1945_v45 }
 0x18f   :  { %2061 = vst [vmem:[%s5477_s10 + $0x10] sm:$0xff] %v3503_v46 }
 0x1c2   :  { %v1983_v10 = vpop.f32.mrf.mxu0 }
 0x1c3   :  { %v2026_v11 = vpop.f32.mrf.mxu1  ;;  %v1984_v32 = vadd.f32 %v1983_v10, %v1194_v30 }
 0x1c4   :  { %v1985_v33 = vpop.f32.mrf.mxu0 }
 0x1c5   :  { %v2028_v34 = vpop.f32.mrf.mxu1  ;;  %v2027_v35 = vadd.f32 %v2026_v11, %v1984_v32  ;;  %v1986_v36 = vadd.f32 %v1985_v33, %v1198_v31 }
 0x1c6   :  { %v1987_v37 = vpop.f32.mrf.mxu0 }
 0x1c7   :  { %v2030_v38 = vpop.f32.mrf.mxu1  ;;  %v2029_v39 = vadd.f32 %v2028_v34, %v1986_v36  ;;  %v1988_v40 = vadd.f32 %v1987_v37, %v1194_v30 }
 0x1c8   :  { %v1989_v42 = vpop.f32.mrf.mxu0 }
 0x1c9   :  { %v3502_v43 = vpack.c.bf16 %v2029_v39, %v2027_v35  ;;  %v1990_v47 = vadd.f32 %v1989_v42, %v1198_v31  ;;  %v2032_v7 = vpop.f32.mrf.mxu1  ;;  %v2031_v48 = vadd.f32 %v2030_v38, %v1988_v40 }
 0x1cb   :  { %2060 = vst [vmem:[%s5477_s10 + $0x8] sm:$0xff] %v3502_v43  ;;  %v2033_v49 = vadd.f32 %v2032_v7, %v1990_v47 }
 0x1cd   :  { %v3504_v50 = vpack.c.bf16 %v2033_v49, %v2031_v48 }
 0x1cf   :  { %2062 = vst [vmem:[%s5477_s10 + $0x18] sm:$0xff] %v3504_v50 }
 0x202   :  { %v2911_v54 = vpop.f32.mrf.mxu0 }
 0x203   :  { %v2954_v55 = vpop.f32.mrf.mxu1  ;;  %v2912_v56 = vadd.f32 %v2911_v54, %v2200_v52 }
 0x204   :  { %v2913_v57 = vpop.f32.mrf.mxu0 }
 0x205   :  { %v2956_v58 = vpop.f32.mrf.mxu1  ;;  %v2955_v14 = vadd.f32 %v2954_v55, %v2912_v56  ;;  %v2914_v59 = vadd.f32 %v2913_v57, %v2204_v53 }
 0x206   :  { %v2915_v60 = vpop.f32.mrf.mxu0 }
 0x207   :  { %v2958_v61 = vpop.f32.mrf.mxu1  ;;  %v2957_v62 = vadd.f32 %v2956_v58, %v2914_v59  ;;  %v2916_v63 = vadd.f32 %v2915_v60, %v2200_v52 }
 0x208   :  { %v2917_v0 = vpop.f32.mrf.mxu0 }
 0x209   :  { %v3505_v1 = vpack.c.bf16 %v2957_v62, %v2955_v14  ;;  %v2918_v2 = vadd.f32 %v2917_v0, %v2204_v53  ;;  %v2960_v3 = vpop.f32.mrf.mxu1  ;;  %v2959_v16 = vadd.f32 %v2958_v61, %v2916_v63 }
 0x20b   :  { %3073 = vst [vmem:[%s5479_s11] sm:$0xff] %v3505_v1  ;;  %v2961_v18 = vadd.f32 %v2960_v3, %v2918_v2 }
 0x20d   :  { %v3507_v6 = vpack.c.bf16 %v2961_v18, %v2959_v16 }
 0x20f   :  { %3075 = vst [vmem:[%s5479_s11 + $0x10] sm:$0xff] %v3507_v6 }
 0x242   :  { %v2997_v8 = vpop.f32.mrf.mxu0 }
 0x243   :  { %v3040_v9 = vpop.f32.mrf.mxu1  ;;  %v2998_v12 = vadd.f32 %v2997_v8, %v2208_v23 }
 0x244   :  { %v2999_v13 = vpop.f32.mrf.mxu0 }
 0x245   :  { %v3042_v5 = vpop.f32.mrf.mxu1  ;;  %v3000_v17 = vadd.f32 %v2999_v13, %v2212_v24  ;;  %v3041_v21 = vadd.f32 %v3040_v9, %v2998_v12 }
 0x246   :  { %v3001_v19 = vpop.f32.mrf.mxu0 }
 0x247   :  { %v3044_v20 = vpop.f32.mrf.mxu1  ;;  %v3043_v22 = vadd.f32 %v3042_v5, %v3000_v17  ;;  %v3002_v15 = vadd.f32 %v3001_v19, %v2208_v23 }
 0x248   :  { %v3003_v4 = vpop.f32.mrf.mxu0 }
 0x249   :  { %v3506_v25 = vpack.c.bf16 %v3043_v22, %v3041_v21  ;;  %v3004_v26 = vadd.f32 %v3003_v4, %v2212_v24  ;;  %v3046_v27 = vpop.f32.mrf.mxu1  ;;  %v3045_v41 = vadd.f32 %v3044_v20, %v3002_v15 }
 0x24b   :  { %3074 = vst [vmem:[%s5479_s11 + $0x8] sm:$0xff] %v3506_v25  ;;  %v3047_v44 = vadd.f32 %v3046_v27, %v3004_v26 }
 0x24d   :  { %v3508_v28 = vpack.c.bf16 %v3047_v44, %v3045_v41 }
 0x24f   :  { %3076 = vst [vmem:[%s5479_s11 + $0x18] sm:$0xff] %v3508_v28 }

</bundles_post_ra>
